<compile_context>
chip_gen: v7x
topology: tpu7x:2x2x1
jax: 0.10.0
libtpu: 0.0.40
codegen_flags: <defaults>
</compile_context>

<pallas_src>
import functools
import math

import jax
import jax.numpy as jnp
import numpy as np
from jax.experimental import pallas as pl
from jax.experimental.pallas import tpu as pltpu

NEG = -1.0e30          # plain Python float (NOT a jnp scalar -> not captured)
EPS = 1e-5
F32 = jnp.float32
BF16 = jnp.bfloat16

LAYER_WEIGHTS = ['ln_w', 'ln_b',
                 'sa_wqkv', 'sa_bqkv', 'sa_wo', 'sa_bo',
                 'ca_wqkv', 'ca_bqkv', 'ca_wo', 'ca_bo',
                 'w1', 'b1', 'w2', 'b2']
FINAL_WEIGHTS = ['fln_w', 'fln_b']


# -------------------------- in-kernel math helpers --------------------------

def _layernorm(x, w, b):
    mu = jnp.mean(x, axis=-1, keepdims=True)
    var = jnp.mean((x - mu) ** 2, axis=-1, keepdims=True)
    return (x - mu) * jax.lax.rsqrt(var + EPS) * w + b


def _softmax(s):
    m = jnp.max(s, axis=-1, keepdims=True)
    e = jnp.exp(s - m)
    return e * pl.reciprocal(jnp.sum(e, axis=-1, keepdims=True), approx=True)


# ------------------------------ Pallas kernels ------------------------------

def decoder_layer_kernel(H,
                         ylen_ref,                       # scalar prefetch (SMEM)
                         x_ref, mem_ref, mbias_ref,
                         ln_w_ref, ln_b_ref,
                         sa_wqkv_ref, sa_bqkv_ref, sa_wo_ref, sa_bo_ref,
                         ca_wqkv_ref, ca_bqkv_ref, ca_wo_ref, ca_bo_ref,
                         w1_ref, b1_ref, w2_ref, b2_ref,
                         fln_w_ref, fln_b_ref,
                         out_ref,
                         x_res, ctx_scr):
    """One (batch b, layer l) grid step of the fused decoder stack."""
    T, D = x_ref.shape
    dh = D // H
    b = pl.program_id(0)
    l = pl.program_id(1)
    n_layers = pl.num_programs(1)

    # Residual stream persists in VMEM scratch across the (arbitrary) layer axis.
    @pl.when(l == 0)
    def _():
        x_res[...] = x_ref[...]

    x = x_res[...]                       # [T, D] f32 residual stream
    mem_b16 = mem_ref[...]               # [S, D] bf16 encoder memory

    # Additive self-attention bias built in-kernel from y_lens (SMEM scalar).
    qi = jax.lax.broadcasted_iota(jnp.int32, (T, T), 0)
    ki = jax.lax.broadcasted_iota(jnp.int32, (T, T), 1)
    sbias = jnp.where((ki <= qi) & (ki < ylen_ref[b]), 0.0, NEG)   # [T, T] f32
    mbias = mbias_ref[0]                                           # [1, S] f32

    def mha(xq_b16, kv_b16, wqkv_ref, bqkv_ref, wo_ref, bo_ref, bias):
        # Fused QKV projections: full-width bf16 matmuls, f32 accumulation.
        q = (jnp.dot(xq_b16, wqkv_ref[0, 0], preferred_element_type=F32)
             + bqkv_ref[0, 0])
        k = (jnp.dot(kv_b16, wqkv_ref[0, 1], preferred_element_type=F32)
             + bqkv_ref[0, 1])
        v = (jnp.dot(kv_b16, wqkv_ref[0, 2], preferred_element_type=F32)
             + bqkv_ref[0, 2])
        # Per-head scores/context (contraction over dh is inherently per-head);
        # contexts are written into column slices of one scratch slab so the
        # output projection is ONE full-K [T,D]x[D,D] matmul against wo.
        for h in range(H):
            c = h * dh
            s = jax.lax.dot_general(q[:, c:c + dh], k[:, c:c + dh],
                                    (((1,), (1,)), ((), ())),
                                    preferred_element_type=F32) + bias
            p = _softmax(s)
            ctx_scr[:, c:c + dh] = jnp.dot(p, v[:, c:c + dh],
                                           preferred_element_type=F32)
        return (jnp.dot(ctx_scr[...].astype(BF16), wo_ref[0],
                        preferred_element_type=F32) + bo_ref[0])

    # --- self attention (pre-norm) ---
    xn = _layernorm(x, ln_w_ref[0, 0], ln_b_ref[0, 0]).astype(BF16)
    x = x + mha(xn, xn, sa_wqkv_ref, sa_bqkv_ref, sa_wo_ref, sa_bo_ref, sbias)

    # --- cross attention over encoder memory ---
    xn = _layernorm(x, ln_w_ref[0, 1], ln_b_ref[0, 1]).astype(BF16)
    x = x + mha(xn, mem_b16, ca_wqkv_ref, ca_bqkv_ref, ca_wo_ref, ca_bo_ref,
                mbias)

    # --- position-wise feed-forward ---
    xn = _layernorm(x, ln_w_ref[0, 2], ln_b_ref[0, 2]).astype(BF16)
    h1 = jnp.maximum(
        jnp.dot(xn, w1_ref[0], preferred_element_type=F32) + b1_ref[0], 0.0)
    x = x + jnp.dot(h1.astype(BF16), w2_ref[0],
                    preferred_element_type=F32) + b2_ref[0]

    x_res[...] = x

    # Final TransformerDecoder LayerNorm + single bf16 writeback.
    @pl.when(l == n_layers - 1)
    def _():
        out_ref[...] = _layernorm(x, fln_w_ref[...], fln_b_ref[...]).astype(
            out_ref.dtype)


def output_proj_kernel(x_ref, w_ref, b_ref, o_ref):
    o_ref[...] = (jnp.dot(x_ref[...], w_ref[...], preferred_element_type=F32)
                  + b_ref[...]).astype(o_ref.dtype)


# ----------------------------- pallas_call glue ------------------------------

def run_decoder_stack(x2, mem2, mbias, y_lens, params):
    N, D = x2.shape
    B, _, S = mbias.shape
    T = N // B
    H = params['nhead']
    L = params['num_layers']

    act_map = lambda b, l, *_: (b, 0)          # per-batch activation blocks

    def wmap(nd):                              # per-layer streamed weights
        return lambda b, l, *_: (l,) + (0,) * (nd - 1)

    def cmap(nd):                              # shared (final-norm) weights
        return lambda b, l, *_: (0,) * nd

    weights = [params[k] for k in LAYER_WEIGHTS + FINAL_WEIGHTS]
    w_specs = ([pl.BlockSpec((1,) + params[k].shape[1:], wmap(params[k].ndim))
                for k in LAYER_WEIGHTS]
               + [pl.BlockSpec(params[k].shape, cmap(params[k].ndim))
                  for k in FINAL_WEIGHTS])

    in_specs = ([pl.BlockSpec((T, D), act_map),                 # x  [B*T, D]
                 pl.BlockSpec((S, D), act_map),                 # mem [B*S, D]
                 pl.BlockSpec((1, 1, S), lambda b, l, *_: (b, 0, 0))]
                + w_specs)

    return pl.pallas_call(
        functools.partial(decoder_layer_kernel, H),
        out_shape=jax.ShapeDtypeStruct((N, D), BF16),
        grid_spec=pltpu.PrefetchScalarGridSpec(
            num_scalar_prefetch=1,
            grid=(B, L),                        # batch parallel, layers stream
            in_specs=in_specs,
            out_specs=pl.BlockSpec((T, D), act_map),
            scratch_shapes=[pltpu.VMEM((T, D), F32),     # residual stream
                            pltpu.VMEM((T, D), F32)]),   # per-head ctx slab
        compiler_params=pltpu.CompilerParams(
            dimension_semantics=("parallel", "arbitrary"),
            vmem_limit_bytes=48 * 1024 * 1024),
    )(y_lens.astype(jnp.int32), x2, mem2, mbias, *weights)


def run_output_proj(x2, w, b, tile_n=256, tile_v=1024):
    N, D = x2.shape
    V = w.shape[1]
    tn = tile_n if (N > tile_n and N % tile_n == 0) else N
    tv = tile_v if (V > tile_v and V % tile_v == 0) else V
    return pl.pallas_call(
        output_proj_kernel,
        out_shape=jax.ShapeDtypeStruct((N, V), F32),
        grid=(N // tn, V // tv),
        in_specs=[pl.BlockSpec((tn, D), lambda i, j: (i, 0)),
                  pl.BlockSpec((D, tv), lambda i, j: (0, j)),
                  pl.BlockSpec((1, tv), lambda i, j: (0, j))],
        out_specs=pl.BlockSpec((tn, tv), lambda i, j: (i, j)),
        compiler_params=pltpu.CompilerParams(
            dimension_semantics=("parallel", "parallel"),
            vmem_limit_bytes=48 * 1024 * 1024),
    )(x2, w, b)


# --------------------------- parameter construction --------------------------

def _pack_mha(in_proj_w, in_proj_b, out_w, out_b, D, H):
    """torch nn.MultiheadAttention params -> fused layout, 1/sqrt(dh) folded."""
    dh = D // H
    scale = 1.0 / math.sqrt(dh)
    Wq, Wk, Wv = in_proj_w[:D], in_proj_w[D:2 * D], in_proj_w[2 * D:]
    bq, bk, bv = in_proj_b[:D], in_proj_b[D:2 * D], in_proj_b[2 * D:]
    # torch Linear: y = x @ W.T + b  ->  JAX weight = W.T : [D, D]
    wqkv = jnp.stack([Wq.T * scale, Wk.T, Wv.T], axis=0)          # [3, D, D]
    bqkv = jnp.stack([bq * scale, bk, bv], axis=0).reshape(3, 1, D)
    wo = out_w.T                                                  # [D, D]
    return wqkv, bqkv, wo, out_b.reshape(1, D)


def make_params(key, vocab, D, H, F, num_layers):
    def nrm(k, shape, scale=0.05):
        return scale * jax.random.normal(k, shape, F32)

    keys = jax.random.split(key, 3 + num_layers)
    p = {
        'nhead': H, 'num_layers': num_layers,
        'embed': nrm(keys[0], (vocab, D), 0.1),
        'out_w': nrm(keys[1], (vocab, D)).T,          # torch [V,D] -> [D,V]
        'out_b': nrm(keys[2], (vocab,)).reshape(1, vocab),
        'fln_w': jnp.ones((1, D), F32),
        'fln_b': jnp.zeros((1, D), F32),
    }
    per = {k: [] for k in LAYER_WEIGHTS}
    for li in range(num_layers):
        lk = jax.random.split(keys[3 + li], 18)
        sa = _pack_mha(nrm(lk[0], (3 * D, D)), nrm(lk[1], (3 * D,)),
                       nrm(lk[2], (D, D)), nrm(lk[3], (D,)), D, H)
        ca = _pack_mha(nrm(lk[4], (3 * D, D)), nrm(lk[5], (3 * D,)),
                       nrm(lk[6], (D, D)), nrm(lk[7], (D,)), D, H)
        per['ln_w'].append(jnp.stack(
            [jnp.ones((1, D), F32) + nrm(lk[8 + i], (1, D), 0.02)
             for i in range(3)], 0))
        per['ln_b'].append(jnp.stack(
            [nrm(lk[11 + i], (1, D), 0.02) for i in range(3)], 0))
        for name, val in zip(['sa_wqkv', 'sa_bqkv', 'sa_wo', 'sa_bo'], sa):
            per[name].append(val)
        for name, val in zip(['ca_wqkv', 'ca_bqkv', 'ca_wo', 'ca_bo'], ca):
            per[name].append(val)
        per['w1'].append(nrm(lk[14], (F, D)).T)       # torch [F,D] -> [D,F]
        per['b1'].append(nrm(lk[15], (F,)).reshape(1, F))
        per['w2'].append(nrm(lk[16], (D, F)).T)       # torch [D,F] -> [F,D]
        per['b2'].append(nrm(lk[17], (D,)).reshape(1, D))
    for k, v in per.items():
        p[k] = jnp.stack(v, axis=0)                   # leading layer axis
    # matmul weights in bf16 (f32 accumulation everywhere in the kernels)
    for k in ['sa_wqkv', 'sa_wo', 'ca_wqkv', 'ca_wo', 'w1', 'w2', 'out_w']:
        p[k] = p[k].astype(BF16)
    return p


def sinusoidal_pe(max_len, D):
    pos = np.arange(max_len, dtype=np.float32)[:, None]
    div = np.exp(np.arange(0, D, 2, dtype=np.float32) * (-math.log(10000.0) / D))
    pe = np.zeros((max_len, D), dtype=np.float32)
    pe[:, 0::2] = np.sin(pos * div)
    pe[:, 1::2] = np.cos(pos * div)
    return jnp.asarray(pe)


# ------------------------------- full forward --------------------------------

def transformer_forward(params, pe, encoder_out, encoder_out_mask,
                        y_pad, y_lens):
    B, S, D = encoder_out.shape
    T = y_pad.shape[1]
    x = jnp.take(params['embed'], y_pad, axis=0) * math.sqrt(D) + pe[:T][None]
    x2 = x.reshape(B * T, D).astype(F32)
    mem2 = encoder_out.reshape(B * S, D).astype(BF16)
    mbias = jnp.where(encoder_out_mask, NEG, 0.0).astype(F32)[:, None, :]  # [B,1,S]
    dec = run_decoder_stack(x2, mem2, mbias, y_lens, params)   # [B*T, D] bf16
    logits2 = run_output_proj(dec, params['out_w'], params['out_b'])
    return logits2.reshape(B, T, -1)


# -------------------------- pure-JAX reference check -------------------------

def _mha_ref(xq, kv, wqkv, bqkv, wo, bo, bias, H):
    B, Tq, D = xq.shape
    Tk = kv.shape[1]
    dh = D // H
    hi = jax.lax.Precision.HIGHEST
    xq_b, kv_b = xq.astype(BF16), kv.astype(BF16)
    q = jnp.einsum('btd,de->bte', xq_b, wqkv[0], preferred_element_type=F32) + bqkv[0]
    k = jnp.einsum('btd,de->bte', kv_b, wqkv[1], preferred_element_type=F32) + bqkv[1]
    v = jnp.einsum('btd,de->bte', kv_b, wqkv[2], preferred_element_type=F32) + bqkv[2]
    q = q.reshape(B, Tq, H, dh)
    k = k.reshape(B, Tk, H, dh)
    v = v.reshape(B, Tk, H, dh)
    s = jnp.einsum('bqhd,bkhd->bhqk', q, k, precision=hi,
                   preferred_element_type=F32) + bias
    p = jax.nn.softmax(s, axis=-1)
    ctx = jnp.einsum('bhqk,bkhd->bqhd', p, v, precision=hi,
                     preferred_element_type=F32).reshape(B, Tq, D)
    return jnp.einsum('btd,de->bte', ctx.astype(BF16), wo,
                      preferred_element_type=F32) + bo


def ref_forward(params, pe, encoder_out, encoder_out_mask, y_pad, y_lens):
    B, S, D = encoder_out.shape
    T = y_pad.shape[1]
    H, L = params['nhead'], params['num_layers']
    x = jnp.take(params['embed'], y_pad, axis=0) * math.sqrt(D) + pe[:T][None]
    idx = jnp.arange(T)
    valid = idx[None, :] < y_lens[:, None]
    causal = idx[None, :] <= idx[:, None]
    sbias = jnp.where(valid[:, None, :] & causal[None], 0.0, NEG)[:, None]
    mbias = jnp.where(encoder_out_mask, NEG, 0.0)[:, None, None, :]
    for l in range(L):
        lnw, lnb = params['ln_w'][l], params['ln_b'][l]
        xn = _layernorm(x, lnw[0], lnb[0])
        x = x + _mha_ref(xn, xn, params['sa_wqkv'][l], params['sa_bqkv'][l],
                         params['sa_wo'][l], params['sa_bo'][l], sbias, H)
        xn = _layernorm(x, lnw[1], lnb[1])
        x = x + _mha_ref(xn, encoder_out, params['ca_wqkv'][l],
                         params['ca_bqkv'][l], params['ca_wo'][l],
                         params['ca_bo'][l], mbias, H)
        xn = _layernorm(x, lnw[2], lnb[2])
        h1 = jnp.maximum(jnp.einsum('btd,df->btf', xn.astype(BF16),
                                    params['w1'][l],
                                    preferred_element_type=F32)
                         + params['b1'][l], 0.0)
        x = x + jnp.einsum('btf,fd->btd', h1.astype(BF16), params['w2'][l],
                           preferred_element_type=F32) + params['b2'][l]
    x = _layernorm(x, params['fln_w'], params['fln_b'])
    return jnp.einsum('btd,dv->btv', x.astype(BF16), params['out_w'],
                      preferred_element_type=F32) + params['out_b']


# ------------------------------------ main ------------------------------------

if __name__ == "__main__":
    B, T, S = 2, 16, 16             # batch, target len, encoder len
    D, H, F = 32, 4, 64             # attention_dim, heads, feedforward_size
    VOCAB, NUM_LAYERS = 64, 2

    root = jax.random.PRNGKey(0)
    kp, ke, ky = jax.random.split(root, 3)

    params = make_params(kp, VOCAB, D, H, F, NUM_LAYERS)
    pe = sinusoidal_pe(64, D)

    encoder_out = jax.random.normal(ke, (B, S, D), F32)
    enc_lens = jnp.array([S, 10], jnp.int32)
    encoder_out_mask = jnp.arange(S)[None, :] >= enc_lens[:, None]  # True = pad
    y_pad = jax.random.randint(ky, (B, T), 0, VOCAB, jnp.int32)
    y_lens = jnp.array([T, 9], jnp.int32)

    logits = transformer_forward(params, pe, encoder_out, encoder_out_mask,
                                 y_pad, y_lens)
    logits = jax.block_until_ready(logits)

    ref = ref_forward(params, pe, encoder_out, encoder_out_mask, y_pad, y_lens)
    np.testing.assert_allclose(np.asarray(logits), np.asarray(ref),
                               rtol=2e-2, atol=2e-2)

    assert logits.shape == (B, T, VOCAB)
    print("KERNEL_OK")
</pallas_src>

<mosaic_0001>
module attributes {stable_mosaic.version = 11 : i64} {
  func.func @decoder_layer_kernel(%arg0: i32, %arg1: i32, %arg2: memref<2xi32, #tpu.memory_space<smem>>, %arg3: memref<16x32xf32, #tpu.memory_space<vmem>>, %arg4: memref<16x32xbf16, #tpu.memory_space<vmem>>, %arg5: memref<1x1x16xf32, #tpu.memory_space<vmem>>, %arg6: memref<1x3x1x32xf32, #tpu.memory_space<vmem>>, %arg7: memref<1x3x1x32xf32, #tpu.memory_space<vmem>>, %arg8: memref<1x3x32x32xbf16, #tpu.memory_space<vmem>>, %arg9: memref<1x3x1x32xf32, #tpu.memory_space<vmem>>, %arg10: memref<1x32x32xbf16, #tpu.memory_space<vmem>>, %arg11: memref<1x1x32xf32, #tpu.memory_space<vmem>>, %arg12: memref<1x3x32x32xbf16, #tpu.memory_space<vmem>>, %arg13: memref<1x3x1x32xf32, #tpu.memory_space<vmem>>, %arg14: memref<1x32x32xbf16, #tpu.memory_space<vmem>>, %arg15: memref<1x1x32xf32, #tpu.memory_space<vmem>>, %arg16: memref<1x32x64xbf16, #tpu.memory_space<vmem>>, %arg17: memref<1x1x64xf32, #tpu.memory_space<vmem>>, %arg18: memref<1x64x32xbf16, #tpu.memory_space<vmem>>, %arg19: memref<1x1x32xf32, #tpu.memory_space<vmem>>, %arg20: memref<1x32xf32, #tpu.memory_space<vmem>>, %arg21: memref<1x32xf32, #tpu.memory_space<vmem>>, %arg22: memref<16x32xbf16, #tpu.memory_space<vmem>>, %arg23: memref<16x32xf32, #tpu.memory_space<vmem>>, %arg24: memref<16x32xf32, #tpu.memory_space<vmem>>) attributes {dimension_semantics = [#tpu.dimension_semantics<parallel>, #tpu.dimension_semantics<arbitrary>], iteration_bounds = array<i64: 2, 2>, scalar_prefetch = 1 : i64, scratch_operands = 2 : i64, tpu.core_type = #tpu.core_type<tc>, window_params = [{transform_indices = @transform_0, window_bounds = array<i64: 16, 32>}, {transform_indices = @transform_1, window_bounds = array<i64: 16, 32>}, {transform_indices = @transform_2, window_bounds = array<i64: 1, 1, 16>}, {transform_indices = @transform_3, window_bounds = array<i64: 1, 3, 1, 32>}, {transform_indices = @transform_4, window_bounds = array<i64: 1, 3, 1, 32>}, {transform_indices = @transform_5, window_bounds = array<i64: 1, 3, 32, 32>}, {transform_indices = @transform_6, window_bounds = array<i64: 1, 3, 1, 32>}, {transform_indices = @transform_7, window_bounds = array<i64: 1, 32, 32>}, {transform_indices = @transform_8, window_bounds = array<i64: 1, 1, 32>}, {transform_indices = @transform_9, window_bounds = array<i64: 1, 3, 32, 32>}, {transform_indices = @transform_10, window_bounds = array<i64: 1, 3, 1, 32>}, {transform_indices = @transform_11, window_bounds = array<i64: 1, 32, 32>}, {transform_indices = @transform_12, window_bounds = array<i64: 1, 1, 32>}, {transform_indices = @transform_13, window_bounds = array<i64: 1, 32, 64>}, {transform_indices = @transform_14, window_bounds = array<i64: 1, 1, 64>}, {transform_indices = @transform_15, window_bounds = array<i64: 1, 64, 32>}, {transform_indices = @transform_16, window_bounds = array<i64: 1, 1, 32>}, {pipeline_mode = #tpu.pipeline_mode<synchronous>, transform_indices = @transform_17, window_bounds = array<i64: 1, 32>}, {pipeline_mode = #tpu.pipeline_mode<synchronous>, transform_indices = @transform_18, window_bounds = array<i64: 1, 32>}, {transform_indices = @transform_19, window_bounds = array<i64: 16, 32>}]} {
    %c0_i32 = arith.constant 0 : i32
    %0 = arith.cmpi eq, %arg1, %c0_i32 : i32
    %1 = arith.extui %0 : i1 to i32
    %c0_i32_0 = arith.constant 0 : i32
    %2 = arith.cmpi ne, %1, %c0_i32_0 : i32
    scf.if %2 {
      %c0_180 = arith.constant 0 : index
      %c0_181 = arith.constant 0 : index
      %323 = vector.load %arg3[%c0_180, %c0_181] : memref<16x32xf32, #tpu.memory_space<vmem>>, vector<16x32xf32>
      %c0_182 = arith.constant 0 : index
      %c0_183 = arith.constant 0 : index
      %324 = vector.load %arg23[%c0_182, %c0_183] : memref<16x32xf32, #tpu.memory_space<vmem>>, vector<16x32xf32>
      tpu.vector_store %arg23[%c0_182, %c0_183], %323 {strides = array<i32>} : memref<16x32xf32, #tpu.memory_space<vmem>>, vector<16x32xf32>,
    } else {
    }
    %c0 = arith.constant 0 : index
    %c0_1 = arith.constant 0 : index
    %3 = vector.load %arg23[%c0, %c0_1] : memref<16x32xf32, #tpu.memory_space<vmem>>, vector<16x32xf32>
    %c0_2 = arith.constant 0 : index
    %c0_3 = arith.constant 0 : index
    %4 = vector.load %arg4[%c0_2, %c0_3] : memref<16x32xbf16, #tpu.memory_space<vmem>>, vector<16x32xbf16>
    %5 = tpu.iota {dimensions = array<i32: 0>} : vector<16x16xi32>
    %6 = tpu.iota {dimensions = array<i32: 1>} : vector<16x16xi32>
    %7 = arith.cmpi sle, %6, %5 : vector<16x16xi32>
    %8 = arith.index_cast %arg0 : i32 to index
    %9 = memref.load %arg2[%8] : memref<2xi32, #tpu.memory_space<smem>>
    %10 = vector.broadcast %9 : i32 to vector<16x16xi32>
    %11 = arith.cmpi slt, %6, %10 : vector<16x16xi32>
    %12 = arith.andi %7, %11 : vector<16x16xi1>
    %cst = arith.constant 0.000000e+00 : f32
    %cst_4 = arith.constant -1.000000e+30 : f32
    %13 = vector.broadcast %cst : f32 to vector<16x16xf32>
    %14 = vector.broadcast %cst_4 : f32 to vector<16x16xf32>
    %15 = arith.select %12, %13, %14 : vector<16x16xi1>, vector<16x16xf32>
    %c0_5 = arith.constant 0 : index
    %c0_6 = arith.constant 0 : index
    %c0_7 = arith.constant 0 : index
    %16 = vector.load %arg5[%c0_5, %c0_6, %c0_7] : memref<1x1x16xf32, #tpu.memory_space<vmem>>, vector<1x1x16xf32>
    %17 = vector.shape_cast %16 : vector<1x1x16xf32> to vector<1x16xf32>
    %c0_8 = arith.constant 0 : index
    %c0_9 = arith.constant 0 : index
    %c0_10 = arith.constant 0 : index
    %c0_11 = arith.constant 0 : index
    %18 = vector.load %arg6[%c0_8, %c0_9, %c0_10, %c0_11] : memref<1x3x1x32xf32, #tpu.memory_space<vmem>>, vector<1x1x1x32xf32>
    %19 = vector.shape_cast %18 : vector<1x1x1x32xf32> to vector<1x32xf32>
    %c0_12 = arith.constant 0 : index
    %c0_13 = arith.constant 0 : index
    %c0_14 = arith.constant 0 : index
    %c0_15 = arith.constant 0 : index
    %20 = vector.load %arg7[%c0_12, %c0_13, %c0_14, %c0_15] : memref<1x3x1x32xf32, #tpu.memory_space<vmem>>, vector<1x1x1x32xf32>
    %21 = vector.shape_cast %20 : vector<1x1x1x32xf32> to vector<1x32xf32>
    %cst_16 = arith.constant dense<0.000000e+00> : vector<16xf32>
    %22 = vector.multi_reduction <add>, %3, %cst_16 [1] : vector<16x32xf32> to vector<16xf32>
    %23 = vector.shape_cast %22 : vector<16xf32> to vector<16x1xf32>
    %cst_17 = arith.constant 3.200000e+01 : f32
    %24 = vector.broadcast %cst_17 : f32 to vector<16x1xf32>
    %25 = arith.divf %23, %24 : vector<16x1xf32>
    %26 = vector.broadcast %25 : vector<16x1xf32> to vector<16x32xf32>
    %27 = arith.subf %3, %26 : vector<16x32xf32>
    %28 = arith.mulf %27, %27 : vector<16x32xf32>
    %cst_18 = arith.constant dense<0.000000e+00> : vector<16xf32>
    %29 = vector.multi_reduction <add>, %28, %cst_18 [1] : vector<16x32xf32> to vector<16xf32>
    %30 = vector.shape_cast %29 : vector<16xf32> to vector<16x1xf32>
    %cst_19 = arith.constant 3.200000e+01 : f32
    %31 = vector.broadcast %cst_19 : f32 to vector<16x1xf32>
    %32 = arith.divf %30, %31 : vector<16x1xf32>
    %33 = vector.broadcast %25 : vector<16x1xf32> to vector<16x32xf32>
    %34 = arith.subf %3, %33 : vector<16x32xf32>
    %cst_20 = arith.constant 9.99999974E-6 : f32
    %35 = vector.broadcast %cst_20 : f32 to vector<16x1xf32>
    %36 = arith.addf %32, %35 : vector<16x1xf32>
    %37 = math.rsqrt %36 : vector<16x1xf32>
    %38 = vector.broadcast %37 : vector<16x1xf32> to vector<16x32xf32>
    %39 = arith.mulf %34, %38 : vector<16x32xf32>
    %40 = vector.broadcast %19 : vector<1x32xf32> to vector<16x32xf32>
    %41 = arith.mulf %39, %40 : vector<16x32xf32>
    %42 = vector.broadcast %21 : vector<1x32xf32> to vector<16x32xf32>
    %43 = arith.addf %41, %42 : vector<16x32xf32>
    %44 = arith.truncf %43 : vector<16x32xf32> to vector<16x32xbf16>
    %c0_21 = arith.constant 0 : index
    %c0_22 = arith.constant 0 : index
    %c0_23 = arith.constant 0 : index
    %c0_24 = arith.constant 0 : index
    %45 = vector.load %arg8[%c0_21, %c0_22, %c0_23, %c0_24] : memref<1x3x32x32xbf16, #tpu.memory_space<vmem>>, vector<1x1x32x32xbf16>
    %46 = vector.shape_cast %45 : vector<1x1x32x32xbf16> to vector<32x32xbf16>
    %cst_25 = arith.constant dense<0.000000e+00> : vector<16x32xf32>
    %47 = tpu.matmul %44, %46, %cst_25 {dimension_numbers = #tpu.dot_dimension_numbers<[1], [0], [0], [1], [0, 0, 1, 1], [], []>} : vector<16x32xbf16>, vector<32x32xbf16>, vector<16x32xf32> -> vector<16x32xf32>
    %c0_26 = arith.constant 0 : index
    %c0_27 = arith.constant 0 : index
    %c0_28 = arith.constant 0 : index
    %c0_29 = arith.constant 0 : index
    %48 = vector.load %arg9[%c0_26, %c0_27, %c0_28, %c0_29] : memref<1x3x1x32xf32, #tpu.memory_space<vmem>>, vector<1x1x1x32xf32>
    %49 = vector.shape_cast %48 : vector<1x1x1x32xf32> to vector<1x32xf32>
    %50 = vector.broadcast %49 : vector<1x32xf32> to vector<16x32xf32>
    %51 = arith.addf %47, %50 : vector<16x32xf32>
    %c0_30 = arith.constant 0 : index
    %c1 = arith.constant 1 : index
    %c0_31 = arith.constant 0 : index
    %c0_32 = arith.constant 0 : index
    %52 = vector.load %arg8[%c0_30, %c1, %c0_31, %c0_32] : memref<1x3x32x32xbf16, #tpu.memory_space<vmem>>, vector<1x1x32x32xbf16>
    %53 = vector.shape_cast %52 : vector<1x1x32x32xbf16> to vector<32x32xbf16>
    %cst_33 = arith.constant dense<0.000000e+00> : vector<16x32xf32>
    %54 = tpu.matmul %44, %53, %cst_33 {dimension_numbers = #tpu.dot_dimension_numbers<[1], [0], [0], [1], [0, 0, 1, 1], [], []>} : vector<16x32xbf16>, vector<32x32xbf16>, vector<16x32xf32> -> vector<16x32xf32>
    %c0_34 = arith.constant 0 : index
    %c1_35 = arith.constant 1 : index
    %c0_36 = arith.constant 0 : index
    %c0_37 = arith.constant 0 : index
    %55 = vector.load %arg9[%c0_34, %c1_35, %c0_36, %c0_37] : memref<1x3x1x32xf32, #tpu.memory_space<vmem>>, vector<1x1x1x32xf32>
    %56 = vector.shape_cast %55 : vector<1x1x1x32xf32> to vector<1x32xf32>
    %57 = vector.broadcast %56 : vector<1x32xf32> to vector<16x32xf32>
    %58 = arith.addf %54, %57 : vector<16x32xf32>
    %c0_38 = arith.constant 0 : index
    %c2 = arith.constant 2 : index
    %c0_39 = arith.constant 0 : index
    %c0_40 = arith.constant 0 : index
    %59 = vector.load %arg8[%c0_38, %c2, %c0_39, %c0_40] : memref<1x3x32x32xbf16, #tpu.memory_space<vmem>>, vector<1x1x32x32xbf16>
    %60 = vector.shape_cast %59 : vector<1x1x32x32xbf16> to vector<32x32xbf16>
    %cst_41 = arith.constant dense<0.000000e+00> : vector<16x32xf32>
    %61 = tpu.matmul %44, %60, %cst_41 {dimension_numbers = #tpu.dot_dimension_numbers<[1], [0], [0], [1], [0, 0, 1, 1], [], []>} : vector<16x32xbf16>, vector<32x32xbf16>, vector<16x32xf32> -> vector<16x32xf32>
    %c0_42 = arith.constant 0 : index
    %c2_43 = arith.constant 2 : index
    %c0_44 = arith.constant 0 : index
    %c0_45 = arith.constant 0 : index
    %62 = vector.load %arg9[%c0_42, %c2_43, %c0_44, %c0_45] : memref<1x3x1x32xf32, #tpu.memory_space<vmem>>, vector<1x1x1x32xf32>
    %63 = vector.shape_cast %62 : vector<1x1x1x32xf32> to vector<1x32xf32>
    %64 = vector.broadcast %63 : vector<1x32xf32> to vector<16x32xf32>
    %65 = arith.addf %61, %64 : vector<16x32xf32>
    %66 = vector.extract_strided_slice %51 {offsets = [0, 0], sizes = [16, 8], strides = [1, 1]} : vector<16x32xf32> to vector<16x8xf32>
    %67 = vector.extract_strided_slice %58 {offsets = [0, 0], sizes = [16, 8], strides = [1, 1]} : vector<16x32xf32> to vector<16x8xf32>
    %cst_46 = arith.constant dense<0.000000e+00> : vector<16x16xf32>
    %68 = tpu.matmul %66, %67, %cst_46 {dimension_numbers = #tpu.dot_dimension_numbers<[1], [1], [0], [0], [0, 0, 1, 0], [], []>} : vector<16x8xf32>, vector<16x8xf32>, vector<16x16xf32> -> vector<16x16xf32>
    %69 = arith.addf %68, %15 : vector<16x16xf32>
    %cst_47 = arith.constant dense<0xFF800000> : vector<16xf32>
    %70 = vector.multi_reduction <maximumf>, %69, %cst_47 [1] : vector<16x16xf32> to vector<16xf32>
    %71 = vector.shape_cast %70 : vector<16xf32> to vector<16x1xf32>
    %72 = vector.broadcast %71 : vector<16x1xf32> to vector<16x16xf32>
    %73 = arith.subf %69, %72 : vector<16x16xf32>
    %74 = math.exp %73 : vector<16x16xf32>
    %cst_48 = arith.constant dense<0.000000e+00> : vector<16xf32>
    %75 = vector.multi_reduction <add>, %74, %cst_48 [1] : vector<16x16xf32> to vector<16xf32>
    %76 = vector.shape_cast %75 : vector<16xf32> to vector<16x1xf32>
    %77 = tpu.reciprocal %76 {approx = true} : vector<16x1xf32> -> vector<16x1xf32>
    %78 = vector.broadcast %77 : vector<16x1xf32> to vector<16x16xf32>
    %79 = arith.mulf %74, %78 : vector<16x16xf32>
    %80 = vector.extract_strided_slice %65 {offsets = [0, 0], sizes = [16, 8], strides = [1, 1]} : vector<16x32xf32> to vector<16x8xf32>
    %cst_49 = arith.constant dense<0.000000e+00> : vector<16x8xf32>
    %81 = tpu.matmul %79, %80, %cst_49 {dimension_numbers = #tpu.dot_dimension_numbers<[1], [0], [0], [1], [0, 0, 1, 1], [], []>} : vector<16x16xf32>, vector<16x8xf32>, vector<16x8xf32> -> vector<16x8xf32>
    %c0_50 = arith.constant 0 : index
    %c0_51 = arith.constant 0 : index
    %82 = vector.load %arg24[%c0_50, %c0_51] : memref<16x32xf32, #tpu.memory_space<vmem>>, vector<16x8xf32>
    tpu.vector_store %arg24[%c0_50, %c0_51], %81 {strides = array<i32>} : memref<16x32xf32, #tpu.memory_space<vmem>>, vector<16x8xf32>,
    %83 = vector.extract_strided_slice %51 {offsets = [0, 8], sizes = [16, 8], strides = [1, 1]} : vector<16x32xf32> to vector<16x8xf32>
    %84 = vector.extract_strided_slice %58 {offsets = [0, 8], sizes = [16, 8], strides = [1, 1]} : vector<16x32xf32> to vector<16x8xf32>
    %cst_52 = arith.constant dense<0.000000e+00> : vector<16x16xf32>
    %85 = tpu.matmul %83, %84, %cst_52 {dimension_numbers = #tpu.dot_dimension_numbers<[1], [1], [0], [0], [0, 0, 1, 0], [], []>} : vector<16x8xf32>, vector<16x8xf32>, vector<16x16xf32> -> vector<16x16xf32>
    %86 = arith.addf %85, %15 : vector<16x16xf32>
    %cst_53 = arith.constant dense<0xFF800000> : vector<16xf32>
    %87 = vector.multi_reduction <maximumf>, %86, %cst_53 [1] : vector<16x16xf32> to vector<16xf32>
    %88 = vector.shape_cast %87 : vector<16xf32> to vector<16x1xf32>
    %89 = vector.broadcast %88 : vector<16x1xf32> to vector<16x16xf32>
    %90 = arith.subf %86, %89 : vector<16x16xf32>
    %91 = math.exp %90 : vector<16x16xf32>
    %cst_54 = arith.constant dense<0.000000e+00> : vector<16xf32>
    %92 = vector.multi_reduction <add>, %91, %cst_54 [1] : vector<16x16xf32> to vector<16xf32>
    %93 = vector.shape_cast %92 : vector<16xf32> to vector<16x1xf32>
    %94 = tpu.reciprocal %93 {approx = true} : vector<16x1xf32> -> vector<16x1xf32>
    %95 = vector.broadcast %94 : vector<16x1xf32> to vector<16x16xf32>
    %96 = arith.mulf %91, %95 : vector<16x16xf32>
    %97 = vector.extract_strided_slice %65 {offsets = [0, 8], sizes = [16, 8], strides = [1, 1]} : vector<16x32xf32> to vector<16x8xf32>
    %cst_55 = arith.constant dense<0.000000e+00> : vector<16x8xf32>
    %98 = tpu.matmul %96, %97, %cst_55 {dimension_numbers = #tpu.dot_dimension_numbers<[1], [0], [0], [1], [0, 0, 1, 1], [], []>} : vector<16x16xf32>, vector<16x8xf32>, vector<16x8xf32> -> vector<16x8xf32>
    %c0_56 = arith.constant 0 : index
    %c8 = arith.constant 8 : index
    %99 = vector.load %arg24[%c0_56, %c8] : memref<16x32xf32, #tpu.memory_space<vmem>>, vector<16x8xf32>
    tpu.vector_store %arg24[%c0_56, %c8], %98 {strides = array<i32>} : memref<16x32xf32, #tpu.memory_space<vmem>>, vector<16x8xf32>,
    %100 = vector.extract_strided_slice %51 {offsets = [0, 16], sizes = [16, 8], strides = [1, 1]} : vector<16x32xf32> to vector<16x8xf32>
    %101 = vector.extract_strided_slice %58 {offsets = [0, 16], sizes = [16, 8], strides = [1, 1]} : vector<16x32xf32> to vector<16x8xf32>
    %cst_57 = arith.constant dense<0.000000e+00> : vector<16x16xf32>
    %102 = tpu.matmul %100, %101, %cst_57 {dimension_numbers = #tpu.dot_dimension_numbers<[1], [1], [0], [0], [0, 0, 1, 0], [], []>} : vector<16x8xf32>, vector<16x8xf32>, vector<16x16xf32> -> vector<16x16xf32>
    %103 = arith.addf %102, %15 : vector<16x16xf32>
    %cst_58 = arith.constant dense<0xFF800000> : vector<16xf32>
    %104 = vector.multi_reduction <maximumf>, %103, %cst_58 [1] : vector<16x16xf32> to vector<16xf32>
    %105 = vector.shape_cast %104 : vector<16xf32> to vector<16x1xf32>
    %106 = vector.broadcast %105 : vector<16x1xf32> to vector<16x16xf32>
    %107 = arith.subf %103, %106 : vector<16x16xf32>
    %108 = math.exp %107 : vector<16x16xf32>
    %cst_59 = arith.constant dense<0.000000e+00> : vector<16xf32>
    %109 = vector.multi_reduction <add>, %108, %cst_59 [1] : vector<16x16xf32> to vector<16xf32>
    %110 = vector.shape_cast %109 : vector<16xf32> to vector<16x1xf32>
    %111 = tpu.reciprocal %110 {approx = true} : vector<16x1xf32> -> vector<16x1xf32>
    %112 = vector.broadcast %111 : vector<16x1xf32> to vector<16x16xf32>
    %113 = arith.mulf %108, %112 : vector<16x16xf32>
    %114 = vector.extract_strided_slice %65 {offsets = [0, 16], sizes = [16, 8], strides = [1, 1]} : vector<16x32xf32> to vector<16x8xf32>
    %cst_60 = arith.constant dense<0.000000e+00> : vector<16x8xf32>
    %115 = tpu.matmul %113, %114, %cst_60 {dimension_numbers = #tpu.dot_dimension_numbers<[1], [0], [0], [1], [0, 0, 1, 1], [], []>} : vector<16x16xf32>, vector<16x8xf32>, vector<16x8xf32> -> vector<16x8xf32>
    %c0_61 = arith.constant 0 : index
    %c16 = arith.constant 16 : index
    %116 = vector.load %arg24[%c0_61, %c16] : memref<16x32xf32, #tpu.memory_space<vmem>>, vector<16x8xf32>
    tpu.vector_store %arg24[%c0_61, %c16], %115 {strides = array<i32>} : memref<16x32xf32, #tpu.memory_space<vmem>>, vector<16x8xf32>,
    %117 = vector.extract_strided_slice %51 {offsets = [0, 24], sizes = [16, 8], strides = [1, 1]} : vector<16x32xf32> to vector<16x8xf32>
    %118 = vector.extract_strided_slice %58 {offsets = [0, 24], sizes = [16, 8], strides = [1, 1]} : vector<16x32xf32> to vector<16x8xf32>
    %cst_62 = arith.constant dense<0.000000e+00> : vector<16x16xf32>
    %119 = tpu.matmul %117, %118, %cst_62 {dimension_numbers = #tpu.dot_dimension_numbers<[1], [1], [0], [0], [0, 0, 1, 0], [], []>} : vector<16x8xf32>, vector<16x8xf32>, vector<16x16xf32> -> vector<16x16xf32>
    %120 = arith.addf %119, %15 : vector<16x16xf32>
    %cst_63 = arith.constant dense<0xFF800000> : vector<16xf32>
    %121 = vector.multi_reduction <maximumf>, %120, %cst_63 [1] : vector<16x16xf32> to vector<16xf32>
    %122 = vector.shape_cast %121 : vector<16xf32> to vector<16x1xf32>
    %123 = vector.broadcast %122 : vector<16x1xf32> to vector<16x16xf32>
    %124 = arith.subf %120, %123 : vector<16x16xf32>
    %125 = math.exp %124 : vector<16x16xf32>
    %cst_64 = arith.constant dense<0.000000e+00> : vector<16xf32>
    %126 = vector.multi_reduction <add>, %125, %cst_64 [1] : vector<16x16xf32> to vector<16xf32>
    %127 = vector.shape_cast %126 : vector<16xf32> to vector<16x1xf32>
    %128 = tpu.reciprocal %127 {approx = true} : vector<16x1xf32> -> vector<16x1xf32>
    %129 = vector.broadcast %128 : vector<16x1xf32> to vector<16x16xf32>
    %130 = arith.mulf %125, %129 : vector<16x16xf32>
    %131 = vector.extract_strided_slice %65 {offsets = [0, 24], sizes = [16, 8], strides = [1, 1]} : vector<16x32xf32> to vector<16x8xf32>
    %cst_65 = arith.constant dense<0.000000e+00> : vector<16x8xf32>
    %132 = tpu.matmul %130, %131, %cst_65 {dimension_numbers = #tpu.dot_dimension_numbers<[1], [0], [0], [1], [0, 0, 1, 1], [], []>} : vector<16x16xf32>, vector<16x8xf32>, vector<16x8xf32> -> vector<16x8xf32>
    %c0_66 = arith.constant 0 : index
    %c24 = arith.constant 24 : index
    %133 = vector.load %arg24[%c0_66, %c24] : memref<16x32xf32, #tpu.memory_space<vmem>>, vector<16x8xf32>
    tpu.vector_store %arg24[%c0_66, %c24], %132 {strides = array<i32>} : memref<16x32xf32, #tpu.memory_space<vmem>>, vector<16x8xf32>,
    %c0_67 = arith.constant 0 : index
    %c0_68 = arith.constant 0 : index
    %134 = vector.load %arg24[%c0_67, %c0_68] : memref<16x32xf32, #tpu.memory_space<vmem>>, vector<16x32xf32>
    %135 = arith.truncf %134 : vector<16x32xf32> to vector<16x32xbf16>
    %c0_69 = arith.constant 0 : index
    %c0_70 = arith.constant 0 : index
    %c0_71 = arith.constant 0 : index
    %136 = vector.load %arg10[%c0_69, %c0_70, %c0_71] : memref<1x32x32xbf16, #tpu.memory_space<vmem>>, vector<1x32x32xbf16>
    %137 = vector.shape_cast %136 : vector<1x32x32xbf16> to vector<32x32xbf16>
    %cst_72 = arith.constant dense<0.000000e+00> : vector<16x32xf32>
    %138 = tpu.matmul %135, %137, %cst_72 {dimension_numbers = #tpu.dot_dimension_numbers<[1], [0], [0], [1], [0, 0, 1, 1], [], []>} : vector<16x32xbf16>, vector<32x32xbf16>, vector<16x32xf32> -> vector<16x32xf32>
    %c0_73 = arith.constant 0 : index
    %c0_74 = arith.constant 0 : index
    %c0_75 = arith.constant 0 : index
    %139 = vector.load %arg11[%c0_73, %c0_74, %c0_75] : memref<1x1x32xf32, #tpu.memory_space<vmem>>, vector<1x1x32xf32>
    %140 = vector.shape_cast %139 : vector<1x1x32xf32> to vector<1x32xf32>
    %141 = vector.broadcast %140 : vector<1x32xf32> to vector<16x32xf32>
    %142 = arith.addf %138, %141 : vector<16x32xf32>
    %143 = arith.addf %3, %142 : vector<16x32xf32>
    %c0_76 = arith.constant 0 : index
    %c1_77 = arith.constant 1 : index
    %c0_78 = arith.constant 0 : index
    %c0_79 = arith.constant 0 : index
    %144 = vector.load %arg6[%c0_76, %c1_77, %c0_78, %c0_79] : memref<1x3x1x32xf32, #tpu.memory_space<vmem>>, vector<1x1x1x32xf32>
    %145 = vector.shape_cast %144 : vector<1x1x1x32xf32> to vector<1x32xf32>
    %c0_80 = arith.constant 0 : index
    %c1_81 = arith.constant 1 : index
    %c0_82 = arith.constant 0 : index
    %c0_83 = arith.constant 0 : index
    %146 = vector.load %arg7[%c0_80, %c1_81, %c0_82, %c0_83] : memref<1x3x1x32xf32, #tpu.memory_space<vmem>>, vector<1x1x1x32xf32>
    %147 = vector.shape_cast %146 : vector<1x1x1x32xf32> to vector<1x32xf32>
    %cst_84 = arith.constant dense<0.000000e+00> : vector<16xf32>
    %148 = vector.multi_reduction <add>, %143, %cst_84 [1] : vector<16x32xf32> to vector<16xf32>
    %149 = vector.shape_cast %148 : vector<16xf32> to vector<16x1xf32>
    %cst_85 = arith.constant 3.200000e+01 : f32
    %150 = vector.broadcast %cst_85 : f32 to vector<16x1xf32>
    %151 = arith.divf %149, %150 : vector<16x1xf32>
    %152 = vector.broadcast %151 : vector<16x1xf32> to vector<16x32xf32>
    %153 = arith.subf %143, %152 : vector<16x32xf32>
    %154 = arith.mulf %153, %153 : vector<16x32xf32>
    %cst_86 = arith.constant dense<0.000000e+00> : vector<16xf32>
    %155 = vector.multi_reduction <add>, %154, %cst_86 [1] : vector<16x32xf32> to vector<16xf32>
    %156 = vector.shape_cast %155 : vector<16xf32> to vector<16x1xf32>
    %cst_87 = arith.constant 3.200000e+01 : f32
    %157 = vector.broadcast %cst_87 : f32 to vector<16x1xf32>
    %158 = arith.divf %156, %157 : vector<16x1xf32>
    %159 = vector.broadcast %151 : vector<16x1xf32> to vector<16x32xf32>
    %160 = arith.subf %143, %159 : vector<16x32xf32>
    %cst_88 = arith.constant 9.99999974E-6 : f32
    %161 = vector.broadcast %cst_88 : f32 to vector<16x1xf32>
    %162 = arith.addf %158, %161 : vector<16x1xf32>
    %163 = math.rsqrt %162 : vector<16x1xf32>
    %164 = vector.broadcast %163 : vector<16x1xf32> to vector<16x32xf32>
    %165 = arith.mulf %160, %164 : vector<16x32xf32>
    %166 = vector.broadcast %145 : vector<1x32xf32> to vector<16x32xf32>
    %167 = arith.mulf %165, %166 : vector<16x32xf32>
    %168 = vector.broadcast %147 : vector<1x32xf32> to vector<16x32xf32>
    %169 = arith.addf %167, %168 : vector<16x32xf32>
    %170 = arith.truncf %169 : vector<16x32xf32> to vector<16x32xbf16>
    %c0_89 = arith.constant 0 : index
    %c0_90 = arith.constant 0 : index
    %c0_91 = arith.constant 0 : index
    %c0_92 = arith.constant 0 : index
    %171 = vector.load %arg12[%c0_89, %c0_90, %c0_91, %c0_92] : memref<1x3x32x32xbf16, #tpu.memory_space<vmem>>, vector<1x1x32x32xbf16>
    %172 = vector.shape_cast %171 : vector<1x1x32x32xbf16> to vector<32x32xbf16>
    %cst_93 = arith.constant dense<0.000000e+00> : vector<16x32xf32>
    %173 = tpu.matmul %170, %172, %cst_93 {dimension_numbers = #tpu.dot_dimension_numbers<[1], [0], [0], [1], [0, 0, 1, 1], [], []>} : vector<16x32xbf16>, vector<32x32xbf16>, vector<16x32xf32> -> vector<16x32xf32>
    %c0_94 = arith.constant 0 : index
    %c0_95 = arith.constant 0 : index
    %c0_96 = arith.constant 0 : index
    %c0_97 = arith.constant 0 : index
    %174 = vector.load %arg13[%c0_94, %c0_95, %c0_96, %c0_97] : memref<1x3x1x32xf32, #tpu.memory_space<vmem>>, vector<1x1x1x32xf32>
    %175 = vector.shape_cast %174 : vector<1x1x1x32xf32> to vector<1x32xf32>
    %176 = vector.broadcast %175 : vector<1x32xf32> to vector<16x32xf32>
    %177 = arith.addf %173, %176 : vector<16x32xf32>
    %c0_98 = arith.constant 0 : index
    %c1_99 = arith.constant 1 : index
    %c0_100 = arith.constant 0 : index
    %c0_101 = arith.constant 0 : index
    %178 = vector.load %arg12[%c0_98, %c1_99, %c0_100, %c0_101] : memref<1x3x32x32xbf16, #tpu.memory_space<vmem>>, vector<1x1x32x32xbf16>
    %179 = vector.shape_cast %178 : vector<1x1x32x32xbf16> to vector<32x32xbf16>
    %cst_102 = arith.constant dense<0.000000e+00> : vector<16x32xf32>
    %180 = tpu.matmul %4, %179, %cst_102 {dimension_numbers = #tpu.dot_dimension_numbers<[1], [0], [0], [1], [0, 0, 1, 1], [], []>} : vector<16x32xbf16>, vector<32x32xbf16>, vector<16x32xf32> -> vector<16x32xf32>
    %c0_103 = arith.constant 0 : index
    %c1_104 = arith.constant 1 : index
    %c0_105 = arith.constant 0 : index
    %c0_106 = arith.constant 0 : index
    %181 = vector.load %arg13[%c0_103, %c1_104, %c0_105, %c0_106] : memref<1x3x1x32xf32, #tpu.memory_space<vmem>>, vector<1x1x1x32xf32>
    %182 = vector.shape_cast %181 : vector<1x1x1x32xf32> to vector<1x32xf32>
    %183 = vector.broadcast %182 : vector<1x32xf32> to vector<16x32xf32>
    %184 = arith.addf %180, %183 : vector<16x32xf32>
    %c0_107 = arith.constant 0 : index
    %c2_108 = arith.constant 2 : index
    %c0_109 = arith.constant 0 : index
    %c0_110 = arith.constant 0 : index
    %185 = vector.load %arg12[%c0_107, %c2_108, %c0_109, %c0_110] : memref<1x3x32x32xbf16, #tpu.memory_space<vmem>>, vector<1x1x32x32xbf16>
    %186 = vector.shape_cast %185 : vector<1x1x32x32xbf16> to vector<32x32xbf16>
    %cst_111 = arith.constant dense<0.000000e+00> : vector<16x32xf32>
    %187 = tpu.matmul %4, %186, %cst_111 {dimension_numbers = #tpu.dot_dimension_numbers<[1], [0], [0], [1], [0, 0, 1, 1], [], []>} : vector<16x32xbf16>, vector<32x32xbf16>, vector<16x32xf32> -> vector<16x32xf32>
    %c0_112 = arith.constant 0 : index
    %c2_113 = arith.constant 2 : index
    %c0_114 = arith.constant 0 : index
    %c0_115 = arith.constant 0 : index
    %188 = vector.load %arg13[%c0_112, %c2_113, %c0_114, %c0_115] : memref<1x3x1x32xf32, #tpu.memory_space<vmem>>, vector<1x1x1x32xf32>
    %189 = vector.shape_cast %188 : vector<1x1x1x32xf32> to vector<1x32xf32>
    %190 = vector.broadcast %189 : vector<1x32xf32> to vector<16x32xf32>
    %191 = arith.addf %187, %190 : vector<16x32xf32>
    %192 = vector.extract_strided_slice %177 {offsets = [0, 0], sizes = [16, 8], strides = [1, 1]} : vector<16x32xf32> to vector<16x8xf32>
    %193 = vector.extract_strided_slice %184 {offsets = [0, 0], sizes = [16, 8], strides = [1, 1]} : vector<16x32xf32> to vector<16x8xf32>
    %cst_116 = arith.constant dense<0.000000e+00> : vector<16x16xf32>
    %194 = tpu.matmul %192, %193, %cst_116 {dimension_numbers = #tpu.dot_dimension_numbers<[1], [1], [0], [0], [0, 0, 1, 0], [], []>} : vector<16x8xf32>, vector<16x8xf32>, vector<16x16xf32> -> vector<16x16xf32>
    %195 = vector.broadcast %17 : vector<1x16xf32> to vector<16x16xf32>
    %196 = arith.addf %194, %195 : vector<16x16xf32>
    %cst_117 = arith.constant dense<0xFF800000> : vector<16xf32>
    %197 = vector.multi_reduction <maximumf>, %196, %cst_117 [1] : vector<16x16xf32> to vector<16xf32>
    %198 = vector.shape_cast %197 : vector<16xf32> to vector<16x1xf32>
    %199 = vector.broadcast %198 : vector<16x1xf32> to vector<16x16xf32>
    %200 = arith.subf %196, %199 : vector<16x16xf32>
    %201 = math.exp %200 : vector<16x16xf32>
    %cst_118 = arith.constant dense<0.000000e+00> : vector<16xf32>
    %202 = vector.multi_reduction <add>, %201, %cst_118 [1] : vector<16x16xf32> to vector<16xf32>
    %203 = vector.shape_cast %202 : vector<16xf32> to vector<16x1xf32>
    %204 = tpu.reciprocal %203 {approx = true} : vector<16x1xf32> -> vector<16x1xf32>
    %205 = vector.broadcast %204 : vector<16x1xf32> to vector<16x16xf32>
    %206 = arith.mulf %201, %205 : vector<16x16xf32>
    %207 = vector.extract_strided_slice %191 {offsets = [0, 0], sizes = [16, 8], strides = [1, 1]} : vector<16x32xf32> to vector<16x8xf32>
    %cst_119 = arith.constant dense<0.000000e+00> : vector<16x8xf32>
    %208 = tpu.matmul %206, %207, %cst_119 {dimension_numbers = #tpu.dot_dimension_numbers<[1], [0], [0], [1], [0, 0, 1, 1], [], []>} : vector<16x16xf32>, vector<16x8xf32>, vector<16x8xf32> -> vector<16x8xf32>
    %c0_120 = arith.constant 0 : index
    %c0_121 = arith.constant 0 : index
    %209 = vector.load %arg24[%c0_120, %c0_121] : memref<16x32xf32, #tpu.memory_space<vmem>>, vector<16x8xf32>
    tpu.vector_store %arg24[%c0_120, %c0_121], %208 {strides = array<i32>} : memref<16x32xf32, #tpu.memory_space<vmem>>, vector<16x8xf32>,
    %210 = vector.extract_strided_slice %177 {offsets = [0, 8], sizes = [16, 8], strides = [1, 1]} : vector<16x32xf32> to vector<16x8xf32>
    %211 = vector.extract_strided_slice %184 {offsets = [0, 8], sizes = [16, 8], strides = [1, 1]} : vector<16x32xf32> to vector<16x8xf32>
    %cst_122 = arith.constant dense<0.000000e+00> : vector<16x16xf32>
    %212 = tpu.matmul %210, %211, %cst_122 {dimension_numbers = #tpu.dot_dimension_numbers<[1], [1], [0], [0], [0, 0, 1, 0], [], []>} : vector<16x8xf32>, vector<16x8xf32>, vector<16x16xf32> -> vector<16x16xf32>
    %213 = vector.broadcast %17 : vector<1x16xf32> to vector<16x16xf32>
    %214 = arith.addf %212, %213 : vector<16x16xf32>
    %cst_123 = arith.constant dense<0xFF800000> : vector<16xf32>
    %215 = vector.multi_reduction <maximumf>, %214, %cst_123 [1] : vector<16x16xf32> to vector<16xf32>
    %216 = vector.shape_cast %215 : vector<16xf32> to vector<16x1xf32>
    %217 = vector.broadcast %216 : vector<16x1xf32> to vector<16x16xf32>
    %218 = arith.subf %214, %217 : vector<16x16xf32>
    %219 = math.exp %218 : vector<16x16xf32>
    %cst_124 = arith.constant dense<0.000000e+00> : vector<16xf32>
    %220 = vector.multi_reduction <add>, %219, %cst_124 [1] : vector<16x16xf32> to vector<16xf32>
    %221 = vector.shape_cast %220 : vector<16xf32> to vector<16x1xf32>
    %222 = tpu.reciprocal %221 {approx = true} : vector<16x1xf32> -> vector<16x1xf32>
    %223 = vector.broadcast %222 : vector<16x1xf32> to vector<16x16xf32>
    %224 = arith.mulf %219, %223 : vector<16x16xf32>
    %225 = vector.extract_strided_slice %191 {offsets = [0, 8], sizes = [16, 8], strides = [1, 1]} : vector<16x32xf32> to vector<16x8xf32>
    %cst_125 = arith.constant dense<0.000000e+00> : vector<16x8xf32>
    %226 = tpu.matmul %224, %225, %cst_125 {dimension_numbers = #tpu.dot_dimension_numbers<[1], [0], [0], [1], [0, 0, 1, 1], [], []>} : vector<16x16xf32>, vector<16x8xf32>, vector<16x8xf32> -> vector<16x8xf32>
    %c0_126 = arith.constant 0 : index
    %c8_127 = arith.constant 8 : index
    %227 = vector.load %arg24[%c0_126, %c8_127] : memref<16x32xf32, #tpu.memory_space<vmem>>, vector<16x8xf32>
    tpu.vector_store %arg24[%c0_126, %c8_127], %226 {strides = array<i32>} : memref<16x32xf32, #tpu.memory_space<vmem>>, vector<16x8xf32>,
    %228 = vector.extract_strided_slice %177 {offsets = [0, 16], sizes = [16, 8], strides = [1, 1]} : vector<16x32xf32> to vector<16x8xf32>
    %229 = vector.extract_strided_slice %184 {offsets = [0, 16], sizes = [16, 8], strides = [1, 1]} : vector<16x32xf32> to vector<16x8xf32>
    %cst_128 = arith.constant dense<0.000000e+00> : vector<16x16xf32>
    %230 = tpu.matmul %228, %229, %cst_128 {dimension_numbers = #tpu.dot_dimension_numbers<[1], [1], [0], [0], [0, 0, 1, 0], [], []>} : vector<16x8xf32>, vector<16x8xf32>, vector<16x16xf32> -> vector<16x16xf32>
    %231 = vector.broadcast %17 : vector<1x16xf32> to vector<16x16xf32>
    %232 = arith.addf %230, %231 : vector<16x16xf32>
    %cst_129 = arith.constant dense<0xFF800000> : vector<16xf32>
    %233 = vector.multi_reduction <maximumf>, %232, %cst_129 [1] : vector<16x16xf32> to vector<16xf32>
    %234 = vector.shape_cast %233 : vector<16xf32> to vector<16x1xf32>
    %235 = vector.broadcast %234 : vector<16x1xf32> to vector<16x16xf32>
    %236 = arith.subf %232, %235 : vector<16x16xf32>
    %237 = math.exp %236 : vector<16x16xf32>
    %cst_130 = arith.constant dense<0.000000e+00> : vector<16xf32>
    %238 = vector.multi_reduction <add>, %237, %cst_130 [1] : vector<16x16xf32> to vector<16xf32>
    %239 = vector.shape_cast %238 : vector<16xf32> to vector<16x1xf32>
    %240 = tpu.reciprocal %239 {approx = true} : vector<16x1xf32> -> vector<16x1xf32>
    %241 = vector.broadcast %240 : vector<16x1xf32> to vector<16x16xf32>
    %242 = arith.mulf %237, %241 : vector<16x16xf32>
    %243 = vector.extract_strided_slice %191 {offsets = [0, 16], sizes = [16, 8], strides = [1, 1]} : vector<16x32xf32> to vector<16x8xf32>
    %cst_131 = arith.constant dense<0.000000e+00> : vector<16x8xf32>
    %244 = tpu.matmul %242, %243, %cst_131 {dimension_numbers = #tpu.dot_dimension_numbers<[1], [0], [0], [1], [0, 0, 1, 1], [], []>} : vector<16x16xf32>, vector<16x8xf32>, vector<16x8xf32> -> vector<16x8xf32>
    %c0_132 = arith.constant 0 : index
    %c16_133 = arith.constant 16 : index
    %245 = vector.load %arg24[%c0_132, %c16_133] : memref<16x32xf32, #tpu.memory_space<vmem>>, vector<16x8xf32>
    tpu.vector_store %arg24[%c0_132, %c16_133], %244 {strides = array<i32>} : memref<16x32xf32, #tpu.memory_space<vmem>>, vector<16x8xf32>,
    %246 = vector.extract_strided_slice %177 {offsets = [0, 24], sizes = [16, 8], strides = [1, 1]} : vector<16x32xf32> to vector<16x8xf32>
    %247 = vector.extract_strided_slice %184 {offsets = [0, 24], sizes = [16, 8], strides = [1, 1]} : vector<16x32xf32> to vector<16x8xf32>
    %cst_134 = arith.constant dense<0.000000e+00> : vector<16x16xf32>
    %248 = tpu.matmul %246, %247, %cst_134 {dimension_numbers = #tpu.dot_dimension_numbers<[1], [1], [0], [0], [0, 0, 1, 0], [], []>} : vector<16x8xf32>, vector<16x8xf32>, vector<16x16xf32> -> vector<16x16xf32>
    %249 = vector.broadcast %17 : vector<1x16xf32> to vector<16x16xf32>
    %250 = arith.addf %248, %249 : vector<16x16xf32>
    %cst_135 = arith.constant dense<0xFF800000> : vector<16xf32>
    %251 = vector.multi_reduction <maximumf>, %250, %cst_135 [1] : vector<16x16xf32> to vector<16xf32>
    %252 = vector.shape_cast %251 : vector<16xf32> to vector<16x1xf32>
    %253 = vector.broadcast %252 : vector<16x1xf32> to vector<16x16xf32>
    %254 = arith.subf %250, %253 : vector<16x16xf32>
    %255 = math.exp %254 : vector<16x16xf32>
    %cst_136 = arith.constant dense<0.000000e+00> : vector<16xf32>
    %256 = vector.multi_reduction <add>, %255, %cst_136 [1] : vector<16x16xf32> to vector<16xf32>
    %257 = vector.shape_cast %256 : vector<16xf32> to vector<16x1xf32>
    %258 = tpu.reciprocal %257 {approx = true} : vector<16x1xf32> -> vector<16x1xf32>
    %259 = vector.broadcast %258 : vector<16x1xf32> to vector<16x16xf32>
    %260 = arith.mulf %255, %259 : vector<16x16xf32>
    %261 = vector.extract_strided_slice %191 {offsets = [0, 24], sizes = [16, 8], strides = [1, 1]} : vector<16x32xf32> to vector<16x8xf32>
    %cst_137 = arith.constant dense<0.000000e+00> : vector<16x8xf32>
    %262 = tpu.matmul %260, %261, %cst_137 {dimension_numbers = #tpu.dot_dimension_numbers<[1], [0], [0], [1], [0, 0, 1, 1], [], []>} : vector<16x16xf32>, vector<16x8xf32>, vector<16x8xf32> -> vector<16x8xf32>
    %c0_138 = arith.constant 0 : index
    %c24_139 = arith.constant 24 : index
    %263 = vector.load %arg24[%c0_138, %c24_139] : memref<16x32xf32, #tpu.memory_space<vmem>>, vector<16x8xf32>
    tpu.vector_store %arg24[%c0_138, %c24_139], %262 {strides = array<i32>} : memref<16x32xf32, #tpu.memory_space<vmem>>, vector<16x8xf32>,
    %c0_140 = arith.constant 0 : index
    %c0_141 = arith.constant 0 : index
    %264 = vector.load %arg24[%c0_140, %c0_141] : memref<16x32xf32, #tpu.memory_space<vmem>>, vector<16x32xf32>
    %265 = arith.truncf %264 : vector<16x32xf32> to vector<16x32xbf16>
    %c0_142 = arith.constant 0 : index
    %c0_143 = arith.constant 0 : index
    %c0_144 = arith.constant 0 : index
    %266 = vector.load %arg14[%c0_142, %c0_143, %c0_144] : memref<1x32x32xbf16, #tpu.memory_space<vmem>>, vector<1x32x32xbf16>
    %267 = vector.shape_cast %266 : vector<1x32x32xbf16> to vector<32x32xbf16>
    %cst_145 = arith.constant dense<0.000000e+00> : vector<16x32xf32>
    %268 = tpu.matmul %265, %267, %cst_145 {dimension_numbers = #tpu.dot_dimension_numbers<[1], [0], [0], [1], [0, 0, 1, 1], [], []>} : vector<16x32xbf16>, vector<32x32xbf16>, vector<16x32xf32> -> vector<16x32xf32>
    %c0_146 = arith.constant 0 : index
    %c0_147 = arith.constant 0 : index
    %c0_148 = arith.constant 0 : index
    %269 = vector.load %arg15[%c0_146, %c0_147, %c0_148] : memref<1x1x32xf32, #tpu.memory_space<vmem>>, vector<1x1x32xf32>
    %270 = vector.shape_cast %269 : vector<1x1x32xf32> to vector<1x32xf32>
    %271 = vector.broadcast %270 : vector<1x32xf32> to vector<16x32xf32>
    %272 = arith.addf %268, %271 : vector<16x32xf32>
    %273 = arith.addf %143, %272 : vector<16x32xf32>
    %c0_149 = arith.constant 0 : index
    %c2_150 = arith.constant 2 : index
    %c0_151 = arith.constant 0 : index
    %c0_152 = arith.constant 0 : index
    %274 = vector.load %arg6[%c0_149, %c2_150, %c0_151, %c0_152] : memref<1x3x1x32xf32, #tpu.memory_space<vmem>>, vector<1x1x1x32xf32>
    %275 = vector.shape_cast %274 : vector<1x1x1x32xf32> to vector<1x32xf32>
    %c0_153 = arith.constant 0 : index
    %c2_154 = arith.constant 2 : index
    %c0_155 = arith.constant 0 : index
    %c0_156 = arith.constant 0 : index
    %276 = vector.load %arg7[%c0_153, %c2_154, %c0_155, %c0_156] : memref<1x3x1x32xf32, #tpu.memory_space<vmem>>, vector<1x1x1x32xf32>
    %277 = vector.shape_cast %276 : vector<1x1x1x32xf32> to vector<1x32xf32>
    %cst_157 = arith.constant dense<0.000000e+00> : vector<16xf32>
    %278 = vector.multi_reduction <add>, %273, %cst_157 [1] : vector<16x32xf32> to vector<16xf32>
    %279 = vector.shape_cast %278 : vector<16xf32> to vector<16x1xf32>
    %cst_158 = arith.constant 3.200000e+01 : f32
    %280 = vector.broadcast %cst_158 : f32 to vector<16x1xf32>
    %281 = arith.divf %279, %280 : vector<16x1xf32>
    %282 = vector.broadcast %281 : vector<16x1xf32> to vector<16x32xf32>
    %283 = arith.subf %273, %282 : vector<16x32xf32>
    %284 = arith.mulf %283, %283 : vector<16x32xf32>
    %cst_159 = arith.constant dense<0.000000e+00> : vector<16xf32>
    %285 = vector.multi_reduction <add>, %284, %cst_159 [1] : vector<16x32xf32> to vector<16xf32>
    %286 = vector.shape_cast %285 : vector<16xf32> to vector<16x1xf32>
    %cst_160 = arith.constant 3.200000e+01 : f32
    %287 = vector.broadcast %cst_160 : f32 to vector<16x1xf32>
    %288 = arith.divf %286, %287 : vector<16x1xf32>
    %289 = vector.broadcast %281 : vector<16x1xf32> to vector<16x32xf32>
    %290 = arith.subf %273, %289 : vector<16x32xf32>
    %cst_161 = arith.constant 9.99999974E-6 : f32
    %291 = vector.broadcast %cst_161 : f32 to vector<16x1xf32>
    %292 = arith.addf %288, %291 : vector<16x1xf32>
    %293 = math.rsqrt %292 : vector<16x1xf32>
    %294 = vector.broadcast %293 : vector<16x1xf32> to vector<16x32xf32>
    %295 = arith.mulf %290, %294 : vector<16x32xf32>
    %296 = vector.broadcast %275 : vector<1x32xf32> to vector<16x32xf32>
    %297 = arith.mulf %295, %296 : vector<16x32xf32>
    %298 = vector.broadcast %277 : vector<1x32xf32> to vector<16x32xf32>
    %299 = arith.addf %297, %298 : vector<16x32xf32>
    %300 = arith.truncf %299 : vector<16x32xf32> to vector<16x32xbf16>
    %c0_162 = arith.constant 0 : index
    %c0_163 = arith.constant 0 : index
    %c0_164 = arith.constant 0 : index
    %301 = vector.load %arg16[%c0_162, %c0_163, %c0_164] : memref<1x32x64xbf16, #tpu.memory_space<vmem>>, vector<1x32x64xbf16>
    %302 = vector.shape_cast %301 : vector<1x32x64xbf16> to vector<32x64xbf16>
    %cst_165 = arith.constant dense<0.000000e+00> : vector<16x64xf32>
    %303 = tpu.matmul %300, %302, %cst_165 {dimension_numbers = #tpu.dot_dimension_numbers<[1], [0], [0], [1], [0, 0, 1, 1], [], []>} : vector<16x32xbf16>, vector<32x64xbf16>, vector<16x64xf32> -> vector<16x64xf32>
    %c0_166 = arith.constant 0 : index
    %c0_167 = arith.constant 0 : index
    %c0_168 = arith.constant 0 : index
    %304 = vector.load %arg17[%c0_166, %c0_167, %c0_168] : memref<1x1x64xf32, #tpu.memory_space<vmem>>, vector<1x1x64xf32>
    %305 = vector.shape_cast %304 : vector<1x1x64xf32> to vector<1x64xf32>
    %306 = vector.broadcast %305 : vector<1x64xf32> to vector<16x64xf32>
    %307 = arith.addf %303, %306 : vector<16x64xf32>
    %cst_169 = arith.constant 0.000000e+00 : f32
    %308 = vector.broadcast %cst_169 : f32 to vector<16x64xf32>
    %309 = arith.maximumf %307, %308 : vector<16x64xf32>
    %310 = arith.truncf %309 : vector<16x64xf32> to vector<16x64xbf16>
    %c0_170 = arith.constant 0 : index
    %c0_171 = arith.constant 0 : index
    %c0_172 = arith.constant 0 : index
    %311 = vector.load %arg18[%c0_170, %c0_171, %c0_172] : memref<1x64x32xbf16, #tpu.memory_space<vmem>>, vector<1x64x32xbf16>
    %312 = vector.shape_cast %311 : vector<1x64x32xbf16> to vector<64x32xbf16>
    %cst_173 = arith.constant dense<0.000000e+00> : vector<16x32xf32>
    %313 = tpu.matmul %310, %312, %cst_173 {dimension_numbers = #tpu.dot_dimension_numbers<[1], [0], [0], [1], [0, 0, 1, 1], [], []>} : vector<16x64xbf16>, vector<64x32xbf16>, vector<16x32xf32> -> vector<16x32xf32>
    %314 = arith.addf %273, %313 : vector<16x32xf32>
    %c0_174 = arith.constant 0 : index
    %c0_175 = arith.constant 0 : index
    %c0_176 = arith.constant 0 : index
    %315 = vector.load %arg19[%c0_174, %c0_175, %c0_176] : memref<1x1x32xf32, #tpu.memory_space<vmem>>, vector<1x1x32xf32>
    %316 = vector.shape_cast %315 : vector<1x1x32xf32> to vector<1x32xf32>
    %317 = vector.broadcast %316 : vector<1x32xf32> to vector<16x32xf32>
    %318 = arith.addf %314, %317 : vector<16x32xf32>
    %c0_177 = arith.constant 0 : index
    %c0_178 = arith.constant 0 : index
    %319 = vector.load %arg23[%c0_177, %c0_178] : memref<16x32xf32, #tpu.memory_space<vmem>>, vector<16x32xf32>
    tpu.vector_store %arg23[%c0_177, %c0_178], %318 {strides = array<i32>} : memref<16x32xf32, #tpu.memory_space<vmem>>, vector<16x32xf32>,
    %c1_i32 = arith.constant 1 : i32
    %320 = arith.cmpi eq, %arg1, %c1_i32 : i32
    %321 = arith.extui %320 : i1 to i32
    %c0_i32_179 = arith.constant 0 : i32
    %322 = arith.cmpi ne, %321, %c0_i32_179 : i32
    scf.if %322 {
      %c0_180 = arith.constant 0 : index
      %c0_181 = arith.constant 0 : index
      %323 = vector.load %arg20[%c0_180, %c0_181] : memref<1x32xf32, #tpu.memory_space<vmem>>, vector<1x32xf32>
      %c0_182 = arith.constant 0 : index
      %c0_183 = arith.constant 0 : index
      %324 = vector.load %arg21[%c0_182, %c0_183] : memref<1x32xf32, #tpu.memory_space<vmem>>, vector<1x32xf32>
      %cst_184 = arith.constant dense<0.000000e+00> : vector<16xf32>
      %325 = vector.multi_reduction <add>, %318, %cst_184 [1] : vector<16x32xf32> to vector<16xf32>
      %326 = vector.shape_cast %325 : vector<16xf32> to vector<16x1xf32>
      %cst_185 = arith.constant 3.200000e+01 : f32
      %327 = vector.broadcast %cst_185 : f32 to vector<16x1xf32>
      %328 = arith.divf %326, %327 : vector<16x1xf32>
      %329 = vector.broadcast %328 : vector<16x1xf32> to vector<16x32xf32>
      %330 = arith.subf %318, %329 : vector<16x32xf32>
      %331 = arith.mulf %330, %330 : vector<16x32xf32>
      %cst_186 = arith.constant dense<0.000000e+00> : vector<16xf32>
      %332 = vector.multi_reduction <add>, %331, %cst_186 [1] : vector<16x32xf32> to vector<16xf32>
      %333 = vector.shape_cast %332 : vector<16xf32> to vector<16x1xf32>
      %cst_187 = arith.constant 3.200000e+01 : f32
      %334 = vector.broadcast %cst_187 : f32 to vector<16x1xf32>
      %335 = arith.divf %333, %334 : vector<16x1xf32>
      %336 = vector.broadcast %328 : vector<16x1xf32> to vector<16x32xf32>
      %337 = arith.subf %318, %336 : vector<16x32xf32>
      %cst_188 = arith.constant 9.99999974E-6 : f32
      %338 = vector.broadcast %cst_188 : f32 to vector<16x1xf32>
      %339 = arith.addf %335, %338 : vector<16x1xf32>
      %340 = math.rsqrt %339 : vector<16x1xf32>
      %341 = vector.broadcast %340 : vector<16x1xf32> to vector<16x32xf32>
      %342 = arith.mulf %337, %341 : vector<16x32xf32>
      %343 = vector.broadcast %323 : vector<1x32xf32> to vector<16x32xf32>
      %344 = arith.mulf %342, %343 : vector<16x32xf32>
      %345 = vector.broadcast %324 : vector<1x32xf32> to vector<16x32xf32>
      %346 = arith.addf %344, %345 : vector<16x32xf32>
      %347 = arith.truncf %346 : vector<16x32xf32> to vector<16x32xbf16>
      %c0_189 = arith.constant 0 : index
      %c0_190 = arith.constant 0 : index
      %348 = vector.load %arg22[%c0_189, %c0_190] : memref<16x32xbf16, #tpu.memory_space<vmem>>, vector<16x32xbf16>
      tpu.vector_store %arg22[%c0_189, %c0_190], %347 {strides = array<i32>} : memref<16x32xbf16, #tpu.memory_space<vmem>>, vector<16x32xbf16>,
    } else {
    }
    return
  }
  func.func @transform_0(%arg0: i32, %arg1: i32, %arg2: memref<2xi32, #tpu.memory_space<smem>>) -> (i32, i32) {
    %c0_i32 = arith.constant 0 : i32
    %c0_i32_0 = arith.constant 0 : i32
    return %arg0, %c0_i32 : i32, i32
  }
  func.func @transform_1(%arg0: i32, %arg1: i32, %arg2: memref<2xi32, #tpu.memory_space<smem>>) -> (i32, i32) {
    %c0_i32 = arith.constant 0 : i32
    %c0_i32_0 = arith.constant 0 : i32
    return %arg0, %c0_i32 : i32, i32
  }
  func.func @transform_2(%arg0: i32, %arg1: i32, %arg2: memref<2xi32, #tpu.memory_space<smem>>) -> (i32, i32, i32) {
    %c0_i32 = arith.constant 0 : i32
    %c0_i32_0 = arith.constant 0 : i32
    %c0_i32_1 = arith.constant 0 : i32
    return %arg0, %c0_i32, %c0_i32_0 : i32, i32, i32
  }
  func.func @transform_3(%arg0: i32, %arg1: i32, %arg2: memref<2xi32, #tpu.memory_space<smem>>) -> (i32, i32, i32, i32) {
    %c0_i32 = arith.constant 0 : i32
    %c0_i32_0 = arith.constant 0 : i32
    %c0_i32_1 = arith.constant 0 : i32
    %c0_i32_2 = arith.constant 0 : i32
    return %arg1, %c0_i32, %c0_i32_0, %c0_i32_1 : i32, i32, i32, i32
  }
  func.func @transform_4(%arg0: i32, %arg1: i32, %arg2: memref<2xi32, #tpu.memory_space<smem>>) -> (i32, i32, i32, i32) {
    %c0_i32 = arith.constant 0 : i32
    %c0_i32_0 = arith.constant 0 : i32
    %c0_i32_1 = arith.constant 0 : i32
    %c0_i32_2 = arith.constant 0 : i32
    return %arg1, %c0_i32, %c0_i32_0, %c0_i32_1 : i32, i32, i32, i32
  }
  func.func @transform_5(%arg0: i32, %arg1: i32, %arg2: memref<2xi32, #tpu.memory_space<smem>>) -> (i32, i32, i32, i32) {
    %c0_i32 = arith.constant 0 : i32
    %c0_i32_0 = arith.constant 0 : i32
    %c0_i32_1 = arith.constant 0 : i32
    %c0_i32_2 = arith.constant 0 : i32
    return %arg1, %c0_i32, %c0_i32_0, %c0_i32_1 : i32, i32, i32, i32
  }
  func.func @transform_6(%arg0: i32, %arg1: i32, %arg2: memref<2xi32, #tpu.memory_space<smem>>) -> (i32, i32, i32, i32) {
    %c0_i32 = arith.constant 0 : i32
    %c0_i32_0 = arith.constant 0 : i32
    %c0_i32_1 = arith.constant 0 : i32
    %c0_i32_2 = arith.constant 0 : i32
    return %arg1, %c0_i32, %c0_i32_0, %c0_i32_1 : i32, i32, i32, i32
  }
  func.func @transform_7(%arg0: i32, %arg1: i32, %arg2: memref<2xi32, #tpu.memory_space<smem>>) -> (i32, i32, i32) {
    %c0_i32 = arith.constant 0 : i32
    %c0_i32_0 = arith.constant 0 : i32
    %c0_i32_1 = arith.constant 0 : i32
    return %arg1, %c0_i32, %c0_i32_0 : i32, i32, i32
  }
  func.func @transform_8(%arg0: i32, %arg1: i32, %arg2: memref<2xi32, #tpu.memory_space<smem>>) -> (i32, i32, i32) {
    %c0_i32 = arith.constant 0 : i32
    %c0_i32_0 = arith.constant 0 : i32
    %c0_i32_1 = arith.constant 0 : i32
    return %arg1, %c0_i32, %c0_i32_0 : i32, i32, i32
  }
  func.func @transform_9(%arg0: i32, %arg1: i32, %arg2: memref<2xi32, #tpu.memory_space<smem>>) -> (i32, i32, i32, i32) {
    %c0_i32 = arith.constant 0 : i32
    %c0_i32_0 = arith.constant 0 : i32
    %c0_i32_1 = arith.constant 0 : i32
    %c0_i32_2 = arith.constant 0 : i32
    return %arg1, %c0_i32, %c0_i32_0, %c0_i32_1 : i32, i32, i32, i32
  }
  func.func @transform_10(%arg0: i32, %arg1: i32, %arg2: memref<2xi32, #tpu.memory_space<smem>>) -> (i32, i32, i32, i32) {
    %c0_i32 = arith.constant 0 : i32
    %c0_i32_0 = arith.constant 0 : i32
    %c0_i32_1 = arith.constant 0 : i32
    %c0_i32_2 = arith.constant 0 : i32
    return %arg1, %c0_i32, %c0_i32_0, %c0_i32_1 : i32, i32, i32, i32
  }
  func.func @transform_11(%arg0: i32, %arg1: i32, %arg2: memref<2xi32, #tpu.memory_space<smem>>) -> (i32, i32, i32) {
    %c0_i32 = arith.constant 0 : i32
    %c0_i32_0 = arith.constant 0 : i32
    %c0_i32_1 = arith.constant 0 : i32
    return %arg1, %c0_i32, %c0_i32_0 : i32, i32, i32
  }
  func.func @transform_12(%arg0: i32, %arg1: i32, %arg2: memref<2xi32, #tpu.memory_space<smem>>) -> (i32, i32, i32) {
    %c0_i32 = arith.constant 0 : i32
    %c0_i32_0 = arith.constant 0 : i32
    %c0_i32_1 = arith.constant 0 : i32
    return %arg1, %c0_i32, %c0_i32_0 : i32, i32, i32
  }
  func.func @transform_13(%arg0: i32, %arg1: i32, %arg2: memref<2xi32, #tpu.memory_space<smem>>) -> (i32, i32, i32) {
    %c0_i32 = arith.constant 0 : i32
    %c0_i32_0 = arith.constant 0 : i32
    %c0_i32_1 = arith.constant 0 : i32
    return %arg1, %c0_i32, %c0_i32_0 : i32, i32, i32
  }
  func.func @transform_14(%arg0: i32, %arg1: i32, %arg2: memref<2xi32, #tpu.memory_space<smem>>) -> (i32, i32, i32) {
    %c0_i32 = arith.constant 0 : i32
    %c0_i32_0 = arith.constant 0 : i32
    %c0_i32_1 = arith.constant 0 : i32
    return %arg1, %c0_i32, %c0_i32_0 : i32, i32, i32
  }
  func.func @transform_15(%arg0: i32, %arg1: i32, %arg2: memref<2xi32, #tpu.memory_space<smem>>) -> (i32, i32, i32) {
    %c0_i32 = arith.constant 0 : i32
    %c0_i32_0 = arith.constant 0 : i32
    %c0_i32_1 = arith.constant 0 : i32
    return %arg1, %c0_i32, %c0_i32_0 : i32, i32, i32
  }
  func.func @transform_16(%arg0: i32, %arg1: i32, %arg2: memref<2xi32, #tpu.memory_space<smem>>) -> (i32, i32, i32) {
    %c0_i32 = arith.constant 0 : i32
    %c0_i32_0 = arith.constant 0 : i32
    %c0_i32_1 = arith.constant 0 : i32
    return %arg1, %c0_i32, %c0_i32_0 : i32, i32, i32
  }
  func.func @transform_17(%arg0: i32, %arg1: i32, %arg2: memref<2xi32, #tpu.memory_space<smem>>) -> (i32, i32) {
    %c0_i32 = arith.constant 0 : i32
    %c0_i32_0 = arith.constant 0 : i32
    %c0_i32_1 = arith.constant 0 : i32
    return %c0_i32, %c0_i32_0 : i32, i32
  }
  func.func @transform_18(%arg0: i32, %arg1: i32, %arg2: memref<2xi32, #tpu.memory_space<smem>>) -> (i32, i32) {
    %c0_i32 = arith.constant 0 : i32
    %c0_i32_0 = arith.constant 0 : i32
    %c0_i32_1 = arith.constant 0 : i32
    return %c0_i32, %c0_i32_0 : i32, i32
  }
  func.func @transform_19(%arg0: i32, %arg1: i32, %arg2: memref<2xi32, #tpu.memory_space<smem>>) -> (i32, i32) {
    %c0_i32 = arith.constant 0 : i32
    %c0_i32_0 = arith.constant 0 : i32
    return %arg0, %c0_i32 : i32, i32
  }
}

</mosaic_0001>

<bundles_post_ra>
// kernel: tpu_custom_call.1
= control target key start
LH: loop header
LB: loop body
LE: loop exit
PB: predicated region body
PF: predicated region fallthrough
CT: control target
= control target key end

     0   :  { %s6538_s0 = inlined_call_operand.hbm [shape: s32[2], index: 0, kind: input, shape index: {}]   ;;  %s6539_s1 = inlined_call_operand.hbm [shape: f32[32,32], index: 1, kind: input, shape index: {}]   ;;  %s6540_s2 = inlined_call_operand.hbm [shape: bf16[32,32], index: 2, kind: input, shape index: {}]   ;;  %s6541_s3 = inlined_call_operand.vmem [shape: f32[2,1,16], index: 3, kind: input, shape index: {}]   ;;  %s6542_s4 = inlined_call_operand.hbm [shape: f32[2,3,1,32], index: 4, kind: input, shape index: {}]   ;;  %s6543_s5 = inlined_call_operand.hbm [shape: f32[2,3,1,32], index: 5, kind: input, shape index: {}]   ;;  %s6544_s6 = inlined_call_operand.vmem [shape: bf16[2,3,32,32], index: 6, kind: input, shape index: {}]   ;;  %s6545_s7 = inlined_call_operand.hbm [shape: f32[2,3,1,32], index: 7, kind: input, shape index: {}]   ;;  %s6546_s8 = inlined_call_operand.hbm [shape: bf16[2,32,32], index: 8, kind: input, shape index: {}]   ;;  %s6547_s9 = inlined_call_operand.hbm [shape: f32[2,1,32], index: 9, kind: input, shape index: {}]   ;;  %s6548_s10 = inlined_call_operand.hbm [shape: bf16[2,3,32,32], index: 10, kind: input, shape index: {}]   ;;  %s6549_s11 = inlined_call_operand.vmem [shape: f32[2,3,1,32], index: 11, kind: input, shape index: {}]   ;;  %s6550_s12 = inlined_call_operand.vmem [shape: bf16[2,32,32], index: 12, kind: input, shape index: {}]   ;;  %s6551_s13 = inlined_call_operand.vmem [shape: f32[2,1,32], index: 13, kind: input, shape index: {}]   ;;  %s6552_s14 = inlined_call_operand.hbm [shape: bf16[2,32,64], index: 14, kind: input, shape index: {}]   ;;  %s6553_s15 = inlined_call_operand.vmem [shape: f32[2,1,64], index: 15, kind: input, shape index: {}]   ;;  %s6554_s16 = inlined_call_operand.vmem [shape: bf16[2,64,32], index: 16, kind: input, shape index: {}]   ;;  %s6555_s17 = inlined_call_operand.vmem [shape: f32[2,1,32], index: 17, kind: input, shape index: {}]   ;;  %s6556_s18 = inlined_call_operand.vmem [shape: f32[1,32], index: 18, kind: input, shape index: {}]   ;;  %s6557_s19 = inlined_call_operand.vmem [shape: f32[1,32], index: 19, kind: input, shape index: {}]   ;;  %s6558_s20 = inlined_call_operand.hbm [shape: bf16[32,32], index: 20, kind: output, shape index: {}]  }
   0x1   :  { %6617 = sst [smem:[#allocation56_spill]] %s6538_s0 }
   0x2   :  { %6618 = sst [smem:[#allocation57_spill]] %s6539_s1  ;;  %s6638_s23 = sld [smem:[#allocation56_spill]] }
   0x3   :  { %6619 = sst [smem:[#allocation58_spill]] %s6540_s2 }
   0x4   :  { %6620 = sst [smem:[#allocation59_spill]] %s6541_s3 }
   0x5   :  { %6621 = sst [smem:[#allocation60_spill]] %s6542_s4 }
   0x6   :  { %6622 = sst [smem:[#allocation61_spill]] %s6543_s5 }
   0x7   :  { %6623 = sst [smem:[#allocation62_spill]] %s6544_s6 }
   0x8   :  { %6624 = sst [smem:[#allocation63_spill]] %s6545_s7 }
   0x9   :  { %6625 = sst [smem:[#allocation64_spill]] %s6546_s8 }
   0xa   :  { %6626 = sst [smem:[#allocation65_spill]] %s6547_s9 }
   0xb   :  { %6627 = sst [smem:[#allocation66_spill]] %s6548_s10 }
   0xc   :  { %6628 = sst [smem:[#allocation67_spill]] %s6549_s11  ;;  %s4906_s11 = scalar_lea.hbm %s6638_s23, 16 }
   0xd   :  { %6629 = sst [smem:[#allocation68_spill]] %s6550_s12  ;;  %p4907_p0 = scmp.ne.s32.totalorder %s6638_s23, %s4906_s11 }
   0xe   :  { %6630 = sst [smem:[#allocation69_spill]] %s6551_s13  ;;  %p4910_p1 = scmp.lt.u32.totalorder %s4906_s11, %s6638_s23 }
   0xf   :  { %6631 = sst [smem:[#allocation70_spill]] %s6552_s14 }
  0x10   :  { %6632 = sst [smem:[#allocation71_spill]] %s6553_s15  ;;  %p4912_p2 = pnand %p4910_p1, %p4907_p0 }
  0x11   :  { %6633 = sst [smem:[#allocation72_spill]] %s6554_s16 }
  0x12   :  { %6634 = sst [smem:[#allocation73_spill]] %s6555_s17 }
  0x13   :  { %6635 = sst [smem:[#allocation74_spill]] %s6556_s18 }
  0x14   :  { %6636 = sst [smem:[#allocation75_spill]] %s6557_s19 }
  0x15   :  { %6637 = sst [smem:[#allocation76_spill]] %s6558_s20 }
  0x16   :  { %4915 = shalt.err (!%p4912_p2)  }
  0x17   :  { %s5332_s26 = smov [#allocation5]  }
  0x18   :  { %26 = dma.hbm_to_smem %s6638_s23, 16, %s5332_s26, [#allocation4] }
  0x19   :  { %5258 = dma.done.wait [#allocation4], 16 }
  0x1a   :  { %5259 = vsyncadd [#allocation4], 4294967280 }
  0x1b   :  { %28 = sfence }
  0x1c   :  { %29 = vsyncpa [#allocation7], 0 }
  0x1d   :  { %31 = vsyncpa [#allocation7 + $0x1], 0 }
  0x1e   :  { %32 = vsyncpa [#allocation10], 0 }
  0x1f   :  { %34 = vsyncpa [#allocation10 + $0x1], 0 }
  0x20   :  { %35 = vsyncpa [#allocation13], 0 }
  0x21   :  { %37 = vsyncpa [#allocation13 + $0x1], 0 }
  0x22   :  { %38 = vsyncpa [#allocation16], 0 }
  0x23   :  { %40 = vsyncpa [#allocation16 + $0x1], 0 }
  0x24   :  { %41 = vsyncpa [#allocation19], 0 }
  0x25   :  { %43 = vsyncpa [#allocation19 + $0x1], 0 }
  0x26   :  { %44 = vsyncpa [#allocation8], 0 }
  0x27   :  { %46 = vsyncpa [#allocation8 + $0x1], 0  ;;  %s5477_s11 = smov 0   ;;  %s5479_s4 = smov 0  }
  0x28   :  { %s5481_s29 = smov 0   ;;  %s5483_s30 = smov 0  }
  0x29   :  { %s5485_s0 = smov 0   ;;  %s5487_s21 = smov 0  }
  0x2a   :  { %s5489_s1 = smov 0   ;;  %s5491_s22 = smov 0  }
  0x2b   :  { %6639 = sst [smem:[#allocation30_spill]] %s5491_s22  ;;  %s5493_s23 = smov 0  }
  0x2c   :  { %s5495_s24 = smov 0   ;;  %s5497_s2 = smov 0  }
  0x2d LB: > { %s6641_s22 = sld [smem:[#allocation30_spill]]  ;;  %6643 = sst [smem:[#allocation31_spill]] %s5298_s29  ;;  %s5330_s2 = sphi %s5497_s2, %s52_s2   ;;  %s5326_s24 = sphi %s5495_s24, %s6760_s24   ;;  %s5322_s23 = sphi %s5493_s23, %s6759_s23   ;;  %s5314_s1 = sphi %s5489_s1, %s6757_s1   ;;  %s5310_s21 = sphi %s5487_s21, %s6756_s21   ;;  %s5306_s0 = sphi %s5485_s0, %s6755_s0   ;;  %s5302_s30 = sphi %s5483_s30, %s6754_s30   ;;  %s5298_s29 = sphi %s5481_s29, %s6753_s29   ;;  %s5294_s4 = sphi %s5479_s4, %s6752_s4   ;;  %s5290_s11 = sphi %s5477_s11, %s6751_s11  }
  0x2e   : > { %6642 = sst [smem:[#allocation30_spill]] %s5294_s4  ;;  %s5533_s25 = sadd.s32 4294967295, %s5330_s2  }
  0x2f   : > { %6644 = sst [smem:[#allocation32_spill]] %s5302_s30  ;;  %s4026_s3 = sadd.s32 4294967294, %s5330_s2  }
  0x30   : > { %6645 = sst [smem:[#allocation33_spill]] %s5306_s0  ;;  %s61_s26 = sadd.s32 1, %s5322_s23 }
  0x31   : > { %6646 = sst [smem:[#allocation34_spill]] %s5310_s21  ;;  %s64_s27 = sadd.s32 1, %s5326_s24 }
  0x32   : > { %6647 = sst [smem:[#allocation35_spill]] %s5314_s1  ;;  %p62_p3 = scmp.ge.s32.totalorder %s61_s26, 2 }
  0x33   : > { %6648 = sst [smem:[#allocation36_spill]] %s6641_s22  ;;  %s71_s28 = sadd.s32 1, %s5310_s21 }
  0x34   : > { %6649 = sst [smem:[#allocation37_spill]] %s5322_s23  ;;  %p78_p4 = scmp.ne.s32.totalorder %s5310_s21, %s5306_s0 }
  0x35   : > { %6650 = sst [smem:[#allocation38_spill]] %s5326_s24  ;;  %p79_p5 = scmp.eq.s32.totalorder %s5330_s2, 0 }
  0x36   : > { %6651 = sst [smem:[#allocation39_spill]] %s5330_s2  ;;  %s6763_s26 = smov (%p62_p3, %s61_s26), 0 }
  0x37   : > { %6652 = sst [smem:[#allocation40_spill]] %s5533_s25  ;;  %s6765_s27 = smov (!%p62_p3, %s64_s27), %s5326_s24 }
  0x38   : > { %6653 = sst [smem:[#allocation41_spill]] %s6763_s26  ;;  %p5550_p6 = por %p79_p5, %p78_p4 }
  0x39   : > { %p6565_p7 = scmp.ne.s32.totalorder %s5306_s0, %s5302_s30  ;;  %p66_p8 = scmp.ge.s32.totalorder %s6765_s27, 2 }
  0x3a   : > { %p85_p9 = scmp.eq.s32.totalorder %s5533_s25, 0  ;;  %s146_s19 = ssub.s32 %s5322_s23, %s6763_s26 }
  0x3b   : > { %s149_s18 = sadd.s32 1, %s5298_s29  ;;  %s6767_s27 = smov (%p66_p8, %s6765_s27), 0 }
  0x3c   : > { %6655 = sst [smem:[#allocation42_spill]] %s6767_s27  ;;  %p5567_p10 = por %p85_p9, %p6565_p7 }
  0x3d   : > { %p147_p11 = scmp.eq.s32.totalorder %s146_s19, 0  ;;  %s68_s17 = ssub.s32 %s5326_s24, %s6767_s27 }
  0x3e   : > { %s6656_s16 = scalar_select %p5567_p10, 1, 0 }
  0x3f   : > { %p156_p12 = scmp.ne.s32.totalorder %s5298_s29, %s5294_s4  ;;  %p69_p13 = scmp.eq.s32.totalorder %s68_s17, 0 }
  0x40   : > { %6657 = sst [smem:[#allocation43_spill]] %s6656_s16  ;;  %p162_p0 = scmp.ne.s32.totalorder %s5294_s4, %s5290_s11 }
  0x41   : > { %s5578_s26 = scalar_select %p147_p11, %s5298_s29, %s149_s18  }
  0x42   : > { %s5581_s15 = scalar_select %p69_p13, %s5310_s21, %s71_s28  }
  0x43   : > { %6658 = sst [smem:[#allocation44_spill]] %s5578_s26  ;;  %p5585_p1 = por %p156_p12, %p79_p5 }
  0x44   : > { %6659 = sst [smem:[#allocation45_spill]] %s5581_s15  ;;  %p5591_p2 = por %p162_p0, %p85_p9 }
  0x45   : > { %p566_p3 = scmp.eq.s32.totalorder %s5533_s25, 3  ;;  %p572_p8 = scmp.eq.s32.totalorder %s4026_s3, 3 }
  0x46   : > { %s6661_s6 = scalar_select %p5591_p2, 1, 0 }
  0x47   : > { %p4635_p7 = scmp.lt.s32.totalorder %s5330_s2, 4  ;;  %p5600_p10 = por %p566_p3, %p78_p4 }
  0x48   : > { %6662 = sst [smem:[#allocation46_spill]] %s6661_s6  ;;  %p6665_p11 = scmp.ne.s32.totalorder %s5306_s0, %s5302_s30 }
  0x49   : > { %s6663_s17 = scalar_select %p5600_p10, 1, 0 }
  0x4a   : > { %p5607_p13 = por %p572_p8, %p6665_p11  ;;  %s5612_s19 = sand.u32 1, %s5310_s21  }
  0x4b   : > { %6664 = sst [smem:[#allocation47_spill]] %s6663_s17  ;;  %p5616_p5 = pnand %p4635_p7, %p5550_p6 }
  0x4c   : > { %s6666_s18 = scalar_select %p5607_p13, 1, 0 }
  0x4d   : > { %s6668_s11 = scalar_select %p5616_p5, 1, 0 }
  0x4e   : > { %6667 = sst [smem:[#allocation48_spill]] %s6666_s18  ;;  %s5621_s3 = sand.u32 1, %s5330_s2  }
  0x4f   : > { %s4032_s28 = sshll.u32 %s5612_s19, 3  ;;  %s4191_s27 = sshll.u32 %s5326_s24, 7 }
  0x50   : > { %s6669_s30 = sld [smem:[#allocation58_spill]]  ;;  %s623_s20 = scalar_lea.vmem [#allocation9], %s4032_s28 }
  0x51   : > { %s630_s21 = sshll.u32 %s623_s20, 4  ;;  %p5634_p4 = pnand %p4635_p7, %p5585_p1  ;;  %s5630_s21 = int_to_ptr.vmem [resolvable:$true] %s630_s21 }
  0x52   : > { %s6577_s1 = scalar_lea.sflag [#allocation10], %s5621_s3  ;;  %p6588_p9 = pneg %p5616_p5 }
  0x53   : > { %s6671_s18 = scalar_select %p5634_p4, 1, 0 }
  0x56   : > { %s6670_s17 = smov %s6669_s30  ;;  %s5628_s12 = scalar_lea.hbm %s6669_s30, %s4191_s27 }
  0x57   : > { %s4916_s22 = scalar_lea.hbm %s5628_s12, 128  ;;  %s4921_s26 = scalar_lea.hbm %s6670_s17, 256 }
  0x58   : > { %p4917_p6 = scmp.ne.s32.totalorder %s5628_s12, %s4916_s22  ;;  %p4922_p7 = scmp.lt.u32.totalorder %s5628_s12, %s6670_s17 }
  0x59   : > { %p4923_p1 = scmp.lt.u32.totalorder %s4921_s26, %s4916_s22  ;;  %p4925_p8 = scmp.lt.u32.totalorder %s4916_s22, %s5628_s12 }
  0x5a   : > { %p4919_p12 = pnand %p6588_p9, %p4917_p6 }
  0x5b   : > { %p4924_p3 = por %p4923_p1, %p4922_p7 }
  0x5c   : > { %p4920_p0 = pneg %p4919_p12 }
  0x5d   : > { %p4926_p11 = por %p4925_p8, %p4924_p3 }
  0x5f   : > { %p4927_p13 = pnand %p4926_p11, %p4920_p0 }
  0x61   : > { %4930 = shalt.err (!%p4927_p13)
}
  0x62   : > { %s4931_s13 = scalar_lea.vmem %s5630_s21, 128  ;;  %s5333_s20 = smov [#allocation9]  }
  0x63   : > { %p4932_p6 = scmp.ne.s32.totalorder %s5630_s21, %s4931_s13  ;;  %s4936_s15 = sshll.u32 %s5333_s20, 4  ;;  %s4937_s15 = int_to_ptr.vmem [resolvable:$false] %s4936_s15 }
  0x64   : > { %s4938_s30 = scalar_lea.vmem %s4937_s15, 256  ;;  %p4939_p2 = scmp.lt.s32.totalorder %s5630_s21, %s4937_s15 }
  0x65   : > { %p4934_p12 = pnand %p4932_p6, %p6588_p9  ;;  %p4940_p7 = scmp.lt.s32.totalorder %s4938_s30, %s4931_s13 }
  0x67   : > { %p4935_p10 = pneg %p4934_p12  ;;  %p4941_p1 = por %p4940_p7, %p4939_p2 }
  0x69   : > { %p4942_p3 = pnand %p4941_p1, %p4935_p10 }
  0x6b   : > { %4945 = shalt.err (!%p4942_p3)
}
  0x6c   : > { %s6578_s22 = smov 64   ;;  %s6580_s26 = smov 4  }
  0x6d   : > { %4609 = dma.hbm_to_vmem [thread:$0]  (!%p5616_p5), %s5628_s12, 128, %s5630_s21, %s6577_s1, %s6578_s22, %s6578_s22, %s6580_s26  }
  0x6e   : > { %p4046_p10 = scmp.ge.s32.totalorder %s5330_s2, 1  ;;  %p836_p2 = scmp.lt.s32.totalorder %s5330_s2, 5 }
  0x6f   : > { %s5672_s27 = sand.u32 1, %s5298_s29   ;;  %s5682_s20 = smul.u32 48, %s5322_s23 }
  0x70   : > { %s5675_s28 = smul.u32 3, %s5672_s27  ;;  %p5677_p13 = pnand %p4046_p10, %p836_p2 }
  0x71   : > { %s6674_s5 = sld [smem:[#allocation61_spill]]  ;;  %s6595_s26 = scalar_lea.sflag [#allocation13], %s5621_s3 }
  0x72   : > { %s6672_s13 = scalar_select %p5677_p13, 1, 0 }
  0x73   : > { %s671_s21 = scalar_lea.vmem [#allocation12], %s5675_s28  ;;  %p5699_p8 = pneg %p5634_p4 }
  0x74   : > { %6673 = sst [smem:[#allocation49_spill]] %s6672_s13  ;;  %s678_s1 = sshll.u32 %s671_s21, 4  ;;  %s5691_s1 = int_to_ptr.vmem [resolvable:$true] %s678_s1 }
  0x77   : > { %s5688_s12 = scalar_lea.hbm %s6674_s5, %s5682_s20  ;;  %s4951_s2 = scalar_lea.hbm %s6674_s5, 96 }
  0x78   : > { %s4946_s17 = scalar_lea.hbm %s5688_s12, 48  ;;  %p4952_p12 = scmp.lt.u32.totalorder %s5688_s12, %s6674_s5 }
  0x79   : > { %p4947_p0 = scmp.ne.s32.totalorder %s5688_s12, %s4946_s17  ;;  %p4953_p7 = scmp.lt.u32.totalorder %s4951_s2, %s4946_s17 }
  0x7a   : > { %p4955_p3 = scmp.lt.u32.totalorder %s4946_s17, %s5688_s12 }
  0x7b   : > { %p4949_p11 = pnand %p5699_p8, %p4947_p0  ;;  %p4954_p1 = por %p4953_p7, %p4952_p12 }
  0x7d   : > { %p4950_p6 = pneg %p4949_p11  ;;  %p4956_p10 = por %p4955_p3, %p4954_p1 }
  0x7f   : > { %p4957_p2 = pnand %p4956_p10, %p4950_p6 }
  0x81   : > { %4960 = shalt.err (!%p4957_p2)
}
  0x82   : > { %s4961_s22 = scalar_lea.vmem %s5691_s1, 48  ;;  %s5336_s15 = smov [#allocation12]  }
  0x83   : > { %p4962_p0 = scmp.ne.s32.totalorder %s5691_s1, %s4961_s22  ;;  %s4966_s30 = sshll.u32 %s5336_s15, 4  ;;  %s4967_s30 = int_to_ptr.vmem [resolvable:$false] %s4966_s30 }
  0x84   : > { %s4968_s6 = scalar_lea.vmem %s4967_s30, 96  ;;  %p4969_p13 = scmp.lt.s32.totalorder %s5691_s1, %s4967_s30 }
  0x85   : > { %p4964_p11 = pnand %p4962_p0, %p5699_p8  ;;  %p4970_p5 = scmp.lt.s32.totalorder %s4968_s6, %s4961_s22 }
  0x87   : > { %p4965_p9 = pneg %p4964_p11  ;;  %p4971_p12 = por %p4970_p5, %p4969_p13 }
  0x89   : > { %p4972_p7 = pnand %p4971_p12, %p4965_p9 }
  0x8b   : > { %4975 = shalt.err (!%p4972_p7)
}
  0x8c   : > { %s6596_s2 = smov 16   ;;  %s6598_s17 = smov 1  }
  0x8d   : > { %4615 = dma.hbm_to_vmem [thread:$0]  (!%p5634_p4), %s5688_s12, 48, %s5691_s1, %s6595_s26, %s6596_s2, %s6596_s2, %s6598_s17  }
  0x8e   : > { %s4192_s22 = sshll.u32 %s5322_s23, 8  ;;  %s6676_s8 = sld [smem:[#allocation64_spill]] }
  0x8f   : > { %s6677_s6 = sshll.u32 %s5672_s27, 4  ;;  %s6602_s25 = scalar_lea.sflag [#allocation16], %s5621_s3 }
  0x90   : > { %s721_s5 = scalar_lea.vmem [#allocation15], %s6677_s6 }
  0x91   : > { %s728_s4 = sshll.u32 %s721_s5, 4  ;;  %s5737_s4 = int_to_ptr.vmem [resolvable:$true] %s728_s4 }
  0x94   : > { %s5733_s30 = scalar_lea.hbm %s6676_s8, %s4192_s22  ;;  %s4981_s21 = scalar_lea.hbm %s6676_s8, 512 }
  0x95   : > { %s4976_s16 = scalar_lea.hbm %s5733_s30, 256  ;;  %p4982_p6 = scmp.lt.u32.totalorder %s5733_s30, %s6676_s8 }
  0x96   : > { %p4977_p5 = scmp.ne.s32.totalorder %s5733_s30, %s4976_s16  ;;  %p4983_p1 = scmp.lt.u32.totalorder %s4981_s21, %s4976_s16 }
  0x97   : > { %p4985_p10 = scmp.lt.u32.totalorder %s4976_s16, %s5733_s30 }
  0x98   : > { %p4979_p9 = pnand %p4977_p5, %p5699_p8  ;;  %p4984_p3 = por %p4983_p1, %p4982_p6 }
  0x9a   : > { %p4980_p13 = pneg %p4979_p9  ;;  %p4986_p2 = por %p4985_p10, %p4984_p3 }
  0x9c   : > { %p4987_p0 = pnand %p4986_p2, %p4980_p13 }
  0x9e   : > { %4990 = shalt.err (!%p4987_p0)
}
  0x9f   : > { %s4991_s5 = scalar_lea.vmem %s5737_s4, 256  ;;  %s5339_s6 = smov [#allocation15]  }
  0xa0   : > { %p4992_p11 = scmp.ne.s32.totalorder %s5737_s4, %s4991_s5  ;;  %s4996_s1 = sshll.u32 %s5339_s6, 4  ;;  %s4997_s1 = int_to_ptr.vmem [resolvable:$false] %s4996_s1 }
  0xa1   : > { %s4998_s26 = scalar_lea.vmem %s4997_s1, 512  ;;  %p4999_p5 = scmp.lt.s32.totalorder %s5737_s4, %s4997_s1 }
  0xa2   : > { %p4994_p12 = pnand %p4992_p11, %p5699_p8  ;;  %p5000_p9 = scmp.lt.s32.totalorder %s4998_s26, %s4991_s5 }
  0xa4   : > { %p4995_p7 = pneg %p4994_p12  ;;  %p5001_p6 = por %p5000_p9, %p4999_p5 }
  0xa6   : > { %p5002_p1 = pnand %p5001_p6, %p4995_p7 }
  0xa8   : > { %5005 = shalt.err (!%p5002_p1)
}
  0xa9   : > { %s6678_s16 = smov 4   ;;  %s6679_s12 = smov 64  }
  0xaa   : > { %4621 = dma.hbm_to_vmem [thread:$0]  (!%p5634_p4), %s5733_s30, 256, %s5737_s4, %s6602_s25, %s6679_s12, %s6679_s12, %s6678_s16  }
  0xab   : > { %s6680_s14 = sld [smem:[#allocation70_spill]]  ;;  %s6681_s6 = sshll.u32 %s5672_s27, 4 }
  0xac   : > { %s801_s1 = scalar_lea.vmem [#allocation20], %s6681_s6  ;;  %s4577_s2 = smul.u32 48, %s5672_s27 }
  0xad   : > { %s808_s26 = sshll.u32 %s801_s1, 4  ;;  %s4578_s17 = smul.u32 768, %s5322_s23  ;;  %s5775_s26 = int_to_ptr.vmem [resolvable:$true] %s808_s26 }
  0xae   : > { %s6682_s10 = sld [smem:[#allocation66_spill]]  ;;  %s759_s4 = scalar_lea.vmem [#allocation18], %s4577_s2 }
  0xaf   : > { %s766_s30 = sshll.u32 %s759_s4, 4  ;;  %s5784_s30 = int_to_ptr.vmem [resolvable:$true] %s766_s30 }
  0xb1   : > { %s5771_s5 = scalar_lea.hbm %s6680_s14, %s4192_s22  ;;  %s6605_s22 = scalar_lea.sflag [#allocation19], %s5621_s3 }
  0xb4   : > { %s5782_s13 = scalar_lea.hbm %s6682_s10, %s4578_s17  ;;  %s5011_s8 = scalar_lea.hbm %s6682_s10, 1536 }
  0xb5   : > { %s5006_s21 = scalar_lea.hbm %s5782_s13, 768  ;;  %p5012_p2 = scmp.lt.u32.totalorder %s5782_s13, %s6682_s10 }
  0xb6   : > { %p5007_p13 = scmp.ne.s32.totalorder %s5782_s13, %s5006_s21  ;;  %p5013_p0 = scmp.lt.u32.totalorder %s5011_s8, %s5006_s21 }
  0xb7   : > { %p5015_p12 = scmp.lt.u32.totalorder %s5006_s21, %s5782_s13 }
  0xb8   : > { %p5009_p3 = pnand %p5007_p13, %p5699_p8  ;;  %p5014_p11 = por %p5013_p0, %p5012_p2 }
  0xba   : > { %p5010_p10 = pneg %p5009_p3  ;;  %p5016_p7 = por %p5015_p12, %p5014_p11 }
  0xbc   : > { %p5017_p5 = pnand %p5016_p7, %p5010_p10 }
  0xbe   : > { %5020 = shalt.err (!%p5017_p5)
}
  0xbf   : > { %s5021_s2 = scalar_lea.vmem %s5784_s30, 768  ;;  %s5340_s1 = smov [#allocation18]  }
  0xc0   : > { %p5022_p9 = scmp.ne.s32.totalorder %s5784_s30, %s5021_s2  ;;  %s5026_s4 = sshll.u32 %s5340_s1, 4  ;;  %s5027_s4 = int_to_ptr.vmem [resolvable:$false] %s5026_s4 }
  0xc1   : > { %s5028_s15 = scalar_lea.vmem %s5027_s4, 1536  ;;  %p5029_p13 = scmp.lt.s32.totalorder %s5784_s30, %s5027_s4 }
  0xc2   : > { %p5024_p6 = pnand %p5022_p9, %p5699_p8  ;;  %p5030_p3 = scmp.lt.s32.totalorder %s5028_s15, %s5021_s2 }
  0xc4   : > { %p5025_p1 = pneg %p5024_p6  ;;  %p5031_p2 = por %p5030_p3, %p5029_p13 }
  0xc6   : > { %p5032_p0 = pnand %p5031_p2, %p5025_p1 }
  0xc8   : > { %5035 = shalt.err (!%p5032_p0)
}
  0xc9   : > { %4627 = dma.hbm_to_vmem [thread:$0]  (!%p5634_p4), %s5782_s13, 768, %s5784_s30, %s6605_s22, %s6679_s12, %s6679_s12, %s6678_s16  }
  0xca   : > { %s4029_s21 = sshll.u32 %s5612_s19, 4  ;;  %s4190_s6 = sshll.u32 %s5326_s24, 8 }
  0xcb   : > { %s6683_s17 = sld [smem:[#allocation57_spill]]  ;;  %s602_s1 = scalar_lea.vmem [#allocation6], %s4029_s21 }
  0xcc   : > { %s609_s4 = sshll.u32 %s602_s1, 4  ;;  %s599_s15 = scalar_lea.sflag [#allocation7], %s5612_s19  ;;  %s5820_s4 = int_to_ptr.vmem [resolvable:$true] %s609_s4 }
  0xcd   : > { %p6684_p11 = scmp.ne.s32.totalorder %s6668_s11, 0 }
  0xcf   : > { %p6685_p12 = pneg %p6684_p11 }
  0xd1   : > { %s5818_s2 = scalar_lea.hbm %s6683_s17, %s4190_s6  ;;  %s5041_s6 = scalar_lea.hbm %s6683_s17, 512 }
  0xd2   : > { %s5036_s25 = scalar_lea.hbm %s5818_s2, 256  ;;  %p5042_p9 = scmp.lt.u32.totalorder %s5818_s2, %s6683_s17 }
  0xd3   : > { %p5037_p10 = scmp.ne.s32.totalorder %s5818_s2, %s5036_s25  ;;  %p5043_p6 = scmp.lt.u32.totalorder %s5041_s6, %s5036_s25 }
  0xd4   : > { %p5045_p13 = scmp.lt.u32.totalorder %s5036_s25, %s5818_s2 }
  0xd5   : > { %p5039_p7 = pnand %p5037_p10, %p6685_p12  ;;  %p5044_p1 = por %p5043_p6, %p5042_p9 }
  0xd7   : > { %p5040_p5 = pneg %p5039_p7  ;;  %p5046_p3 = por %p5045_p13, %p5044_p1 }
  0xd9   : > { %p5047_p2 = pnand %p5046_p3, %p5040_p5 }
  0xdb   : > { %5050 = shalt.err (!%p5047_p2)
}
  0xdc   : > { %s5051_s21 = scalar_lea.vmem %s5820_s4, 256  ;;  %p6686_p10 = pmov %p6685_p12 }
  0xdd   : > { %p5052_p0 = scmp.ne.s32.totalorder %s5820_s4, %s5051_s21  ;;  %s5341_s1 = smov [#allocation6]  }
  0xde   : > { %s5056_s13 = sshll.u32 %s5341_s1, 4  ;;  %s5057_s13 = int_to_ptr.vmem [resolvable:$false] %s5056_s13 }
  0xdf   : > { %p5054_p12 = pnand %p5052_p0, %p6686_p10  ;;  %s5058_s30 = scalar_lea.vmem %s5057_s13, 512 }
  0xe0   : > { %p5059_p4 = scmp.lt.s32.totalorder %s5820_s4, %s5057_s13  ;;  %p5060_p9 = scmp.lt.s32.totalorder %s5058_s30, %s5051_s21 }
  0xe1   : > { %p5055_p7 = pneg %p5054_p12 }
  0xe2   : > { %p5061_p6 = por %p5060_p9, %p5059_p4 }
  0xe4   : > { %p5062_p1 = pnand %p5061_p6, %p5055_p7 }
  0xe6   : > { %5065 = shalt.err (!%p5062_p1)
}
  0xe7   : > { %s5342_s25 = smov 128   ;;  %s5343_s6 = smov 8  }
  0xe8   : > { %4606 = dma.hbm_to_vmem [thread:$0]  (!%p6684_p11), %s5818_s2, 256, %s5820_s4, %s599_s15, %s5342_s25, %s5342_s25, %s5343_s6  }
  0xe9   : > { %s6687_s1 = sld [smem:[#allocation60_spill]]  ;;  %s650_s21 = scalar_lea.vmem [#allocation11], %s5675_s28 }
  0xea   : > { %s657_s30 = sshll.u32 %s650_s21, 4  ;;  %s5855_s30 = int_to_ptr.vmem [resolvable:$true] %s657_s30 }
  0xef   : > { %s6688_s22 = smov %s6687_s1  ;;  %s5852_s13 = scalar_lea.hbm %s6687_s1, %s5682_s20 }
  0xf0   : > { %s5066_s10 = scalar_lea.hbm %s5852_s13, 48  ;;  %s5071_s2 = scalar_lea.hbm %s6688_s22, 96 }
  0xf1   : > { %p5067_p4 = scmp.ne.s32.totalorder %s5852_s13, %s5066_s10  ;;  %p5072_p11 = scmp.lt.u32.totalorder %s5852_s13, %s6688_s22 }
  0xf2   : > { %p5073_p3 = scmp.lt.u32.totalorder %s5071_s2, %s5066_s10  ;;  %p5075_p0 = scmp.lt.u32.totalorder %s5066_s10, %s5852_s13 }
  0xf3   : > { %p5069_p5 = pnand %p5067_p4, %p5699_p8 }
  0xf4   : > { %p5074_p2 = por %p5073_p3, %p5072_p11 }
  0xf5   : > { %p5070_p13 = pneg %p5069_p5 }
  0xf6   : > { %p5076_p10 = por %p5075_p0, %p5074_p2 }
  0xf8   : > { %p5077_p12 = pnand %p5076_p10, %p5070_p13 }
  0xfa   : > { %5080 = shalt.err (!%p5077_p12)
}
  0xfb   : > { %s5081_s25 = scalar_lea.vmem %s5855_s30, 48  ;;  %s5344_s6 = smov [#allocation11]  }
  0xfc   : > { %p5082_p7 = scmp.ne.s32.totalorder %s5855_s30, %s5081_s25  ;;  %s5086_s8 = sshll.u32 %s5344_s6, 4  ;;  %s5087_s8 = int_to_ptr.vmem [resolvable:$false] %s5086_s8 }
  0xfd   : > { %s5088_s0 = scalar_lea.vmem %s5087_s8, 96  ;;  %p5089_p1 = scmp.lt.s32.totalorder %s5855_s30, %s5087_s8 }
  0xfe   : > { %p5084_p9 = pnand %p5082_p7, %p5699_p8  ;;  %p5090_p4 = scmp.lt.s32.totalorder %s5088_s0, %s5081_s25 }
 0x100   : > { %p5085_p6 = pneg %p5084_p9  ;;  %p5091_p5 = por %p5090_p4, %p5089_p1 }
 0x102   : > { %p5092_p11 = pnand %p5091_p5, %p5085_p6 }
 0x104   : > { %5095 = shalt.err (!%p5092_p11)
}
 0x105   : > { %p6689_p13 = scmp.ne.s32.totalorder %s6671_s18, 0  ;;  %s6690_s10 = smov 1  }
 0x106   : > { %s6691_s1 = smov 16   ;;  %s6692_s21 = scalar_lea.sflag [#allocation10], %s5621_s3 }
 0x107   : > { %4612 = dma.hbm_to_vmem [thread:$0]  (!%p6689_p13), %s5852_s13, 48, %s5855_s30, %s6692_s21, %s6691_s1, %s6691_s1, %s6690_s10  }
 0x108   : > { %s6693_s7 = sld [smem:[#allocation63_spill]]  ;;  %s700_s4 = scalar_lea.vmem [#allocation14], %s5675_s28 }
 0x109   : > { %s707_s15 = sshll.u32 %s700_s4, 4  ;;  %s5890_s15 = int_to_ptr.vmem [resolvable:$true] %s707_s15 }
 0x10e   : > { %s5887_s2 = scalar_lea.hbm %s6693_s7, %s5682_s20  ;;  %s5101_s30 = scalar_lea.hbm %s6693_s7, 96 }
 0x10f   : > { %s5096_s25 = scalar_lea.hbm %s5887_s2, 48  ;;  %p5102_p10 = scmp.lt.u32.totalorder %s5887_s2, %s6693_s7 }
 0x110   : > { %p5097_p3 = scmp.ne.s32.totalorder %s5887_s2, %s5096_s25  ;;  %p5103_p12 = scmp.lt.u32.totalorder %s5101_s30, %s5096_s25 }
 0x111   : > { %p5105_p9 = scmp.lt.u32.totalorder %s5096_s25, %s5887_s2 }
 0x112   : > { %p5099_p2 = pnand %p5097_p3, %p5699_p8  ;;  %p5104_p7 = por %p5103_p12, %p5102_p10 }
 0x114   : > { %p5100_p0 = pneg %p5099_p2  ;;  %p5106_p6 = por %p5105_p9, %p5104_p7 }
 0x116   : > { %p5107_p1 = pnand %p5106_p6, %p5100_p0 }
 0x118   : > { %5110 = shalt.err (!%p5107_p1)
}
 0x119   : > { %s5111_s28 = scalar_lea.vmem %s5890_s15, 48  ;;  %s5345_s0 = smov [#allocation14]  }
 0x11a   : > { %p5112_p4 = scmp.ne.s32.totalorder %s5890_s15, %s5111_s28  ;;  %s5116_s21 = sshll.u32 %s5345_s0, 4  ;;  %s5117_s21 = int_to_ptr.vmem [resolvable:$false] %s5116_s21 }
 0x11b   : > { %s5118_s19 = scalar_lea.vmem %s5117_s21, 96  ;;  %p5119_p3 = scmp.lt.s32.totalorder %s5890_s15, %s5117_s21 }
 0x11c   : > { %p5114_p5 = pnand %p5112_p4, %p5699_p8  ;;  %p5120_p2 = scmp.lt.s32.totalorder %s5118_s19, %s5111_s28 }
 0x11e   : > { %p5115_p11 = pneg %p5114_p5  ;;  %p5121_p10 = por %p5120_p2, %p5119_p3 }
 0x120   : > { %p5122_p12 = pnand %p5121_p10, %p5115_p11 }
 0x122   : > { %5125 = shalt.err (!%p5122_p12)
}
 0x123   : > { %s6694_s11 = scalar_lea.sflag [#allocation13], %s5621_s3  ;;  %s4041_s4 = sshll.u32 %s5322_s23, 4 }
 0x124   : > { %4618 = dma.hbm_to_vmem [thread:$0]  (!%p6689_p13), %s5887_s2, 48, %s5890_s15, %s6694_s11, %s6691_s1, %s6691_s1, %s6690_s10  }
 0x125   : > { %s741_s25 = scalar_lea.vmem [#allocation17], %s5672_s27  ;;  %s6695_s9 = sld [smem:[#allocation65_spill]] }
 0x126   : > { %s748_s6 = sshll.u32 %s741_s25, 4  ;;  %s749_s6 = int_to_ptr.vmem [resolvable:$true] %s748_s6 }
 0x12b   : > { %s746_s8 = scalar_lea.hbm %s6695_s9, %s4041_s4  ;;  %s5131_s21 = scalar_lea.hbm %s6695_s9, 32 }
 0x12c   : > { %s5126_s20 = scalar_lea.hbm %s746_s8, 16  ;;  %p5132_p6 = scmp.lt.u32.totalorder %s746_s8, %s6695_s9 }
 0x12d   : > { %p5127_p0 = scmp.ne.s32.totalorder %s746_s8, %s5126_s20  ;;  %p5133_p1 = scmp.lt.u32.totalorder %s5131_s21, %s5126_s20 }
 0x12e   : > { %p5135_p5 = scmp.lt.u32.totalorder %s5126_s20, %s746_s8 }
 0x12f   : > { %p5129_p7 = pnand %p5127_p0, %p5699_p8  ;;  %p5134_p4 = por %p5133_p1, %p5132_p6 }
 0x131   : > { %p5130_p9 = pneg %p5129_p7  ;;  %p5136_p11 = por %p5135_p5, %p5134_p4 }
 0x133   : > { %p5137_p3 = pnand %p5136_p11, %p5130_p9 }
 0x135   : > { %5140 = shalt.err (!%p5137_p3)
}
 0x136   : > { %s5141_s27 = scalar_lea.vmem %s749_s6, 16  ;;  %s5346_s10 = smov [#allocation17]  }
 0x137   : > { %p5142_p2 = scmp.ne.s32.totalorder %s749_s6, %s5141_s27  ;;  %s5146_s1 = sshll.u32 %s5346_s10, 4  ;;  %s5147_s1 = int_to_ptr.vmem [resolvable:$false] %s5146_s1 }
 0x138   : > { %s5148_s2 = scalar_lea.vmem %s5147_s1, 32  ;;  %p5149_p0 = scmp.lt.s32.totalorder %s749_s6, %s5147_s1 }
 0x139   : > { %p5144_p10 = pnand %p5142_p2, %p5699_p8  ;;  %p5150_p7 = scmp.lt.s32.totalorder %s5148_s2, %s5141_s27 }
 0x13b   : > { %p5145_p12 = pneg %p5144_p10  ;;  %p5151_p13 = por %p5150_p7, %p5149_p0 }
 0x13d   : > { %p5152_p1 = pnand %p5151_p13, %p5145_p12 }
 0x13f   : > { %5155 = shalt.err (!%p5152_p1)
}
 0x140   : > { %p6696_p6 = scmp.ne.s32.totalorder %s6671_s18, 0  ;;  %s6697_s7 = scalar_lea.sflag [#allocation16], %s5621_s3 }
 0x141   : > { %s5156_s15 = scalar_lea.hbm %s5771_s5, 256  ;;  %s5161_s25 = scalar_lea.hbm %s6680_s14, 512 }
 0x142   : > { %4624 = dma.hbm_to_vmem [thread:$0]  (!%p6696_p6), %s746_s8, 16, %s749_s6, %s6697_s7  }
 0x143   : > { %p5157_p9 = scmp.ne.s32.totalorder %s5771_s5, %s5156_s15  ;;  %p5162_p13 = scmp.lt.u32.totalorder %s5771_s5, %s6680_s14 }
 0x144   : > { %p5163_p11 = scmp.lt.u32.totalorder %s5161_s25, %s5156_s15  ;;  %p5165_p2 = scmp.lt.u32.totalorder %s5156_s15, %s5771_s5 }
 0x145   : > { %p5159_p4 = pnand %p5157_p9, %p5699_p8 }
 0x146   : > { %p5164_p3 = por %p5163_p11, %p5162_p13 }
 0x147   : > { %p5160_p5 = pneg %p5159_p4 }
 0x148   : > { %p5166_p10 = por %p5165_p2, %p5164_p3 }
 0x14a   : > { %p5167_p12 = pnand %p5166_p10, %p5160_p5 }
 0x14c   : > { %5170 = shalt.err (!%p5167_p12)
}
 0x14d   : > { %s5171_s6 = scalar_lea.vmem %s5775_s26, 256  ;;  %s5347_s8 = smov [#allocation20]  }
 0x14e   : > { %p5172_p0 = scmp.ne.s32.totalorder %s5775_s26, %s5171_s6  ;;  %s5176_s20 = sshll.u32 %s5347_s8, 4  ;;  %s5177_s20 = int_to_ptr.vmem [resolvable:$false] %s5176_s20 }
 0x14f   : > { %s5178_s28 = scalar_lea.vmem %s5177_s20, 512  ;;  %p5179_p9 = scmp.lt.s32.totalorder %s5775_s26, %s5177_s20 }
 0x150   : > { %p5174_p7 = pnand %p5172_p0, %p5699_p8  ;;  %p5180_p4 = scmp.lt.s32.totalorder %s5178_s28, %s5171_s6 }
 0x152   : > { %p5175_p1 = pneg %p5174_p7  ;;  %p5181_p13 = por %p5180_p4, %p5179_p9 }
 0x154   : > { %p5182_p11 = pnand %p5181_p13, %p5175_p1 }
 0x156   : > { %5185 = shalt.err (!%p5182_p11)
}
 0x157   : > { %s6698_s0 = scalar_lea.sflag [#allocation19], %s5621_s3  ;;  %s6699_s29 = sld [smem:[#allocation49_spill]] }
 0x158   : > { %4630 = dma.hbm_to_vmem [thread:$0]  (!%p6696_p6), %s5771_s5, 256, %s5775_s26, %s6698_s0, %s6679_s12, %s6679_s12, %s6678_s16  }
 0x15d   : > { %p6700_p8 = scmp.ne.s32.totalorder %s6699_s29, 0 }
 0x15f   : > { %840 = sbr.rel (%p6700_p8) target bundleno = 6661 (0x1a05), region = 96 }
 0x166   : > { %s6701_s21 = sld [smem:[#allocation33_spill]]  ;;  %s6702_s19 = sld [smem:[#allocation43_spill]] }
 0x16c   : > { %s5966_s27 = sand.u32 1, %s6701_s21   ;;  %p6703_p5 = scmp.ne.s32.totalorder %s6702_s19, 0 }
 0x16d   : > { %s4047_s10 = sshll.u32 %s5966_s27, 4  ;;  %s843_s1 = scalar_lea.sflag [#allocation7], %s5966_s27 }
 0x16e   : > { %s5970_s18 = scalar_lea.vmem [#allocation6], %s4047_s10 }
 0x16f   : > { %5261 = dma.done.wait (%p6703_p5), %s843_s1, 256  }
 0x170   : > { %5263 = vsyncadd (%p6703_p5), %s843_s1, 4294967040  ;;  %s6704_s3 = sld [smem:[#allocation40_spill]]  ;;  %s6607_s12 = sshll.u32 %s5966_s27, 3 }
 0x171   : > { %s5980_s26 = scalar_lea.vmem [#allocation9], %s6607_s12 }
 0x172   : > { %6705 = sst [smem:[#allocation50_spill]] %s5980_s26 }
 0x176   : > { %s851_s16 = sand.u32 1, %s6704_s3  }
 0x177   : > { %s852_s5 = scalar_lea.sflag [#allocation10], %s851_s16 }
 0x178   : > { %5265 = dma.done.wait (%p6703_p5), %s852_s5, 128  }
 0x179   : > { %5267 = vsyncadd (%p6703_p5), %s852_s5, 4294967168  ;;  %s6706_s2 = sld [smem:[#allocation30_spill]] }
 0x17a   : > { %s6707_s7 = sld [smem:[#allocation46_spill]] }
 0x17f   : > { %s5987_s15 = sand.u32 1, %s6706_s2  }
 0x180   : > { %6708 = sst [smem:[#allocation51_spill]] %s5987_s15  ;;  %s4579_s11 = smul.u32 3, %s5987_s15 }
 0x181   : > { %p6709_p6 = scmp.ne.s32.totalorder %s6707_s7, 0 }
 0x182   : > { %s5990_s4 = scalar_lea.vmem [#allocation11], %s4579_s11 }
 0x183   : > { %5269 = dma.done.wait (%p6709_p6), %s852_s5, 48  }
 0x184   : > { %5271 = vsyncadd (%p6709_p6), %s852_s5, 4294967248  ;;  %s870_s25 = scalar_lea.sflag [#allocation13], %s851_s16  ;;  %s5996_s13 = scalar_lea.vmem [#allocation12], %s4579_s11 }
 0x185   : > { %5273 = dma.done.wait (%p6709_p6), %s870_s25, 96  }
 0x186   : > { %5275 = vsyncadd (%p6709_p6), %s870_s25, 4294967200  ;;  %s4049_s30 = sshll.u32 %s5987_s15, 4  ;;  %s6003_s6 = scalar_lea.vmem [#allocation14], %s4579_s11 }
 0x187   : > { %s888_s8 = scalar_lea.sflag [#allocation16], %s851_s16  ;;  %s6005_s20 = scalar_lea.vmem [#allocation15], %s4049_s30 }
 0x188   : > { %6710 = sst [smem:[#allocation52_spill]] %s6005_s20 }
 0x189   : > { %5277 = dma.done.wait (%p6709_p6), %s888_s8, 272  }
 0x18a   : > { %5279 = vsyncadd (%p6709_p6), %s888_s8, 4294967024  ;;  %s4580_s28 = smul.u32 48, %s5987_s15  ;;  %s905_s29 = scalar_lea.sflag [#allocation19], %s851_s16 }
 0x18c   : > { %s6013_s21 = scalar_lea.vmem [#allocation18], %s4580_s28 }
 0x18d   : > { %6711 = sst [smem:[#allocation53_spill]] %s6013_s21 }
 0x18e   : > { %5281 = dma.done.wait (%p6709_p6), %s905_s29, 1024  }
 0x18f   : > { %5283 = vsyncadd (%p6709_p6), %s905_s29, 4294966272  ;;  %s6712_s19 = sld [smem:[#allocation36_spill]]  ;;  %s6713_s10 = sld [smem:[#allocation35_spill]] }
 0x190   : > { %s6716_s29 = sld [smem:[#allocation68_spill]]  ;;  %s6718_s14 = sld [smem:[#allocation62_spill]] }
 0x191   : > { %s6719_s22 = sld [smem:[#allocation69_spill]]  ;;  %s6720_s5 = sld [smem:[#allocation67_spill]] }
 0x192   : > { %s6721_s15 = sld [smem:[#allocation71_spill]]  ;;  %s6724_s17 = sshll.u32 %s5966_s27, 3 }
 0x193   : > { %s6071_s23 = scalar_lea.vmem [#allocation21], %s6724_s17 }
 0x195   : > { %p1044_p3 = scmp.lt.s32.totalorder %s6712_s19, 1  ;;  %p1047_p2 = scmp.lt.s32.totalorder %s6713_s10, 1 }
 0x196   : > { %p4057_p10 = scmp.ne.s32.totalorder %s6713_s10, 0 }
 0x197   : > { %s6769_s19 = smov (!%p1044_p3, %s6712_s19), 1  ;;  %v1081_v0 = vld [vmem:[%s5970_s18] sm:$0xff] (!%p4057_p10)  ;;  %vm1083_vm0 = vcmask (!%p4057_p10), 261120   ;;  %v1082_v1 = vld [vmem:[%s5970_s18 + $0x8] sm:$0xff] (!%p4057_p10) }
 0x198   : > { %6714 = sst [smem:[#allocation54_spill]] %s6769_s19  ;;  %1084 = vst.msk [vmem:[#allocation2] sm:$0xff] (!%p4057_p10), %vm1083_vm0, %v1081_v0  ;;  %1085 = vst.msk [vmem:[#allocation2 + $0x8] sm:$0xff] (!%p4057_p10), %vm1083_vm0, %v1082_v1 }
 0x199   : > { %s6025_s1 = scalar_select %p1047_p2, %s6713_s10, 1 }
 0x19b   : > { %s4581_s7 = smul.u32 48, %s6025_s1  ;;  %s4194_s11 = sshll.u32 %s6025_s1, 4 }
 0x19c   : > { %s4582_s25 = smul.u32 3, %s6025_s1  ;;  %s6037_s0 = scalar_lea.vmem %s6716_s29, %s4194_s11 }
 0x19d   : > { %6717 = sst [smem:[#allocation55_spill]] %s6037_s0  ;;  %s6042_s3 = scalar_lea.vmem %s6718_s14, %s4581_s7 }
 0x19e   : > { %s1063_s24 = scalar_lea.vmem %s6719_s22, %s6025_s1  ;;  %s6051_s2 = scalar_lea.vmem %s6720_s5, %s4582_s25 }
 0x19f   : > { %s1066_s8 = scalar_lea.vmem %s6721_s15, %s6025_s1  ;;  %s4195_s11 = sshll.u32 %s6025_s1, 5 }
 0x1a0   : > { %s6722_s0 = sld [smem:[#allocation73_spill]]  ;;  %s6723_s7 = sld [smem:[#allocation72_spill]] }
 0x1a1   : > { %s6067_s22 = scalar_lea.vmem [#allocation20], %s4049_s30  ;;  %1080 = sbr.rel (%p4057_p10) target bundleno = 424 (0x1a8), region = 136 }
 0x1a6   : > { %s1074_s9 = scalar_lea.vmem %s6722_s0, %s6025_s1  ;;  %s6065_s20 = scalar_lea.vmem %s6723_s7, %s4195_s11 }
 0x1a8 PF: > { %v6076_v2 = vld [vmem:[#allocation2] sm:$0xff]  ;;  %vm1107_vm1 = vcmask 261120   ;;  %v6078_v3 = vld [vmem:[#allocation2 + $0x8] sm:$0xff]  ;;  %v5348_v17 = vmov 0.0   ;;  %vm5349_vm2 = vmmov 0   ;;  %v4805_v35 = vld [vmem:[%s6042_s3 + $0x10] sm:$0xff]  }
 0x1a9   : > { %v1108_v4 = vsel %vm1107_vm1, %v6076_v2, 0.0  ;;  %v1111_v5 = vsel %vm1107_vm1, %v6078_v3, 0.0  ;;  %v4803_v16 = vld [vmem:[%s6042_s3] sm:$0xff]   ;;  %4295 = vmatprep.subr.bf16.mxu0 %v5348_v17  ;;  %v4804_v18 = vld [vmem:[%s6042_s3 + $0x8] sm:$0xff]   ;;  %4299 = vmatprep.mubr.msk.bf16.mxu0 %vm5349_vm2, %v5348_v17  ;;  %v4058_v27 = vld [vmem:[%s5990_s4] ss:$0 sm:$0xff] }
 0x1aa   : > { %1109 = vadd.xlane.f32.xlu0 %v1108_v4  ;;  %4296 = vmatpush3.bf16.msra.mxu0 %v4803_v16  ;;  %v4059_v31 = vld [vmem:[%s5996_s13] ss:$0 sm:$0xff]  ;;  %v4807_v38 = vld [vmem:[%s6042_s3 + $0x20] sm:$0xff]   ;;  %v4808_v39 = vld [vmem:[%s6042_s3 + $0x28] sm:$0xff]   ;;  %vm1351_vm3 = vcmask 64512   ;;  %s5350_s18 = smov 120   ;;  %v1090_v16 = vlaneseq }
 0x1ab   : > { %4297 = vmatprep.subr.bf16.mxu0 %v5348_v17  ;;  %v4806_v37 = vld [vmem:[%s6042_s3 + $0x18] sm:$0xff]   ;;  %vm6123_vm4 = vmpackc.low %vm1351_vm3, %vm1351_vm3  ;;  %s5351_s26 = smov 112   ;;  %s6727_s15 = sld [smem:[#allocation36_spill]]  ;;  %vm1439_vm10 = vcmask 130048   ;;  %vm1755_vm11 = vcmask 130112   ;;  %vm1966_vm12 = vcmask 195712  }
 0x1ac   : > { %v4060_v40 = vld [vmem:[%s6003_s6] ss:$0 sm:$0xff]  ;;  %v4069_v46 = vld [vmem:[%s6003_s6 + $0x1] ss:$0 sm:$0xff]  ;;  %v4078_v56 = vld [vmem:[%s6003_s6 + $0x2] ss:$0 sm:$0xff] }
 0x1ad   : > { %s5353_s6 = smov 104   ;;  %s5354_s0 = smov 8   ;;  %vm2177_vm13 = vcmask 261312   ;;  %vm3557_vm14 = vcmask 523264  }
 0x1ae   : > { %1112 = vadd.xlane.f32.xlu0 %v1111_v5  ;;  %4298 = vmatpush3.bf16.msra.mxu0 %v4804_v18  ;;  %v1091_v18 = vshrl.u32 %v1090_v16, 7  ;;  %s5355_s21 = smov 16   ;;  %s6728_s19 = sld [smem:[#allocation52_spill]] }
 0x1af   : > { %4303 = vmatprep.subr.bf16.mxu0 %v5348_v17  ;;  %s6729_s10 = sld [smem:[#allocation51_spill]]  ;;  %s5356_s25 = smov 24  }
 0x1b0   : > { %s6731_s16 = sld [smem:[#allocation53_spill]]  ;;  %s6732_s5 = sld [smem:[#allocation50_spill]] }
 0x1b1   : > { %s1097_s30 = sld [smem:[#allocation5 + %s6727_s15]] }
 0x1b2   : > { %s6733_s11 = sld [smem:[#allocation54_spill]]  ;;  %s6734_s14 = sld [smem:[#allocation59_spill]] }
 0x1b5   : > { %s6730_s3 = scalar_lea.vmem [#allocation17], %s6729_s10 }
 0x1b8   : > { %s6735_s12 = scalar_lea.vmem %s6734_s14, %s6733_s11 }
 0x237   : > { %v1110_v6 = vpop.xlane.xlu0 %1109 }
 0x238   : > { %v1115_v7 = vmul.f32 0.03125, %v1110_v6 }
 0x23a   : > { %v1117_v8 = vsub.f32 %v6076_v2, %v1115_v7 }
 0x23b   : > { %v1113_v9 = vpop.xlane.xlu0 %1112 }
 0x23c   : > { %v1116_v10 = vmul.f32 0.03125, %v1113_v9  ;;  %v1119_v11 = vmul.f32 %v1117_v8, %v1117_v8 }
 0x23e   : > { %v1118_v12 = vsub.f32 %v6078_v3, %v1116_v10  ;;  %v1121_v13 = vsel %vm1107_vm1, %v1119_v11, 0.0 }
 0x23f   : > { %1122 = vadd.xlane.f32.xlu1 %v1121_v13 }
 0x240   : > { %v1120_v14 = vmul.f32 %v1118_v12, %v1118_v12 }
 0x242   : > { %v1124_v15 = vsel %vm1107_vm1, %v1120_v14, 0.0 }
 0x243   : > { %1125 = vadd.xlane.f32.xlu1 %v1124_v15 }
 0x2cc   : > { %v1123_v19 = vpop.xlane.xlu1 %1122 }
 0x2cd   : > { %v1127_v20 = vmul.f32 0.03125, %v1123_v19  ;;  %v1092_v19 = vadd.s32 8, %v1091_v18 }
 0x2cf   : > { %v1129_v21 = vadd.f32 1e-05, %v1127_v20  ;;  %v1094_v20 = vand.u32 127, %v1090_v16 }
 0x2d0   : > { %v1126_v22 = vpop.xlane.xlu1 %1125 }
 0x2d1   : > { %4826 = vrsqrt.f32 %v1129_v21  ;;  %v1128_v23 = vmul.f32 0.03125, %v1126_v22  ;;  %v1098_v21 = vstv %s1097_s30  ;;  %vm1096_vm5 = vcmp.le.s32.totalorder %v1094_v20, %v1092_v19 }
 0x2d2   : > { %vm1099_vm6 = vcmp.lt.s32.totalorder %v1094_v20, %v1098_v21  ;;  %vm1095_vm7 = vcmp.le.s32.totalorder %v1094_v20, %v1091_v18  ;;  %v5352_v22 = vmov -1e+30  }
 0x2d3   : > { %v1130_v24 = vadd.f32 1e-05, %v1128_v23  ;;  %vm1101_vm8 = vmand %vm1096_vm5, %vm1099_vm6 }
 0x2d4   : > { %vm1100_vm9 = vmand %vm1095_vm7, %vm1099_vm6  ;;  %v6161_v23 = vsel %vm1101_vm8, 0.0, %v5352_v22 }
 0x2d5   : > { %4828 = vrsqrt.f32 %v1130_v24  ;;  %v6163_v24 = vsel %vm1100_vm9, 0.0, %v5352_v22 }
 0x2db   : > { %v4827_v25 = vpop.eup %4826 }
 0x2dc   : > { %v1133_v26 = vmul.f32 %v4827_v25, %v1117_v8 }
 0x2de   : > { %v1141_v30 = vmul.f32 %v4058_v27, %v1133_v26 }
 0x2df   : > { %v4829_v28 = vpop.eup %4828 }
 0x2e0   : > { %v1134_v29 = vmul.f32 %v4829_v28, %v1118_v12  ;;  %v1149_v33 = vadd.f32 %v4059_v31, %v1141_v30 }
 0x2e2   : > { %v1142_v32 = vmul.f32 %v4058_v27, %v1134_v29 }
 0x2e4   : > { %v1150_v34 = vadd.f32 %v4059_v31, %v1142_v32 }
 0x2e6   : > { %v1151_v36 = vpack.c.bf16 %v1150_v34, %v1149_v33 }
 0x2e8   : > { %4300 = vmatmul.mubr.msk.bf16.vlgmr.msra.gmra.mrb[0].mxu0 %vm1107_vm1, %v1151_v36 }
 0x2e9   : > { %4304 = vmatpush3.bf16.msra.mxu0 %v4805_v35  ;;  %4307 = vmatprep.mubr.msk.bf16.mxu0 %vm5349_vm2, %v5348_v17 }
 0x2ea   : > { %4305 = vmatprep.subr.bf16.mxu0 %v5348_v17 }
 0x2ed   : > { %4306 = vmatpush3.bf16.msra.mxu0 %v4806_v37 }
 0x2ee   : > { %4311 = vmatprep.subr.bf16.mxu0 %v5348_v17 }
 0x2f0   : > { %4308 = vmatmul.mubr.msk.bf16.vlgmr.msra.gmra.mrb[4].mxu0 %vm1107_vm1, %v1151_v36 }
 0x2f1   : > { %4312 = vmatpush3.bf16.msra.mxu0 %v4807_v38  ;;  %4315 = vmatprep.mubr.msk.bf16.mxu0 %vm5349_vm2, %v5348_v17 }
 0x2f2   : > { %4313 = vmatprep.subr.bf16.mxu0 %v5348_v17 }
 0x2f5   : > { %4314 = vmatpush3.bf16.msra.mxu0 %v4808_v39 }
 0x2f8   : > { %4316 = vmatmul.mubr.msk.bf16.vlgmr.msra.gmra.mrb[8].mxu0 %vm1107_vm1, %v1151_v36 }
 0x3bb   : > { %v1212_v41 = vpop.f32.mrb[0].mxu0 }
 0x3bc   : > { %v6112_v42 = vadd.f32 %v4060_v40, %v1212_v41  ;;  %v4301_v43 = vpop.f32.mrb[1].mxu0 }
 0x3bd   : > { %v1215_v44 = vpop.f32.mrb[2].mxu0 }
 0x3be   : > { %1545 = vrot.lane.b32.xlu1 %v6112_v42, %s5350_s18  ;;  %v4302_v45 = vpop.f32.mrb[3].mxu0  ;;  %4323 = vmatprep.mubr.msk.f32.mxu1 %vm1351_vm3, %v6112_v42  ;;  %v6134_v58 = vadd.f32 %v4060_v40, %v1215_v44 }
 0x3c3   : > { %v1278_v47 = vpop.f32.mrb[4].mxu0 }
 0x3c4   : > { %v4309_v48 = vpop.f32.mrb[5].mxu0  ;;  %v1279_v50 = vadd.f32 %v4069_v46, %v1278_v47 }
 0x3c5   : > { %v1281_v49 = vpop.f32.mrb[6].mxu0 }
 0x3c6   : > { %v1282_v51 = vadd.f32 %v4069_v46, %v1281_v49  ;;  %v4310_v52 = vpop.f32.mrb[7].mxu0 }
 0x3c8   : > { %v6119_v53 = vpack.i.bf16 %v1282_v51, %v1279_v50  ;;  %v4491_v54 = vpack.c.bf16 %v1282_v51, %v1279_v50 }
 0x3ca   : > { %4749 = vrot.lane.b32.xlu1 %v6119_v53, %s5351_s26  ;;  %4744 = vrot.lane.b32.xlu0 %v6119_v53, %s5350_s18 }
 0x3cb   : > { %4493 = vmatprep.subr.msk.bf16.mxu1 %vm6123_vm4, %v4491_v54  ;;  %v1344_v57 = vpop.f32.mrb[8].mxu0 }
 0x3cc   : > { %4496 = vmatpush3.bf16.xpose.msk.msra.mxu1 %vm6123_vm4, %v4491_v54  ;;  %v4317_v59 = vpop.f32.mrb[9].mxu0  ;;  %v1345_v61 = vadd.f32 %v4078_v56, %v1344_v57 }
 0x3cd   : > { %v1347_v60 = vpop.f32.mrb[10].mxu0 }
 0x3ce   : > { %v1348_v62 = vadd.f32 %v4078_v56, %v1347_v60  ;;  %1547 = vrot.lane.b32.xlu1 %v6134_v58, %s5350_s18  ;;  %1758 = vrot.lane.b32.xlu0 %v6112_v42, %s5351_s26  ;;  %v4318_v63 = vpop.f32.mrb[11].mxu0 }
 0x3d0   : > { %v4497_v0 = vpack.c.bf16 %v1348_v62, %v1345_v61  ;;  %v6142_v1 = vpack.i.bf16 %v1348_v62, %v1345_v61 }
 0x3d2   : > { %1760 = vrot.lane.b32.xlu1 %v6134_v58, %s5351_s26  ;;  %4498 = vmatprep.subr.bf16.mxu1 %v4497_v0 }
 0x3d3   : > { %4324 = vmatmul.mubr.msk.f32.vlgmr.msra.gmra.mrb[0].mxu1 %vm1351_vm3, %v6134_v58 }
 0x3d4   : > { %4500 = vmatpush3.bf16.msra.mxu1 %v4497_v0 }
 0x430   : > { %v1546_v4 = vpop.permute.xlu1 %1545 }
 0x431   : > { %4337 = vmatprep.mubr.msk.f32.mxu0 %vm1351_vm3, %v1546_v4 }
 0x43c   : > { %v4750_v5 = vpop.permute.xlu1 %4749  ;;  %v4745_v6 = vpop.permute.xlu0 %4744 }
 0x43d   : > { %v4752_v7 = vunpack.i.h.bf16 %v4750_v5  ;;  %v4751_v8 = vunpack.i.l.bf16 %v4750_v5  ;;  %v4747_v9 = vunpack.i.h.bf16 %v4745_v6  ;;  %v4746_v10 = vunpack.i.l.bf16 %v4745_v6 }
 0x43f   : > { %v4501_v11 = vpack.c.bf16 %v4747_v9, %v4746_v10  ;;  %v4511_v12 = vpack.c.bf16 %v4752_v7, %v4751_v8 }
 0x440   : > { %v1548_v13 = vpop.permute.xlu1 %1547  ;;  %v1759_v14 = vpop.permute.xlu0 %1758 }
 0x441   : > { %4503 = vmatprep.subr.msk.bf16.mxu0 %vm6123_vm4, %v4501_v11 }
 0x442   : > { %4506 = vmatpush3.bf16.xpose.msk.msra.mxu0 %vm6123_vm4, %v4501_v11 }
 0x443   : > { %4513 = vmatprep.subr.msk.bf16.mxu0 %vm6123_vm4, %v4511_v12 }
 0x444   : > { %v1761_v15 = vpop.permute.xlu1 %1760 }
 0x449   : > { %4338 = vmatmul.mubr.msk.f32.vlgmr.msra.gmra.mrb[12].mxu0 %vm1351_vm3, %v1548_v13 }
 0x44a   : > { %4516 = vmatpush3.bf16.xpose.msk.msra.mxu0 %vm6123_vm4, %v4511_v12  ;;  %4351 = vmatprep.mubr.msk.f32.mxu0 %vm1351_vm3, %v1759_v14 }
 0x451   : > { %4352 = vmatmul.mubr.msk.f32.vlgmr.msra.gmra.mrb[14].mxu0 %vm1351_vm3, %v1761_v15 }
 0x4a6   : > { %v4325_v25 = vpop.f32.mrb[0].mxu1 }
 0x4a7   : > { %v1436_v26 = vadd.f32 %v4325_v25, %v6161_v23  ;;  %v1430_v27 = vpop.f32.mrb[1].mxu1 }
 0x4a8   : > { %v1431_v28 = vadd.f32 %v1430_v27, %v6163_v24 }
 0x4a9   : > { %v1443_v29 = vsel %vm1439_vm10, %v1436_v26, -inf }
 0x4aa   : > { %1444 = vmax.xlane.f32.xlu1 %v1443_v29  ;;  %v1440_v30 = vsel %vm1439_vm10, %v1431_v28, -inf }
 0x4ab   : > { %1441 = vmax.xlane.f32.xlu0 %v1440_v30 }
 0x51c   : > { %v4339_v31 = vpop.f32.mrb[12].mxu0 }
 0x51d   : > { %v1627_v32 = vpop.f32.mrb[13].mxu0  ;;  %v1633_v34 = vadd.f32 %v4339_v31, %v6161_v23 }
 0x51e   : > { %v1628_v33 = vadd.f32 %v1627_v32, %v6163_v24 }
 0x51f   : > { %v1639_v37 = vsel %vm1439_vm10, %v1633_v34, -inf }
 0x520   : > { %v1636_v35 = vsel %vm1439_vm10, %v1628_v33, -inf }
 0x521   : > { %1637 = vmax.xlane.f32.xlu0 %v1636_v35 }
 0x524   : > { %v4353_v36 = vpop.f32.mrb[14].mxu0 }
 0x525   : > { %v1846_v38 = vadd.f32 %v4353_v36, %v6161_v23  ;;  %v1840_v39 = vpop.f32.mrb[15].mxu0  ;;  %1640 = vmax.xlane.f32.xlu0 %v1639_v37 }
 0x526   : > { %v1841_v40 = vadd.f32 %v1840_v39, %v6163_v24 }
 0x527   : > { %v1852_v41 = vsel %vm1439_vm10, %v1846_v38, -inf }
 0x528   : > { %1853 = vmax.xlane.f32.xlu1 %v1852_v41  ;;  %v1849_v43 = vsel %vm1439_vm10, %v1841_v40, -inf }
 0x529   : > { %1850 = vmax.xlane.f32.xlu0 %v1849_v43 }
 0x537   : > { %v1445_v44 = vpop.xlane.xlu1 %1444 }
 0x538   : > { %v1447_v45 = vsub.f32 %v1436_v26, %v1445_v44  ;;  %v1442_v46 = vpop.xlane.xlu0 %1441 }
 0x539   : > { %v1446_v47 = vsub.f32 %v1431_v28, %v1442_v46 }
 0x53a   : > { %v1450_v48 = vmul.f32 1.442695, %v1447_v45 }
 0x53b   : > { %v1448_v49 = vmul.f32 1.442695, %v1446_v47 }
 0x53c   : > { %4830 = vpow2.f32 %v1450_v48 }
 0x53d   : > { %4832 = vpow2.f32 %v1448_v49 }
 0x546   : > { %v4831_v50 = vpop.eup %4830 }
 0x547   : > { %v4833_v51 = vpop.eup %4832  ;;  %v1455_v52 = vsel %vm1439_vm10, %v4831_v50, 0.0 }
 0x548   : > { %1456 = vadd.xlane.f32.xlu1 %v1455_v52  ;;  %v1452_v54 = vsel %vm1439_vm10, %v4833_v51, 0.0 }
 0x549   : > { %1453 = vadd.xlane.f32.xlu0 %v1452_v54 }
 0x5ae   : > { %v1638_v56 = vpop.xlane.xlu0 %1637 }
 0x5af   : > { %v1642_v57 = vsub.f32 %v1628_v33, %v1638_v56 }
 0x5b1   : > { %v1644_v59 = vmul.f32 1.442695, %v1642_v57 }
 0x5b2   : > { %v1641_v60 = vpop.xlane.xlu0 %1640 }
 0x5b3   : > { %4834 = vpow2.f32 %v1644_v59  ;;  %v1643_v61 = vsub.f32 %v1633_v34, %v1641_v60 }
 0x5b5   : > { %v1646_v62 = vmul.f32 1.442695, %v1643_v61  ;;  %v1854_v63 = vpop.xlane.xlu1 %1853 }
 0x5b6   : > { %v1856_v0 = vsub.f32 %v1846_v38, %v1854_v63  ;;  %v1851_v4 = vpop.xlane.xlu0 %1850 }
 0x5b7   : > { %4836 = vpow2.f32 %v1646_v62  ;;  %v1855_v5 = vsub.f32 %v1841_v40, %v1851_v4 }
 0x5b8   : > { %v1859_v6 = vmul.f32 1.442695, %v1856_v0 }
 0x5b9   : > { %v1857_v7 = vmul.f32 1.442695, %v1855_v5 }
 0x5ba   : > { %4838 = vpow2.f32 %v1859_v6 }
 0x5bb   : > { %4840 = vpow2.f32 %v1857_v7 }
 0x5bd   : > { %v4835_v8 = vpop.eup %4834 }
 0x5be   : > { %v1648_v9 = vsel %vm1439_vm10, %v4835_v8, 0.0 }
 0x5bf   : > { %1649 = vadd.xlane.f32.xlu0 %v1648_v9 }
 0x5c1   : > { %v4837_v10 = vpop.eup %4836 }
 0x5c2   : > { %v1651_v11 = vsel %vm1439_vm10, %v4837_v10, 0.0 }
 0x5c3   : > { %1652 = vadd.xlane.f32.xlu1 %v1651_v11 }
 0x5c4   : > { %v4839_v12 = vpop.eup %4838 }
 0x5c5   : > { %v4841_v13 = vpop.eup %4840  ;;  %v1864_v14 = vsel %vm1439_vm10, %v4839_v12, 0.0 }
 0x5c6   : > { %v1861_v15 = vsel %vm1439_vm10, %v4841_v13, 0.0 }
 0x5c7   : > { %1865 = vadd.xlane.f32.xlu1 %v1864_v14  ;;  %1862 = vadd.xlane.f32.xlu0 %v1861_v15 }
 0x5d5   : > { %v1457_v16 = vpop.xlane.xlu1 %1456 }
 0x5d6   : > { %4842 = vrcp.f32 %v1457_v16  ;;  %v1454_v18 = vpop.xlane.xlu0 %1453 }
 0x5d7   : > { %4844 = vrcp.f32 %v1454_v18 }
 0x5d8   : > { %4759 = vrot.lane.b32.xlu1 %v6142_v1, %s5351_s26 }
 0x5dc   : > { %4764 = vrot.lane.b32.xlu1 %v6119_v53, %s5353_s6 }
 0x5dd   : > { %4754 = vrot.lane.b32.xlu0 %v6142_v1, %s5350_s18 }
 0x5e0   : > { %v4843_v19 = vpop.eup %4842  ;;  %1969 = vrot.lane.b32.xlu1 %v6112_v42, %s5353_s6 }
 0x5e1   : > { %v4845_v20 = vpop.eup %4844  ;;  %1971 = vrot.lane.b32.xlu0 %v6134_v58, %s5353_s6  ;;  %v1461_v22 = vmul.f32 %v4843_v19, %v4831_v50 }
 0x5e2   : > { %v1460_v21 = vmul.f32 %v4845_v20, %v4833_v51 }
 0x5e4   : > { %4330 = vmatprep.mubr.msk.f32.mxu1 %vm1439_vm10, %v1460_v21 }
 0x5e5   : > { %4331 = vmatmul.mubr.msk.f32.vlgmr.msra.gmra.mrb[2].mxu1 %vm1439_vm10, %v1461_v22 }
 0x64c   : > { %v1650_v25 = vpop.xlane.xlu0 %1649 }
 0x64d   : > { %4846 = vrcp.f32 %v1650_v25 }
 0x650   : > { %v1653_v53 = vpop.xlane.xlu1 %1652 }
 0x651   : > { %4848 = vrcp.f32 %v1653_v53 }
 0x654   : > { %v1866_v26 = vpop.xlane.xlu1 %1865  ;;  %v1863_v27 = vpop.xlane.xlu0 %1862 }
 0x655   : > { %4850 = vrcp.f32 %v1866_v26  ;;  %v4809_v26 = vld [vmem:[%s6728_s19] sm:$0xff]  }
 0x656   : > { %4852 = vrcp.f32 %v1863_v27  ;;  %v4810_v27 = vld [vmem:[%s6728_s19 + $0x8] sm:$0xff]  }
 0x657   : > { %v4847_v28 = vpop.eup %4846 }
 0x658   : > { %v4760_v42 = vpop.permute.xlu1 %4759  ;;  %v4755_v29 = vpop.permute.xlu0 %4754  ;;  %v1656_v30 = vmul.f32 %v4847_v28, %v4835_v8 }
 0x659   : > { %v4762_v31 = vunpack.i.h.bf16 %v4760_v42  ;;  %v4761_v58 = vunpack.i.l.bf16 %v4760_v42  ;;  %v4757_v32 = vunpack.i.h.bf16 %v4755_v29  ;;  %v4756_v33 = vunpack.i.l.bf16 %v4755_v29 }
 0x65a   : > { %4344 = vmatprep.mubr.msk.f32.mxu1 %vm1439_vm10, %v1656_v30 }
 0x65b   : > { %v4507_v34 = vpack.c.bf16 %v4757_v32, %v4756_v33  ;;  %v4849_v35 = vpop.eup %4848  ;;  %v4517_v37 = vpack.c.bf16 %v4762_v31, %v4761_v58  ;;  %v4106_v33 = vld [vmem:[%s6730_s3] ss:$0 sm:$0xff] }
 0x65c   : > { %v4765_v36 = vpop.permute.xlu1 %4764  ;;  %v1657_v41 = vmul.f32 %v4849_v35, %v4837_v10  ;;  %v1972_v48 = vpop.permute.xlu0 %1971 }
 0x65d   : > { %v4767_v38 = vunpack.i.h.bf16 %v4765_v36  ;;  %v4766_v39 = vunpack.i.l.bf16 %v4765_v36  ;;  %4508 = vmatprep.subr.bf16.mxu1 %v4507_v34 }
 0x65e   : > { %4510 = vmatpush3.bf16.msra.mxu1 %v4507_v34 }
 0x65f   : > { %v4851_v40 = vpop.eup %4850  ;;  %4518 = vmatprep.subr.bf16.mxu1 %v4517_v37  ;;  %v4521_v44 = vpack.c.bf16 %v4767_v38, %v4766_v39 }
 0x660   : > { %v4853_v43 = vpop.eup %4852  ;;  %v1870_v46 = vmul.f32 %v4851_v40, %v4839_v12  ;;  %v1970_v47 = vpop.permute.xlu1 %1969 }
 0x661   : > { %4345 = vmatmul.mubr.msk.f32.vlgmr.msra.gmra.mrb[4].mxu1 %vm1439_vm10, %v1657_v41  ;;  %v1869_v45 = vmul.f32 %v4853_v43, %v4841_v13 }
 0x662   : > { %4520 = vmatpush3.bf16.msra.mxu1 %v4517_v37 }
 0x663   : > { %4358 = vmatprep.mubr.msk.f32.mxu1 %vm1439_vm10, %v1869_v45  ;;  %4523 = vmatprep.subr.msk.bf16.mxu1 %vm6123_vm4, %v4521_v44 }
 0x665   : > { %4359 = vmatmul.mubr.msk.f32.vlgmr.msra.gmra.mrb[6].mxu1 %vm1439_vm10, %v1870_v46 }
 0x666   : > { %4365 = vmatprep.mubr.msk.f32.mxu1 %vm1351_vm3, %v1970_v47 }
 0x66b   : > { %4526 = vmatpush3.bf16.xpose.msk.msra.mxu1 %vm6123_vm4, %v4521_v44 }
 0x66c   : > { %4383 = vmatprep.subr.bf16.mxu1 %v5348_v17 }
 0x672   : > { %4366 = vmatmul.mubr.msk.f32.vlgmr.msra.gmra.mrb[8].mxu1 %vm1351_vm3, %v1972_v48 }
 0x673   : > { %4387 = vmatprep.mubr.msk.bf16.mxu1 %vm5349_vm2, %v5348_v17 }
 0x6b8   : > { %v4332_v49 = vpop.f32.mrb[2].mxu1 }
 0x6b9   : > { %1544 = vst.msk [vmem:[#allocation3 + $0x8] sm:$0xff] %vm1351_vm3, %v4332_v49  ;;  %v1534_v50 = vpop.f32.mrb[3].mxu1 }
 0x6ba   : > { %1543 = vst.msk [vmem:[#allocation3] sm:$0xff] %vm1351_vm3, %v1534_v50 }
 0x734   : > { %v4346_v51 = vpop.f32.mrb[4].mxu1 }
 0x735   : > { %v1738_v52 = vpop.f32.mrb[5].mxu1 }
 0x738   : > { %v4360_v54 = vpop.f32.mrb[6].mxu1 }
 0x739   : > { %v1949_v56 = vpop.f32.mrb[7].mxu1 }
 0x745   : > { %v4367_v57 = vpop.f32.mrb[8].mxu1 }
 0x746   : > { %v2057_v59 = vadd.f32 %v4367_v57, %v6161_v23  ;;  %v2051_v60 = vpop.f32.mrb[9].mxu1  ;;  %v4813_v57 = vld [vmem:[%s6732_s5] sm:$0xff]  }
 0x747   : > { %v2052_v61 = vadd.f32 %v2051_v60, %v6163_v24  ;;  %v4815_v60 = vld [vmem:[%s6731_s16 + $0x8] sm:$0xff]  }
 0x748   : > { %v2063_v62 = vsel %vm1439_vm10, %v2057_v59, -inf }
 0x749   : > { %2064 = vmax.xlane.f32.xlu0 %v2063_v62  ;;  %v2060_v63 = vsel %vm1439_vm10, %v2052_v61, -inf }
 0x74a   : > { %2061 = vmax.xlane.f32.xlu1 %v2060_v63 }
 0x75b   : > { %4769 = vrot.lane.b32.xlu1 %v6142_v1, %s5353_s6 }
 0x75f   : > { %1751 = vrot.lane.b32.xlu1 %v4346_v51, %s5354_s0 }
 0x763   : > { %1960 = vrot.lane.b32.xlu1 %v1949_v56, %s5355_s21  ;;  %v4812_v56 = vld [vmem:[%s6731_s16 + $0x18] sm:$0xff]  }
 0x767   : > { %1962 = vrot.lane.b32.xlu1 %v4360_v54, %s5355_s21  ;;  %v4811_v54 = vld [vmem:[%s6731_s16 + $0x10] sm:$0xff]  }
 0x7d6   : > { %v2065_v23 = vpop.xlane.xlu0 %2064 }
 0x7d7   : > { %v2067_v0 = vsub.f32 %v2057_v59, %v2065_v23  ;;  %v2062_v24 = vpop.xlane.xlu1 %2061  ;;  %v4814_v59 = vld [vmem:[%s6731_s16] sm:$0xff]  }
 0x7d8   : > { %v2066_v4 = vsub.f32 %v2052_v61, %v2062_v24  ;;  %4384 = vmatpush3.bf16.msra.mxu1 %v4814_v59 }
 0x7d9   : > { %v2070_v5 = vmul.f32 1.442695, %v2067_v0  ;;  %4385 = vmatprep.subr.bf16.mxu1 %v5348_v17 }
 0x7da   : > { %v2068_v6 = vmul.f32 1.442695, %v2066_v4 }
 0x7db   : > { %v4770_v7 = vpop.permute.xlu1 %4769 }
 0x7dc   : > { %4854 = vpow2.f32 %v2068_v6  ;;  %v4772_v8 = vunpack.i.h.bf16 %v4770_v7  ;;  %v4771_v9 = vunpack.i.l.bf16 %v4770_v7  ;;  %4386 = vmatpush3.bf16.msra.mxu1 %v4815_v60  ;;  %v4112_v6 = vld [vmem:[%s5990_s4 + $0x1] ss:$0 sm:$0xff] }
 0x7dd   : > { %4856 = vpow2.f32 %v2070_v5  ;;  %4399 = vmatprep.subr.bf16.mxu1 %v5348_v17 }
 0x7de   : > { %v4527_v1 = vpack.c.bf16 %v4772_v8, %v4771_v9 }
 0x7df   : > { %v1752_v10 = vpop.permute.xlu1 %1751 }
 0x7e0   : > { %1757 = vst.msk [vmem:[#allocation3 + $0x8] sm:$0xff] %vm1755_vm11, %v1752_v10  ;;  %4528 = vmatprep.subr.bf16.mxu0 %v4527_v1 }
 0x7e1   : > { %4530 = vmatpush3.bf16.msra.mxu0 %v4527_v1  ;;  %v4113_v1 = vld [vmem:[%s5996_s13 + $0x1] ss:$0 sm:$0xff] }
 0x7e2   : > { %4375 = vmatprep.subr.bf16.mxu0 %v5348_v17 }
 0x7e3   : > { %v1961_v11 = vpop.permute.xlu1 %1960 }
 0x7e6   : > { %v4855_v12 = vpop.eup %4854 }
 0x7e7   : > { %v1963_v13 = vpop.permute.xlu1 %1962  ;;  %v2072_v14 = vsel %vm1439_vm10, %v4855_v12, 0.0  ;;  %v4857_v15 = vpop.eup %4856 }
 0x7e8   : > { %1968 = vst.msk [vmem:[#allocation3 + $0x8] sm:$0xff] %vm1966_vm12, %v1963_v13  ;;  %2073 = vadd.xlane.f32.xlu0 %v2072_v14  ;;  %v2075_v16 = vsel %vm1439_vm10, %v4857_v15, 0.0  ;;  %v4123_v14 = vld [vmem:[%s6051_s2 + $0x1] ss:$0 sm:$0xff] }
 0x7ec   : > { %2076 = vadd.xlane.f32.xlu0 %v2075_v16 }
 0x802   : > { %1749 = vrot.lane.b32.xlu0 %v1738_v52, %s5354_s0 }
 0x875   : > { %v2074_v18 = vpop.xlane.xlu0 %2073 }
 0x876   : > { %4858 = vrcp.f32 %v2074_v18 }
 0x879   : > { %v2077_v19 = vpop.xlane.xlu0 %2076 }
 0x87a   : > { %4860 = vrcp.f32 %v2077_v19 }
 0x87d   : > { %v1750_v20 = vpop.permute.xlu0 %1749 }
 0x87e   : > { %1756 = vst.msk [vmem:[#allocation3] sm:$0xff] %vm1755_vm11, %v1750_v20 }
 0x87f   : > { %1967 = vst.msk [vmem:[#allocation3] sm:$0xff] %vm1966_vm12, %v1961_v11 }
 0x880   : > { %v4859_v21 = vpop.eup %4858 }
 0x881   : > { %v2080_v22 = vmul.f32 %v4859_v21, %v4855_v12 }
 0x883   : > { %4372 = vmatprep.mubr.msk.f32.mxu0 %vm1439_vm10, %v2080_v22 }
 0x884   : > { %v4861_v25 = vpop.eup %4860 }
 0x885   : > { %v2081_v53 = vmul.f32 %v4861_v25, %v4857_v15 }
 0x887   : > { %4373 = vmatmul.mubr.msk.f32.vlgmr.msra.gmra.mrb[16].mxu0 %vm1439_vm10, %v2081_v53 }
 0x888   : > { %4379 = vmatprep.mubr.msk.bf16.mxu0 %vm5349_vm2, %v5348_v17  ;;  %4376 = vmatpush3.bf16.msra.mxu0 %v4809_v26 }
 0x889   : > { %4377 = vmatprep.subr.bf16.mxu0 %v5348_v17 }
 0x88c   : > { %4378 = vmatpush3.bf16.msra.mxu0 %v4810_v27 }
 0x88d   : > { %4391 = vmatprep.subr.bf16.mxu0 %v5348_v17 }
 0x95a   : > { %v4374_v28 = vpop.f32.mrb[16].mxu0 }
 0x95b   : > { %2173 = vrot.lane.b32.xlu1 %v4374_v28, %s5356_s25  ;;  %v2160_v42 = vpop.f32.mrb[17].mxu0 }
 0x95c   : > { %2171 = vrot.lane.b32.xlu0 %v2160_v42, %s5356_s25  ;;  %v4816_v42 = vld [vmem:[%s6731_s16 + $0x20] sm:$0xff]  }
 0x9cd   : > { %v2174_v29 = vpop.permute.xlu1 %2173 }
 0x9ce   : > { %2179 = vst.msk [vmem:[#allocation3 + $0x8] sm:$0xff] %vm2177_vm13, %v2174_v29  ;;  %v2172_v30 = vpop.permute.xlu0 %2171  ;;  %v4817_v29 = vld [vmem:[%s6731_s16 + $0x28] sm:$0xff]  }
 0x9cf   : > { %2178 = vst.msk [vmem:[#allocation3] sm:$0xff] %vm2177_vm13, %v2172_v30  ;;  %v4114_v30 = vld [vmem:[%s6051_s2] ss:$0 sm:$0xff] }
 0x9d5   : > { %v2181_v31 = vld [vmem:[#allocation3 + $0x8] sm:$0xff] }
 0x9d6   : > { %v2180_v58 = vld [vmem:[#allocation3] sm:$0xff] }
 0x9d7   : > { %v2182_v32 = vpack.c.bf16 %v2181_v31, %v2180_v58 }
 0x9d9   : > { %4380 = vmatmul.mubr.msk.bf16.vlgmr.msra.gmra.mrb[20].mxu0 %vm1107_vm1, %v2182_v32 }
 0x9da   : > { %4395 = vmatprep.mubr.msk.bf16.mxu0 %vm5349_vm2, %v5348_v17  ;;  %4392 = vmatpush3.bf16.msra.mxu0 %v4811_v54 }
 0x9db   : > { %4393 = vmatprep.subr.bf16.mxu0 %v5348_v17 }
 0x9de   : > { %4394 = vmatpush3.bf16.msra.mxu0 %v4812_v56 }
 0x9e1   : > { %4396 = vmatmul.mubr.msk.bf16.vlgmr.msra.gmra.mrb[24].mxu0 %vm1107_vm1, %v4813_v57 }
 0xaac   : > { %v2243_v34 = vpop.f32.mrb[20].mxu0 }
 0xaad   : > { %v2244_v35 = vadd.f32 %v4106_v33, %v2243_v34  ;;  %v4381_v36 = vpop.f32.mrb[21].mxu0 }
 0xaae   : > { %v2246_v37 = vpop.f32.mrb[22].mxu0 }
 0xaaf   : > { %v6245_v38 = vadd.f32 %v2244_v35, %v6076_v2  ;;  %v2247_v39 = vadd.f32 %v4106_v33, %v2246_v37  ;;  %v4382_v40 = vpop.f32.mrb[23].mxu0 }
 0xab1   : > { %v6248_v41 = vadd.f32 %v2247_v39, %v6078_v3  ;;  %v2256_v43 = vsel %vm1107_vm1, %v6245_v38, 0.0 }
 0xab2   : > { %2257 = vadd.xlane.f32.xlu0 %v2256_v43 }
 0xab3   : > { %v2259_v44 = vsel %vm1107_vm1, %v6248_v41, 0.0 }
 0xab4   : > { %2260 = vadd.xlane.f32.xlu1 %v2259_v44  ;;  %v2433_v15 = vpop.f32.mrb[24].mxu0 }
 0xab5   : > { %v2434_v16 = vadd.f32 %v4123_v14, %v2433_v15  ;;  %v4397_v18 = vpop.f32.mrb[25].mxu0 }
 0xab6   : > { %v2436_v19 = vpop.f32.mrb[26].mxu0 }
 0xab7   : > { %v2437_v20 = vadd.f32 %v4123_v14, %v2436_v19  ;;  %v4398_v21 = vpop.f32.mrb[27].mxu0 }
 0xab9   : > { %v6273_v22 = vpack.i.bf16 %v2437_v20, %v2434_v16  ;;  %v4531_v25 = vpack.c.bf16 %v2437_v20, %v2434_v16 }
 0xabb   : > { %4533 = vmatprep.subr.msk.bf16.mxu0 %vm6123_vm4, %v4531_v25 }
 0xabc   : > { %4536 = vmatpush3.bf16.xpose.msk.msra.mxu0 %vm6123_vm4, %v4531_v25 }
 0xb3f   : > { %v2258_v45 = vpop.xlane.xlu0 %2257 }
 0xb40   : > { %v2262_v46 = vmul.f32 0.03125, %v2258_v45  ;;  %v6309_v45 = vld [vmem:[%s6735_s12] ss:$0 sm:$0xff] }
 0xb41   : > { %v2261_v2 = vpop.xlane.xlu1 %2260 }
 0xb42   : > { %v2264_v47 = vsub.f32 %v6245_v38, %v2262_v46  ;;  %v2263_v48 = vmul.f32 0.03125, %v2261_v2 }
 0xb44   : > { %v2265_v3 = vsub.f32 %v6248_v41, %v2263_v48  ;;  %v2266_v49 = vmul.f32 %v2264_v47, %v2264_v47 }
 0xb46   : > { %v2268_v50 = vsel %vm1107_vm1, %v2266_v49, 0.0  ;;  %v2267_v51 = vmul.f32 %v2265_v3, %v2265_v3 }
 0xb47   : > { %2269 = vadd.xlane.f32.xlu0 %v2268_v50  ;;  %v4133_v50 = vld [vmem:[%s6051_s2 + $0x2] ss:$0 sm:$0xff]  ;;  %s6736_s2 = sld [smem:[#allocation55_spill]] }
 0xb48   : > { %v2271_v52 = vsel %vm1107_vm1, %v2267_v51, 0.0 }
 0xb4b   : > { %2272 = vadd.xlane.f32.xlu0 %v2271_v52 }
 0xb61   : > { %4774 = vrot.lane.b32.xlu0 %v6273_v22, %s5350_s18 }
 0xbd4   : > { %v2270_v61 = vpop.xlane.xlu0 %2269 }
 0xbd5   : > { %v2274_v62 = vmul.f32 0.03125, %v2270_v61 }
 0xbd7   : > { %v2276_v63 = vadd.f32 1e-05, %v2274_v62 }
 0xbd8   : > { %v2273_v23 = vpop.xlane.xlu0 %2272 }
 0xbd9   : > { %4862 = vrsqrt.f32 %v2276_v63  ;;  %v2275_v0 = vmul.f32 0.03125, %v2273_v23 }
 0xbdb   : > { %v2277_v24 = vadd.f32 1e-05, %v2275_v0 }
 0xbdc   : > { %v4775_v53 = vpop.permute.xlu0 %4774 }
 0xbdd   : > { %4864 = vrsqrt.f32 %v2277_v24  ;;  %v4777_v26 = vunpack.i.h.bf16 %v4775_v53  ;;  %v4776_v27 = vunpack.i.l.bf16 %v4775_v53 }
 0xbdf   : > { %v4541_v28 = vpack.c.bf16 %v4777_v26, %v4776_v27 }
 0xbe1   : > { %4543 = vmatprep.subr.msk.bf16.mxu0 %vm6123_vm4, %v4541_v28 }
 0xbe3   : > { %v4863_v4 = vpop.eup %4862 }
 0xbe4   : > { %v2280_v5 = vmul.f32 %v4863_v4, %v2264_v47 }
 0xbe6   : > { %v2288_v8 = vmul.f32 %v4112_v6, %v2280_v5 }
 0xbe7   : > { %v4865_v7 = vpop.eup %4864 }
 0xbe8   : > { %v2281_v9 = vmul.f32 %v4865_v7, %v2265_v3  ;;  %v2296_v11 = vadd.f32 %v4113_v1, %v2288_v8 }
 0xbea   : > { %v2289_v10 = vmul.f32 %v4112_v6, %v2281_v9 }
 0xbec   : > { %v2297_v12 = vadd.f32 %v4113_v1, %v2289_v10 }
 0xbee   : > { %v2298_v13 = vpack.c.bf16 %v2297_v12, %v2296_v11 }
 0xbf0   : > { %4388 = vmatmul.mubr.msk.bf16.vlgmr.msra.gmra.mrb[12].mxu1 %vm1107_vm1, %v2298_v13 }
 0xbf1   : > { %4403 = vmatprep.mubr.msk.bf16.mxu1 %vm5349_vm2, %v5348_v17  ;;  %4400 = vmatpush3.bf16.msra.mxu1 %v4816_v42 }
 0xbf2   : > { %4401 = vmatprep.subr.bf16.mxu1 %v5348_v17 }
 0xbf5   : > { %4402 = vmatpush3.bf16.msra.mxu1 %v4817_v29 }
 0xbf8   : > { %4404 = vmatmul.mubr.msk.bf16.vlgmr.msra.gmra.mrb[16].mxu1 %vm1107_vm1, %v4813_v57 }
 0xcc3   : > { %v2359_v31 = vpop.f32.mrb[12].mxu1 }
 0xcc4   : > { %v6288_v58 = vadd.f32 %v4114_v30, %v2359_v31  ;;  %v4389_v32 = vpop.f32.mrb[13].mxu1 }
 0xcc5   : > { %v2362_v33 = vpop.f32.mrb[14].mxu1 }
 0xcc6   : > { %v6290_v34 = vadd.f32 %v4114_v30, %v2362_v33  ;;  %2704 = vrot.lane.b32.xlu1 %v6288_v58, %s5350_s18  ;;  %v4390_v35 = vpop.f32.mrb[15].mxu1  ;;  %4411 = vmatprep.mubr.msk.f32.mxu0 %vm1351_vm3, %v6288_v58 }
 0xcc8   : > { %4412 = vmatmul.mubr.msk.f32.vlgmr.msra.gmra.mrb[18].mxu0 %vm1351_vm3, %v6290_v34 }
 0xcc9   : > { %4546 = vmatpush3.bf16.xpose.msk.msra.mxu0 %vm6123_vm4, %v4541_v28 }
 0xcca   : > { %2706 = vrot.lane.b32.xlu1 %v6290_v34, %s5350_s18 }
 0xccb   : > { %v2499_v39 = vpop.f32.mrb[16].mxu1 }
 0xccc   : > { %v4405_v40 = vpop.f32.mrb[17].mxu1  ;;  %v2500_v51 = vadd.f32 %v4133_v50, %v2499_v39 }
 0xccd   : > { %v2502_v43 = vpop.f32.mrb[18].mxu1 }
 0xcce   : > { %v4406_v44 = vpop.f32.mrb[19].mxu1  ;;  %v2503_v52 = vadd.f32 %v4133_v50, %v2502_v43 }
 0xcd0   : > { %v6316_v54 = vpack.i.bf16 %v2503_v52, %v2500_v51  ;;  %v4537_v56 = vpack.c.bf16 %v2503_v52, %v2500_v51 }
 0xcd2   : > { %4538 = vmatprep.subr.bf16.mxu1 %v4537_v56 }
 0xcd3   : > { %4540 = vmatpush3.bf16.msra.mxu1 %v4537_v56 }
 0xd38   : > { %v2705_v36 = vpop.permute.xlu1 %2704 }
 0xd39   : > { %4425 = vmatprep.mubr.msk.f32.mxu0 %vm1351_vm3, %v2705_v36 }
 0xd3c   : > { %v2707_v37 = vpop.permute.xlu1 %2706 }
 0xd3d   : > { %4426 = vmatmul.mubr.msk.f32.vlgmr.msra.gmra.mrb[28].mxu0 %vm1351_vm3, %v2707_v37 }
 0xd9b   : > { %v4413_v46 = vpop.f32.mrb[18].mxu0 }
 0xd9c   : > { %v2596_v2 = vadd.f32 %v4413_v46, %v6309_v45  ;;  %v2590_v47 = vpop.f32.mrb[19].mxu0 }
 0xd9d   : > { %v2591_v48 = vadd.f32 %v6309_v45, %v2590_v47 }
 0xd9e   : > { %v2602_v3 = vsel %vm1439_vm10, %v2596_v2, -inf }
 0xd9f   : > { %2603 = vmax.xlane.f32.xlu0 %v2602_v3  ;;  %v2599_v49 = vsel %vm1439_vm10, %v2591_v48, -inf }
 0xda0   : > { %2600 = vmax.xlane.f32.xlu1 %v2599_v49 }
 0xdb1   : > { %4779 = vrot.lane.b32.xlu1 %v6316_v54, %s5350_s18 }
 0xe10   : > { %v4427_v57 = vpop.f32.mrb[28].mxu0 }
 0xe11   : > { %v2786_v59 = vpop.f32.mrb[29].mxu0  ;;  %v2792_v61 = vadd.f32 %v4427_v57, %v6309_v45 }
 0xe12   : > { %v2787_v60 = vadd.f32 %v6309_v45, %v2786_v59 }
 0xe13   : > { %v2798_v63 = vsel %vm1439_vm10, %v2792_v61, -inf }
 0xe14   : > { %v2795_v62 = vsel %vm1439_vm10, %v2787_v60, -inf }
 0xe15   : > { %2796 = vmax.xlane.f32.xlu0 %v2795_v62 }
 0xe19   : > { %2799 = vmax.xlane.f32.xlu0 %v2798_v63 }
 0xe2c   : > { %v2604_v23 = vpop.xlane.xlu0 %2603 }
 0xe2d   : > { %v2606_v0 = vsub.f32 %v2596_v2, %v2604_v23  ;;  %v2601_v24 = vpop.xlane.xlu1 %2600 }
 0xe2e   : > { %v2605_v4 = vsub.f32 %v2591_v48, %v2601_v24 }
 0xe2f   : > { %v2609_v5 = vmul.f32 1.442695, %v2606_v0 }
 0xe30   : > { %v2607_v6 = vmul.f32 1.442695, %v2605_v4 }
 0xe31   : > { %4866 = vpow2.f32 %v2609_v5  ;;  %v4780_v10 = vpop.permute.xlu1 %4779 }
 0xe32   : > { %4868 = vpow2.f32 %v2607_v6  ;;  %v4782_v11 = vunpack.i.h.bf16 %v4780_v10  ;;  %v4781_v12 = vunpack.i.l.bf16 %v4780_v10 }
 0xe34   : > { %v4547_v13 = vpack.c.bf16 %v4782_v11, %v4781_v12 }
 0xe36   : > { %4548 = vmatprep.subr.bf16.mxu1 %v4547_v13 }
 0xe3b   : > { %v4867_v7 = vpop.eup %4866 }
 0xe3c   : > { %v4869_v8 = vpop.eup %4868  ;;  %v2614_v9 = vsel %vm1439_vm10, %v4867_v7, 0.0 }
 0xe3d   : > { %2615 = vadd.xlane.f32.xlu0 %v2614_v9  ;;  %v2611_v1 = vsel %vm1439_vm10, %v4869_v8, 0.0 }
 0xe3e   : > { %2612 = vadd.xlane.f32.xlu1 %v2611_v1 }
 0xe4f   : > { %2916 = vrot.lane.b32.xlu1 %v6288_v58, %s5351_s26 }
 0xea2   : > { %v2797_v14 = vpop.xlane.xlu0 %2796 }
 0xea3   : > { %v2801_v15 = vsub.f32 %v2787_v60, %v2797_v14 }
 0xea5   : > { %v2803_v16 = vmul.f32 1.442695, %v2801_v15 }
 0xea6   : > { %v2800_v18 = vpop.xlane.xlu0 %2799 }
 0xea7   : > { %4870 = vpow2.f32 %v2803_v16  ;;  %v2802_v19 = vsub.f32 %v2792_v61, %v2800_v18 }
 0xea9   : > { %v2805_v20 = vmul.f32 1.442695, %v2802_v19 }
 0xeab   : > { %4872 = vpow2.f32 %v2805_v20 }
 0xeb1   : > { %v4871_v21 = vpop.eup %4870 }
 0xeb2   : > { %v2807_v25 = vsel %vm1439_vm10, %v4871_v21, 0.0 }
 0xeb3   : > { %2808 = vadd.xlane.f32.xlu1 %v2807_v25 }
 0xeb5   : > { %v4873_v53 = vpop.eup %4872 }
 0xeb6   : > { %v2810_v26 = vsel %vm1439_vm10, %v4873_v53, 0.0 }
 0xeb7   : > { %2811 = vadd.xlane.f32.xlu0 %v2810_v26 }
 0xec4   : > { %2918 = vrot.lane.b32.xlu1 %v6290_v34, %s5351_s26 }
 0xeca   : > { %v2616_v27 = vpop.xlane.xlu0 %2615 }
 0xecb   : > { %4874 = vrcp.f32 %v2616_v27  ;;  %v2613_v28 = vpop.xlane.xlu1 %2612 }
 0xecc   : > { %4876 = vrcp.f32 %v2613_v28 }
 0xecd   : > { %4784 = vrot.lane.b32.xlu0 %v6273_v22, %s5351_s26 }
 0xecf   : > { %v2917_v32 = vpop.permute.xlu1 %2916 }
 0xed5   : > { %v4875_v42 = vpop.eup %4874 }
 0xed6   : > { %v4877_v29 = vpop.eup %4876  ;;  %v2620_v31 = vmul.f32 %v4875_v42, %v4867_v7 }
 0xed7   : > { %v2619_v30 = vmul.f32 %v4877_v29, %v4869_v8 }
 0xed9   : > { %4418 = vmatprep.mubr.msk.f32.mxu1 %vm1439_vm10, %v2619_v30 }
 0xeda   : > { %4419 = vmatmul.mubr.msk.f32.vlgmr.msra.gmra.mrb[10].mxu1 %vm1439_vm10, %v2620_v31 }
 0xedb   : > { %4550 = vmatpush3.bf16.msra.mxu1 %v4547_v13 }
 0xf40   : > { %v2809_v33 = vpop.xlane.xlu1 %2808 }
 0xf41   : > { %4878 = vrcp.f32 %v2809_v33 }
 0xf44   : > { %v2812_v35 = vpop.xlane.xlu0 %2811  ;;  %v2919_v47 = vpop.permute.xlu1 %2918 }
 0xf45   : > { %4880 = vrcp.f32 %v2812_v35 }
 0xf48   : > { %v4785_v36 = vpop.permute.xlu0 %4784 }
 0xf49   : > { %v4787_v37 = vunpack.i.h.bf16 %v4785_v36  ;;  %v4786_v39 = vunpack.i.l.bf16 %v4785_v36 }
 0xf4b   : > { %v4879_v40 = vpop.eup %4878  ;;  %v4551_v43 = vpack.c.bf16 %v4787_v37, %v4786_v39 }
 0xf4c   : > { %v2815_v44 = vmul.f32 %v4879_v40, %v4871_v21 }
 0xf4d   : > { %4553 = vmatprep.subr.msk.bf16.mxu1 %vm6123_vm4, %v4551_v43 }
 0xf4e   : > { %4432 = vmatprep.mubr.msk.f32.mxu1 %vm1439_vm10, %v2815_v44 }
 0xf4f   : > { %v4881_v46 = vpop.eup %4880 }
 0xf50   : > { %v2816_v2 = vmul.f32 %v4881_v46, %v4873_v53 }
 0xf52   : > { %4433 = vmatmul.mubr.msk.f32.vlgmr.msra.gmra.mrb[20].mxu1 %vm1439_vm10, %v2816_v2 }
 0xf53   : > { %4556 = vmatpush3.bf16.xpose.msk.msra.mxu1 %vm6123_vm4, %v4551_v43  ;;  %4439 = vmatprep.mubr.msk.f32.mxu1 %vm1351_vm3, %v2917_v32 }
 0xf5a   : > { %4440 = vmatmul.mubr.msk.f32.vlgmr.msra.gmra.mrb[22].mxu1 %vm1351_vm3, %v2919_v47 }
 0xfad   : > { %v4420_v48 = vpop.f32.mrb[10].mxu1 }
 0xfae   : > { %2703 = vst.msk [vmem:[#allocation3 + $0x8] sm:$0xff] %vm1351_vm3, %v4420_v48  ;;  %v2693_v3 = vpop.f32.mrb[11].mxu1 }
 0xfaf   : > { %2702 = vst.msk [vmem:[#allocation3] sm:$0xff] %vm1351_vm3, %v2693_v3 }
0x1025   : > { %v6346_v49 = vpop.f32.mrb[20].mxu1 }
0x1026   : > { %v6348_v50 = vpop.f32.mrb[21].mxu1 }
0x102d   : > { %v4441_v51 = vpop.f32.mrb[22].mxu1 }
0x102e   : > { %v3004_v52 = vadd.f32 %v4441_v51, %v6309_v45  ;;  %v2998_v56 = vpop.f32.mrb[23].mxu1 }
0x102f   : > { %v2999_v57 = vadd.f32 %v6309_v45, %v2998_v56 }
0x1030   : > { %v3010_v59 = vsel %vm1439_vm10, %v3004_v52, -inf }
0x1031   : > { %3011 = vmax.xlane.f32.xlu0 %v3010_v59  ;;  %v3007_v60 = vsel %vm1439_vm10, %v2999_v57, -inf  ;;  %v4819_v59 = vld [vmem:[%s6736_s2 + $0x8] sm:$0xff]  }
0x1032   : > { %3008 = vmax.xlane.f32.xlu1 %v3007_v60 }
0x1043   : > { %4789 = vrot.lane.b32.xlu1 %v6316_v54, %s5351_s26 }
0x1047   : > { %3126 = vrot.lane.b32.xlu1 %v6288_v58, %s5353_s6 }
0x104b   : > { %3128 = vrot.lane.b32.xlu1 %v6290_v34, %s5353_s6 }
0x10be   : > { %v3012_v61 = vpop.xlane.xlu0 %3011 }
0x10bf   : > { %v3014_v62 = vsub.f32 %v3004_v52, %v3012_v61  ;;  %v3009_v63 = vpop.xlane.xlu1 %3008 }
0x10c0   : > { %v3013_v23 = vsub.f32 %v2999_v57, %v3009_v63 }
0x10c1   : > { %v3017_v0 = vmul.f32 1.442695, %v3014_v62 }
0x10c2   : > { %v3015_v24 = vmul.f32 1.442695, %v3013_v23 }
0x10c3   : > { %4882 = vpow2.f32 %v3017_v0  ;;  %v4790_v4 = vpop.permute.xlu1 %4789 }
0x10c4   : > { %v4792_v5 = vunpack.i.h.bf16 %v4790_v4  ;;  %v4791_v6 = vunpack.i.l.bf16 %v4790_v4  ;;  %4884 = vpow2.f32 %v3015_v24  ;;  %v4162_v4 = vld [vmem:[%s1063_s24] ss:$0 sm:$0xff] }
0x10c6   : > { %v4557_v7 = vpack.c.bf16 %v4792_v5, %v4791_v6 }
0x10c7   : > { %v3127_v20 = vpop.permute.xlu1 %3126 }
0x10c8   : > { %4558 = vmatprep.subr.bf16.mxu0 %v4557_v7 }
0x10c9   : > { %4560 = vmatpush3.bf16.msra.mxu0 %v4557_v7 }
0x10cd   : > { %v4883_v8 = vpop.eup %4882 }
0x10ce   : > { %v3022_v58 = vsel %vm1439_vm10, %v4883_v8, 0.0  ;;  %v4885_v9 = vpop.eup %4884 }
0x10cf   : > { %3023 = vadd.xlane.f32.xlu0 %v3022_v58  ;;  %v3019_v34 = vsel %vm1439_vm10, %v4885_v9, 0.0 }
0x10d3   : > { %3020 = vadd.xlane.f32.xlu0 %v3019_v34 }
0x10e9   : > { %4794 = vrot.lane.b32.xlu0 %v6273_v22, %s5353_s6  ;;  %v3129_v22 = vpop.permute.xlu1 %3128 }
0x115c   : > { %v3024_v1 = vpop.xlane.xlu0 %3023 }
0x115d   : > { %4886 = vrcp.f32 %v3024_v1 }
0x1160   : > { %v3021_v10 = vpop.xlane.xlu0 %3020 }
0x1161   : > { %4888 = vrcp.f32 %v3021_v10 }
0x1164   : > { %v4795_v11 = vpop.permute.xlu0 %4794 }
0x1165   : > { %v4797_v12 = vunpack.i.h.bf16 %v4795_v11  ;;  %v4796_v13 = vunpack.i.l.bf16 %v4795_v11 }
0x1167   : > { %v4561_v14 = vpack.c.bf16 %v4797_v12, %v4796_v13  ;;  %v4887_v15 = vpop.eup %4886 }
0x1168   : > { %v3028_v19 = vmul.f32 %v4887_v15, %v4883_v8 }
0x1169   : > { %4563 = vmatprep.subr.msk.bf16.mxu0 %vm6123_vm4, %v4561_v14 }
0x116b   : > { %v4889_v16 = vpop.eup %4888 }
0x116c   : > { %v3027_v18 = vmul.f32 %v4889_v16, %v4885_v9 }
0x116e   : > { %4446 = vmatprep.mubr.msk.f32.mxu0 %vm1439_vm10, %v3027_v18 }
0x116f   : > { %4447 = vmatmul.mubr.msk.f32.vlgmr.msra.gmra.mrb[30].mxu0 %vm1439_vm10, %v3028_v19 }
0x1170   : > { %4566 = vmatpush3.bf16.xpose.msk.msra.mxu0 %vm6123_vm4, %v4561_v14  ;;  %4453 = vmatprep.mubr.msk.f32.mxu0 %vm1351_vm3, %v3127_v20 }
0x1171   : > { %4471 = vmatprep.subr.bf16.mxu0 %v5348_v17 }
0x1177   : > { %4454 = vmatmul.mubr.msk.f32.vlgmr.msra.gmra.mrb[32].mxu0 %vm1351_vm3, %v3129_v22  ;;  %v4820_v22 = vld [vmem:[%s6067_s22] sm:$0xff]  }
0x1178   : > { %4475 = vmatprep.mubr.msk.bf16.mxu0 %vm5349_vm2, %v5348_v17  ;;  %4472 = vmatpush3.bf16.msra.mxu0 %v4820_v22 }
0x1179   : > { %4473 = vmatprep.subr.bf16.mxu0 %v5348_v17 }
0x1242   : > { %v4448_v21 = vpop.f32.mrb[30].mxu0 }
0x1243   : > { %v3107_v25 = vpop.f32.mrb[31].mxu0 }
0x124a   : > { %v4455_v53 = vpop.f32.mrb[32].mxu0 }
0x124b   : > { %v3214_v26 = vadd.f32 %v4455_v53, %v6309_v45  ;;  %v3208_v27 = vpop.f32.mrb[33].mxu0  ;;  %v4823_v53 = vld [vmem:[%s6065_s20 + $0x8] sm:$0xff]  }
0x124c   : > { %v3209_v28 = vadd.f32 %v6309_v45, %v3208_v27 }
0x124d   : > { %v3220_v55 = vsel %vm1439_vm10, %v3214_v26, -inf }
0x124e   : > { %3221 = vmax.xlane.f32.xlu0 %v3220_v55  ;;  %v3217_v42 = vsel %vm1439_vm10, %v3209_v28, -inf }
0x124f   : > { %3218 = vmax.xlane.f32.xlu1 %v3217_v42 }
0x1260   : > { %4799 = vrot.lane.b32.xlu1 %v6316_v54, %s5353_s6 }
0x1264   : > { %2910 = vrot.lane.b32.xlu1 %v6346_v49, %s5354_s0 }
0x1268   : > { %3118 = vrot.lane.b32.xlu1 %v3107_v25, %s5355_s21  ;;  %v4822_v25 = vld [vmem:[%s6065_s20] sm:$0xff]  }
0x126c   : > { %3120 = vrot.lane.b32.xlu1 %v4448_v21, %s5355_s21  ;;  %v4821_v21 = vld [vmem:[%s6067_s22 + $0x8] sm:$0xff]  }
0x126d   : > { %4474 = vmatpush3.bf16.msra.mxu0 %v4821_v21 }
0x12db   : > { %v3222_v29 = vpop.xlane.xlu0 %3221 }
0x12dc   : > { %v3224_v30 = vsub.f32 %v3214_v26, %v3222_v29  ;;  %v3219_v31 = vpop.xlane.xlu1 %3218 }
0x12dd   : > { %v3223_v45 = vsub.f32 %v3209_v28, %v3219_v31 }
0x12de   : > { %v3227_v32 = vmul.f32 1.442695, %v3224_v30 }
0x12df   : > { %v3225_v33 = vmul.f32 1.442695, %v3223_v45  ;;  %v4168_v45 = vld [vmem:[%s5990_s4 + $0x2] ss:$0 sm:$0xff] }
0x12e0   : > { %v4800_v35 = vpop.permute.xlu1 %4799 }
0x12e1   : > { %4890 = vpow2.f32 %v3225_v33  ;;  %v4802_v36 = vunpack.i.h.bf16 %v4800_v35  ;;  %v4801_v37 = vunpack.i.l.bf16 %v4800_v35 }
0x12e2   : > { %4892 = vpow2.f32 %v3227_v32 }
0x12e3   : > { %v4567_v39 = vpack.c.bf16 %v4802_v36, %v4801_v37  ;;  %v4169_v36 = vld [vmem:[%s5996_s13 + $0x2] ss:$0 sm:$0xff] }
0x12e4   : > { %v2911_v54 = vpop.permute.xlu1 %2910 }
0x12e5   : > { %2915 = vst.msk [vmem:[#allocation3 + $0x8] sm:$0xff] %vm1755_vm11, %v2911_v54  ;;  %4568 = vmatprep.subr.bf16.mxu1 %v4567_v39 }
0x12e6   : > { %4570 = vmatpush3.bf16.msra.mxu1 %v4567_v39 }
0x12e7   : > { %4463 = vmatprep.subr.bf16.mxu1 %v5348_v17 }
0x12e8   : > { %v3119_v40 = vpop.permute.xlu1 %3118 }
0x12eb   : > { %v4891_v43 = vpop.eup %4890 }
0x12ec   : > { %v3121_v44 = vpop.permute.xlu1 %3120  ;;  %v3229_v46 = vsel %vm1439_vm10, %v4891_v43, 0.0  ;;  %v4893_v2 = vpop.eup %4892 }
0x12ed   : > { %3125 = vst.msk [vmem:[#allocation3 + $0x8] sm:$0xff] %vm1966_vm12, %v3121_v44  ;;  %3230 = vadd.xlane.f32.xlu0 %v3229_v46  ;;  %v3232_v47 = vsel %vm1439_vm10, %v4893_v2, 0.0  ;;  %v4825_v44 = vld [vmem:[%s6065_s20 + $0x18] sm:$0xff]   ;;  %v4170_v46 = vld [vmem:[%s1066_s8] ss:$0 sm:$0xff]  ;;  %s6740_s8 = sld [smem:[#allocation35_spill]] }
0x12f1   : > { %3233 = vadd.xlane.f32.xlu0 %v3232_v47 }
0x12f3   : > { %p4180_p12 = scmp.ne.s32.totalorder %s6740_s8, 1 }
0x12f4   : > { %s6741_s15 = sld [smem:[#allocation74_spill]] (!%p4180_p12)  ;;  %vm3671_vm15 = vcmask (!%p4180_p12), 257024  }
0x1307   : > { %2908 = vrot.lane.b32.xlu0 %v6348_v50, %s5354_s0  ;;  %v4818_v50 = vld [vmem:[%s6736_s2] sm:$0xff]   ;;  %s6742_s0 = sld [smem:[#allocation75_spill]] (!%p4180_p12) }
0x137a   : > { %v3231_v48 = vpop.xlane.xlu0 %3230 }
0x137b   : > { %4894 = vrcp.f32 %v3231_v48 }
0x137e   : > { %v3234_v3 = vpop.xlane.xlu0 %3233 }
0x137f   : > { %4896 = vrcp.f32 %v3234_v3 }
0x1382   : > { %v2909_v49 = vpop.permute.xlu0 %2908 }
0x1383   : > { %2914 = vst.msk [vmem:[#allocation3] sm:$0xff] %vm1755_vm11, %v2909_v49 }
0x1384   : > { %3124 = vst.msk [vmem:[#allocation3] sm:$0xff] %vm1966_vm12, %v3119_v40 }
0x1385   : > { %v4895_v51 = vpop.eup %4894 }
0x1386   : > { %v3237_v52 = vmul.f32 %v4895_v51, %v4891_v43  ;;  %v4824_v43 = vld [vmem:[%s6065_s20 + $0x10] sm:$0xff]  }
0x1388   : > { %4460 = vmatprep.mubr.msk.f32.mxu1 %vm1439_vm10, %v3237_v52 }
0x1389   : > { %v4897_v56 = vpop.eup %4896 }
0x138a   : > { %v3238_v57 = vmul.f32 %v4897_v56, %v4893_v2 }
0x138c   : > { %4461 = vmatmul.mubr.msk.f32.vlgmr.msra.gmra.mrb[24].mxu1 %vm1439_vm10, %v3238_v57 }
0x138d   : > { %4467 = vmatprep.mubr.msk.bf16.mxu1 %vm5349_vm2, %v5348_v17  ;;  %4464 = vmatpush3.bf16.msra.mxu1 %v4818_v50  ;;  %v4179_v50 = vld [vmem:[%s1074_s9] ss:$0 sm:$0xff] }
0x138e   : > { %4465 = vmatprep.subr.bf16.mxu1 %v5348_v17 }
0x1391   : > { %4466 = vmatpush3.bf16.msra.mxu1 %v4819_v59 }
0x1392   : > { %4479 = vmatprep.subr.bf16.mxu1 %v5348_v17 }
0x145f   : > { %v4462_v60 = vpop.f32.mrb[24].mxu1 }
0x1460   : > { %3330 = vrot.lane.b32.xlu1 %v4462_v60, %s5356_s25  ;;  %v3317_v61 = vpop.f32.mrb[25].mxu1 }
0x1461   : > { %3328 = vrot.lane.b32.xlu0 %v3317_v61, %s5356_s25 }
0x14d2   : > { %v3331_v62 = vpop.permute.xlu1 %3330 }
0x14d3   : > { %3335 = vst.msk [vmem:[#allocation3 + $0x8] sm:$0xff] %vm2177_vm13, %v3331_v62  ;;  %v3329_v63 = vpop.permute.xlu0 %3328 }
0x14d4   : > { %3334 = vst.msk [vmem:[#allocation3] sm:$0xff] %vm2177_vm13, %v3329_v63 }
0x14da   : > { %v3337_v23 = vld [vmem:[#allocation3 + $0x8] sm:$0xff] }
0x14db   : > { %v3336_v0 = vld [vmem:[#allocation3] sm:$0xff] }
0x14dc   : > { %v3338_v24 = vpack.c.bf16 %v3337_v23, %v3336_v0 }
0x14de   : > { %4468 = vmatmul.mubr.msk.bf16.vlgmr.msra.gmra.mrb[28].mxu1 %vm1107_vm1, %v3338_v24 }
0x14df   : > { %4487 = vmatprep.mubr.msk.bf16.mxu1 %vm5349_vm2, %v5348_v17  ;;  %4480 = vmatpush3.bf16.msra.mxu1 %v4822_v25 }
0x14e0   : > { %4481 = vmatprep.subr.bf16.mxu1 %v5348_v17 }
0x14e3   : > { %4482 = vmatpush3.bf16.msra.mxu1 %v4823_v53 }
0x14e4   : > { %4483 = vmatprep.subr.bf16.mxu1 %v5348_v17 }
0x14e7   : > { %4484 = vmatpush3.bf16.msra.mxu1 %v4824_v43 }
0x14e8   : > { %4485 = vmatprep.subr.bf16.mxu1 %v5348_v17 }
0x14eb   : > { %4486 = vmatpush3.bf16.msra.mxu1 %v4825_v44 }
0x15b1   : > { %v3399_v5 = vpop.f32.mrb[28].mxu1 }
0x15b2   : > { %v3400_v6 = vadd.f32 %v4162_v4, %v3399_v5  ;;  %v4469_v7 = vpop.f32.mrb[29].mxu1 }
0x15b3   : > { %v3402_v8 = vpop.f32.mrb[30].mxu1 }
0x15b4   : > { %v6415_v58 = vadd.f32 %v3400_v6, %v6245_v38  ;;  %v3403_v9 = vadd.f32 %v4162_v4, %v3402_v8  ;;  %v4470_v34 = vpop.f32.mrb[31].mxu1 }
0x15b6   : > { %v6418_v1 = vadd.f32 %v3403_v9, %v6248_v41  ;;  %v3412_v10 = vsel %vm1107_vm1, %v6415_v58, 0.0 }
0x15b7   : > { %3413 = vadd.xlane.f32.xlu0 %v3412_v10 }
0x15b8   : > { %v3415_v11 = vsel %vm1107_vm1, %v6418_v1, 0.0 }
0x15b9   : > { %3416 = vadd.xlane.f32.xlu1 %v3415_v11 }
0x1644   : > { %v3414_v12 = vpop.xlane.xlu0 %3413 }
0x1645   : > { %v3418_v13 = vmul.f32 0.03125, %v3414_v12 }
0x1646   : > { %v3417_v38 = vpop.xlane.xlu1 %3416 }
0x1647   : > { %v3420_v14 = vsub.f32 %v6415_v58, %v3418_v13  ;;  %v3419_v15 = vmul.f32 0.03125, %v3417_v38 }
0x1649   : > { %v3421_v41 = vsub.f32 %v6418_v1, %v3419_v15  ;;  %v3422_v16 = vmul.f32 %v3420_v14, %v3420_v14 }
0x164b   : > { %v3424_v18 = vsel %vm1107_vm1, %v3422_v16, 0.0  ;;  %v3423_v19 = vmul.f32 %v3421_v41, %v3421_v41 }
0x164c   : > { %3425 = vadd.xlane.f32.xlu0 %v3424_v18  ;;  %v4181_v18 = vld [vmem:[%s6741_s15] ss:$0 sm:$0xff] (!%p4180_p12) }
0x164d   : > { %v3427_v20 = vsel %vm1107_vm1, %v3423_v19, 0.0 }
0x1650   : > { %3428 = vadd.xlane.f32.xlu0 %v3427_v20  ;;  %v4182_v20 = vld [vmem:[%s6742_s0] ss:$0 sm:$0xff] (!%p4180_p12) }
0x16d9   : > { %v3426_v26 = vpop.xlane.xlu0 %3425 }
0x16da   : > { %v3430_v27 = vmul.f32 0.03125, %v3426_v26 }
0x16dc   : > { %v3432_v28 = vadd.f32 1e-05, %v3430_v27 }
0x16dd   : > { %v3429_v55 = vpop.xlane.xlu0 %3428 }
0x16de   : > { %4898 = vrsqrt.f32 %v3432_v28  ;;  %v3431_v42 = vmul.f32 0.03125, %v3429_v55 }
0x16e0   : > { %v3433_v29 = vadd.f32 1e-05, %v3431_v42 }
0x16e2   : > { %4900 = vrsqrt.f32 %v3433_v29 }
0x16e8   : > { %v4899_v30 = vpop.eup %4898 }
0x16e9   : > { %v3436_v31 = vmul.f32 %v4899_v30, %v3420_v14 }
0x16eb   : > { %v3444_v33 = vmul.f32 %v4168_v45, %v3436_v31 }
0x16ec   : > { %v4901_v32 = vpop.eup %4900 }
0x16ed   : > { %v3437_v35 = vmul.f32 %v4901_v32, %v3421_v41  ;;  %v3452_v39 = vadd.f32 %v4169_v36, %v3444_v33 }
0x16ef   : > { %v3445_v37 = vmul.f32 %v4168_v45, %v3437_v35 }
0x16f1   : > { %v3453_v54 = vadd.f32 %v4169_v36, %v3445_v37 }
0x16f3   : > { %v3454_v40 = vpack.c.bf16 %v3453_v54, %v3452_v39 }
0x16f5   : > { %4476 = vmatmul.mubr.msk.bf16.vlgmr.msra.gmra.mrb[36].mxu0 %vm1107_vm1, %v3454_v40 }
0x17c8   : > { %v3515_v2 = vpop.f32.mrb[36].mxu0 }
0x17c9   : > { %v3516_v47 = vadd.f32 %v4170_v46, %v3515_v2  ;;  %v4477_v48 = vpop.f32.mrb[37].mxu0 }
0x17ca   : > { %v3518_v3 = vpop.f32.mrb[38].mxu0 }
0x17cb   : > { %v3519_v49 = vadd.f32 %v4170_v46, %v3518_v3  ;;  %v4478_v51 = vpop.f32.mrb[39].mxu0  ;;  %v3522_v52 = vmax.f32 %v3516_v47, 0.0 }
0x17cd   : > { %v3523_v56 = vmax.f32 %v3519_v49, 0.0 }
0x17cf   : > { %v3524_v57 = vpack.c.bf16 %v3523_v56, %v3522_v52 }
0x17d1   : > { %4488 = vmatmul.mubr.msk.bf16.vlgmr.msra.gmra.mrb[32].mxu1 %vm3557_vm14, %v3524_v57 }
0x18a4   : > { %v3595_v17 = vpop.f32.mrb[32].mxu1 }
0x18a5   : > { %v3602_v59 = vadd.f32 %v3595_v17, %v6415_v58  ;;  %v4489_v60 = vpop.f32.mrb[33].mxu1  ;;  %3618 = sbr.rel (%p4180_p12) target bundleno = 6633 (0x19e9), region = 140 }
0x18a6   : > { %v3598_v61 = vpop.f32.mrb[34].mxu1 }
0x18a7   : > { %v3611_v62 = vadd.f32 %v4179_v50, %v3602_v59  ;;  %v3603_v63 = vadd.f32 %v3598_v61, %v6418_v1  ;;  %v4490_v23 = vpop.f32.mrb[35].mxu1 }
0x18a9   : > { %3613 = vst.msk [vmem:[#allocation2] sm:$0xff] %vm1107_vm1, %v3611_v62  ;;  %v3612_v0 = vadd.f32 %v4179_v50, %v3603_v63  ;;  %v3621_v24 = vsel (!%p4180_p12), %vm1107_vm1, %v3611_v62, 0.0 }
0x18aa   : > { %3622 = vadd.xlane.f32.xlu0 (!%p4180_p12), %v3621_v24 }
0x18ab   : > { %3614 = vst.msk [vmem:[#allocation2 + $0x8] sm:$0xff] %vm1107_vm1, %v3612_v0  ;;  %v3624_v4 = vsel (!%p4180_p12), %vm1107_vm1, %v3612_v0, 0.0 }
0x18ae   : > { %3625 = vadd.xlane.f32.xlu0 %v3624_v4 }
0x1937   : > { %v3623_v5 = vpop.xlane.xlu0 %3622 }
0x1938   : > { %v3627_v6 = vmul.f32 0.03125, %v3623_v5 }
0x193a   : > { %v3629_v7 = vsub.f32 %v3611_v62, %v3627_v6 }
0x193b   : > { %v3626_v8 = vpop.xlane.xlu0 %3625 }
0x193c   : > { %v3628_v58 = vmul.f32 0.03125, %v3626_v8  ;;  %v3631_v9 = vmul.f32 %v3629_v7, %v3629_v7 }
0x193e   : > { %v3630_v34 = vsub.f32 %v3612_v0, %v3628_v58  ;;  %v3633_v1 = vsel %vm1107_vm1, %v3631_v9, 0.0 }
0x193f   : > { %3634 = vadd.xlane.f32.xlu1 %v3633_v1 }
0x1940   : > { %v3632_v10 = vmul.f32 %v3630_v34, %v3630_v34 }
0x1942   : > { %v3636_v11 = vsel %vm1107_vm1, %v3632_v10, 0.0 }
0x1943   : > { %3637 = vadd.xlane.f32.xlu1 %v3636_v11 }
0x19cc   : > { %v3635_v12 = vpop.xlane.xlu1 %3634 }
0x19cd   : > { %v3639_v13 = vmul.f32 0.03125, %v3635_v12 }
0x19cf   : > { %v3641_v38 = vadd.f32 1e-05, %v3639_v13 }
0x19d0   : > { %v3638_v14 = vpop.xlane.xlu1 %3637 }
0x19d1   : > { %4902 = vrsqrt.f32 %v3641_v38  ;;  %v3640_v15 = vmul.f32 0.03125, %v3638_v14 }
0x19d3   : > { %v3642_v41 = vadd.f32 1e-05, %v3640_v15 }
0x19d5   : > { %4904 = vrsqrt.f32 %v3642_v41 }
0x19db   : > { %v4903_v16 = vpop.eup %4902 }
0x19dc   : > { %v3645_v19 = vmul.f32 %v4903_v16, %v3629_v7 }
0x19de   : > { %v3653_v22 = vmul.f32 %v4181_v18, %v3645_v19 }
0x19df   : > { %v4905_v21 = vpop.eup %4904 }
0x19e0   : > { %v3661_v25 = vadd.f32 %v4182_v20, %v3653_v22  ;;  %v3646_v53 = vmul.f32 %v4905_v21, %v3630_v34 }
0x19e2   : > { %v4196_v26 = vpack.c.bf16 %v3661_v25, %v3661_v25  ;;  %v3654_v27 = vmul.f32 %v4181_v18, %v3646_v53 }
0x19e4   : > { %3672 = vst.msk [vmem:[%s6071_s23] sm:$0xf] %vm3671_vm15, %v4196_v26  ;;  %v3662_v28 = vadd.f32 %v4182_v20, %v3654_v27 }
0x19e6   : > { %v4197_v55 = vpack.c.bf16 %v3662_v28, %v3662_v28 }
0x19e8   : > { %3673 = vst.msk [vmem:[%s6071_s23 + $0x4] sm:$0xf] %vm3671_vm15, %v4197_v55 }
0x19e9 PF: > { %s6743_s21 = sld [smem:[#allocation36_spill]]  ;;  %s6744_s19 = sld [smem:[#allocation47_spill]] }
0x19ea   : > { %s6745_s16 = sld [smem:[#allocation76_spill]]  ;;  %s3688_s11 = sshll.u32 %s6071_s23, 4  ;;  %s6475_s11 = int_to_ptr.vmem [resolvable:$true] %s3688_s11 }
0x19eb   : > { %s3675_s28 = scalar_lea.sflag [#allocation8], %s5966_s27  ;;  %s5186_s29 = scalar_lea.vmem %s6475_s11, 128 }
0x19ec   : > { %p5187_p0 = scmp.ne.s32.totalorder %s6475_s11, %s5186_s29  ;;  %s5357_s14 = smov [#allocation21]  }
0x19ed   : > { %s5190_s12 = sshll.u32 %s5357_s14, 4  ;;  %s5191_s12 = int_to_ptr.vmem [resolvable:$false] %s5190_s12 }
0x19ee   : > { %s5192_s2 = scalar_lea.vmem %s5191_s12, 256  ;;  %p5193_p4 = scmp.lt.s32.totalorder %s6475_s11, %s5191_s12 }
0x19ef   : > { %s4198_s10 = sshll.u32 %s6743_s21, 7  ;;  %p6746_p7 = scmp.ne.s32.totalorder %s6744_s19, 0 }
0x19f0   : > { %s6472_s5 = scalar_lea.hbm %s6745_s16, %s4198_s10  ;;  %p5194_p13 = scmp.lt.s32.totalorder %s5192_s2, %s5186_s29 }
0x19f1   : > { %p5188_p1 = pnand %p5187_p0, %p6746_p7 }
0x19f2   : > { %p5195_p11 = por %p5194_p13, %p5193_p4 }
0x19f3   : > { %p5189_p9 = pneg %p5188_p1 }
0x19f5   : > { %p5196_p8 = pnand %p5195_p11, %p5189_p9 }
0x19f7   : > { %5199 = shalt.err (!%p5196_p8)
}
0x19f8   : > { %s5200_s23 = scalar_lea.hbm %s6472_s5, 128  ;;  %s5204_s18 = scalar_lea.hbm %s6745_s16, 256 }
0x19f9   : > { %p5201_p5 = scmp.ne.s32.totalorder %s6472_s5, %s5200_s23  ;;  %p5205_p2 = scmp.lt.u32.totalorder %s6472_s5, %s6745_s16 }
0x19fa   : > { %p5206_p10 = scmp.lt.u32.totalorder %s5204_s18, %s5200_s23  ;;  %p5208_p0 = scmp.lt.u32.totalorder %s5200_s23, %s6472_s5 }
0x19fb   : > { %p5202_p6 = pnand %p5201_p5, %p6746_p7 }
0x19fc   : > { %p5207_p12 = por %p5206_p10, %p5205_p2 }
0x19fd   : > { %p5203_p3 = pneg %p5202_p6 }
0x19fe   : > { %p5209_p1 = por %p5208_p0, %p5207_p12 }
0x1a00   : > { %p5210_p9 = pnand %p5209_p1, %p5203_p3 }
0x1a02   : > { %5213 = shalt.err (!%p5210_p9)
}
0x1a03   : > { %s5358_s4 = smov 64   ;;  %s5359_s13 = smov 4  }
0x1a04   : > { %4601 = dma.vmem_to_hbm [thread:$0]  (%p6746_p7), %s6475_s11, 128, %s6472_s5, %s3675_s28, %s5358_s4, %s5358_s4, %s5359_s13  }
0x1a05 PF: > { %s6747_s20 = sld [smem:[#allocation39_spill]]  ;;  %s6748_s26 = sld [smem:[#allocation32_spill]] }
0x1a06   : > { %s6749_s8 = sld [smem:[#allocation48_spill]] }
0x1a0b   : > { %p4636_p4 = scmp.ge.s32.totalorder %s6747_s20, 2  ;;  %s3703_s1 = sand.u32 1, %s6748_s26  }
0x1a0c   : > { %p6750_p13 = scmp.ne.s32.totalorder %s6749_s8, 0  ;;  %s3704_s9 = scalar_lea.sflag [#allocation8], %s3703_s1 }
0x1a0e   : > { %p4632_p11 = pnand %p4636_p4, %p6750_p13 }
0x1a10   : > { %5285 = dma.done.wait (!%p4632_p11), %s3704_s9, 128  }
0x1a11   : > { %5287 = vsyncadd (!%p4632_p11), %s3704_s9, 4294967168  ;;  %s52_s2 = sadd.s32 1, %s6747_s20   ;;  %s6751_s11 = sld [smem:[#allocation30_spill]] }
0x1a12   : > { %p49_p8 = scmp.ge.s32.totalorder %s52_s2, 6   ;;  %s6752_s4 = sld [smem:[#allocation31_spill]] }
0x1a13   : > { %s6753_s29 = sld [smem:[#allocation44_spill]]  ;;  %s6754_s30 = sld [smem:[#allocation33_spill]] }
0x1a14   : > { %s6755_s0 = sld [smem:[#allocation34_spill]]  ;;  %s6756_s21 = sld [smem:[#allocation45_spill]] }
0x1a15   : > { %s6757_s1 = sld [smem:[#allocation37_spill]]  ;;  %s6758_s22 = sld [smem:[#allocation38_spill]] }
0x1a16   : > { %s6759_s23 = sld [smem:[#allocation41_spill]]  ;;  %s6760_s24 = sld [smem:[#allocation42_spill]] }
0x1a17   :  { %51 = sbr.rel (!%p49_p8) target bundleno = 45 (0x2d), region = 281 }
0x1a1b   : > { %6761 = sst [smem:[#allocation30_spill]] %s6758_s22 }
0x1a1e   :  { %3709 = vsyncpa [#allocation7], 1 }
0x1a1f   :  { %3711 = vsyncpa [#allocation7 + $0x1], 1 }
0x1a20   :  { %3712 = vsyncpa [#allocation10], 1 }
0x1a21   :  { %3714 = vsyncpa [#allocation10 + $0x1], 1 }
0x1a22   :  { %3715 = vsyncpa [#allocation13], 1 }
0x1a23   :  { %3717 = vsyncpa [#allocation13 + $0x1], 1 }
0x1a24   :  { %3718 = vsyncpa [#allocation16], 1 }
0x1a25   :  { %3720 = vsyncpa [#allocation16 + $0x1], 1 }
0x1a26   :  { %3721 = vsyncpa [#allocation19], 1 }
0x1a27   :  { %3723 = vsyncpa [#allocation19 + $0x1], 1 }
0x1a28   :  { %3724 = vsyncpa [#allocation8], 1 }
0x1a29   :  { %3726 = vsyncpa [#allocation8 + $0x1], 1 }

</bundles_post_ra>
